<compile_context>
chip_gen: v7x
topology: tpu7x:2x2x1
jax: 0.10.0
libtpu: 0.0.40
codegen_flags: <defaults>
</compile_context>

<pallas_src>
import functools

import jax
import jax.numpy as jnp
from jax.experimental import pallas as pl
from jax.experimental.pallas import tpu as pltpu

# TODO(synk): only the ResidualBlock stack of ResizerMainNetwork is implemented as
# Pallas kernels; the trilinear ResizerBlock and the outer ConvUnits (c1..c4) of
# the full network are not covered here.


def _round_up(x, m):
    return (x + m - 1) // m * m


def _cdiv(a, b):
    return -(-a // b)


@functools.partial(jax.jit, static_argnames=("tile_rows",))
def residual_block(x, w1, b1, gamma1, beta1, w2, b2, gamma2, beta2,
                   tile_rows=None):
    """x: (N, C, D, H, W) float32 (PyTorch NCDHW).  Returns the same shape."""
    N, C, D, H, W = x.shape
    Dp, Hp, Wp = D + 2, H + 2, W + 2
    WpC = Wp * C
    L = _round_up(WpC, 128)                # lane-dense minor axis (wp, c) + zero pad
    R = N * Dp * Hp                        # rows of the (row, lane) layout
    eps = 1e-5
    count = N * D * H * W                  # BN population (interior positions)

    # ---- row tiling ---------------------------------------------------------
    G = max(16, _round_up(Hp + 1, 16))     # halo rows >= max |conv row offset|
    if tile_rows is None:
        tile_rows = 256                    # VMEM-friendly default (v7x: 64 MiB)
    TM = max(G, _round_up(min(tile_rows, _round_up(R, G)), G))
    ntiles = _cdiv(R, TM)
    if ntiles == 1 and R > G:              # >= 2 tiles keeps both v7x TCs busy
        TM = max(G, _round_up(_cdiv(R, 2), G))
        ntiles = _cdiv(R, TM)
    if ntiles > 1 and ntiles % 2 == 1:     # prefer an even tile count (2 TCs)
        TM2 = max(G, _round_up(_cdiv(R, ntiles + 1), G))
        if _cdiv(R, TM2) % 2 == 0:
            TM = TM2
            ntiles = _cdiv(R, TM)
    Rp = ntiles * TM
    nTG = TM // G

    # conv row sub-blocks: accumulate in vregs, single store per sub-block
    if TM <= 256:
        SB = TM
    else:
        SB = next(s for s in (256, 128, 64, 32, 16) if TM % s == 0)
    n_sub = TM // SB

    # ---- lane panels (exploit the +-1 w band of the folded weights) --------
    P = 128
    n_panels = L // P
    halo = _round_up(C, P)                 # +-C lane band, rounded to lane tiles
    K_u = min(L, P + 2 * halo)             # per-panel contraction width
    in_los = []
    for p in range(n_panels):
        lo = max(0, p * P - halo)
        lo = min(lo, L - K_u)
        in_los.append(lo)

    roffs = [(kd - 1) * Hp + (kh - 1) for kd in range(3) for kh in range(3)]

    # ---- layout glue (plain JAX): NCDHW -> rows=(n,dp,hp), lanes=(wp,c) -----
    x_cl = jnp.transpose(x, (0, 2, 3, 4, 1)).astype(jnp.float32)          # NDHWC
    xpad = jnp.pad(x_cl, ((0, 0), (1, 1), (1, 1), (1, 1), (0, 0)))
    xg = jnp.pad(xpad.reshape(R, WpC), ((0, Rp - R), (0, L - WpC)))       # f32, pass C
    xgb = xg.astype(jnp.bfloat16)                                         # bf16, pass A
    rmask = jnp.pad(
        jnp.pad(jnp.ones((N, D, H), jnp.float32),
                ((0, 0), (1, 1), (1, 1))).reshape(R, 1),
        ((0, Rp - R), (0, 0)))                                            # (Rp, 1)

    def panel_weights(w):
        """(Cout, Cin, 3, 3, 3) -> (n_panels, 9, K_u, P) bf16 banded weight panels.

        B[kd*3+kh, w_in*C+ci, w_out*C+co] = w[co, ci, kd, kh, w_in - w_out + 1]
        (zero outside the +-1 band); each 128-lane output panel only keeps the
        K_u input lanes that can touch it.
        """
        S = jnp.stack([jnp.eye(Wp, k=1 - kw, dtype=jnp.float32)
                       for kw in range(3)], axis=-1)                      # (win,wout,kw)
        T = jnp.transpose(w, (2, 3, 4, 1, 0)).astype(jnp.float32)         # kd,kh,kw,ci,co
        B = jnp.einsum('pqk,dhkio->dhpiqo', S, T).reshape(9, WpC, WpC)
        B = jnp.pad(B, ((0, 0), (0, L - WpC), (0, L - WpC)))
        panels = [B[:, lo:lo + K_u, p * P:(p + 1) * P]
                  for p, lo in enumerate(in_los)]
        return jnp.stack(panels, axis=0).astype(jnp.bfloat16)

    def lane_bias(b):
        return jnp.pad(jnp.tile(b.astype(jnp.float32), Wp),
                       (0, L - WpC)).reshape(1, L)

    w1p, w2p = panel_weights(w1), panel_weights(w2)
    b1l, b2l = lane_bias(b1), lane_bias(b2)

    # ---- index maps (block units of each spec's own block shape) -----------
    def curr_map(i):
        return (i, 0)

    def prev_halo_map(i):                  # G-row block just above the tile
        return (jnp.maximum(i * nTG - 1, 0), 0)

    def next_halo_map(i):                  # G-row block just below the tile
        return (jnp.minimum((i + 1) * nTG, ntiles * nTG - 1), 0)

    def const2(i):
        return (0, 0)

    def const4(i):
        return (0, 0, 0, 0)

    # ---- shared conv body: register-accumulated banded panels + stats ------
    def conv_and_stats(win_ref, w_ref, b_ref, rm_ref, h_ref, st_ref):
        brow = b_ref[...]                                            # (1, L) f32
        sums = [jnp.zeros((1, P), jnp.float32) for _ in range(n_panels)]
        sqs = [jnp.zeros((1, P), jnp.float32) for _ in range(n_panels)]
        for s in range(n_sub):
            r0 = s * SB
            keep = rm_ref[r0:r0 + SB, :] > 0.5                       # (SB, 1)
            for p in range(n_panels):
                lo = in_los[p]
                acc = None
                for k in range(9):                                   # 9 banded taps
                    rs = G + roffs[k] + r0
                    d = jnp.dot(win_ref[rs:rs + SB, lo:lo + K_u],
                                w_ref[p, k],
                                preferred_element_type=jnp.float32)
                    acc = d if acc is None else acc + d
                acc = acc + brow[:, p * P:(p + 1) * P]
                # single lane-dense store per (sub-block, panel)
                h_ref[r0:r0 + SB, p * P:(p + 1) * P] = acc.astype(h_ref.dtype)
                # row-masked BN partial sums (pad lanes discarded later in JAX)
                vm = jnp.where(keep, acc, 0.0)
                sums[p] = sums[p] + jnp.sum(vm, axis=0, keepdims=True)
                sqs[p] = sqs[p] + jnp.sum(vm * vm, axis=0, keepdims=True)
        st_ref[...] = jnp.concatenate(                               # one store
            [jnp.concatenate(sums, axis=1),
             jnp.concatenate(sqs, axis=1),
             jnp.zeros((6, L), jnp.float32)], axis=0)

    cparams = pltpu.CompilerParams(
        dimension_semantics=("parallel",),
        vmem_limit_bytes=64 * 1024 * 1024)

    # ---- pass A: conv1 per tile + BN1 partial sums --------------------------
    def conv1_kernel(xp_ref, xc_ref, xn_ref, rm_ref, w_ref, b_ref,
                     h1_ref, st_ref, win_ref):
        win_ref[0:G, :] = xp_ref[...]                    # bf16 -> bf16, no casts
        win_ref[G:G + TM, :] = xc_ref[...]
        win_ref[G + TM:G + TM + G, :] = xn_ref[...]
        conv_and_stats(win_ref, w_ref, b_ref, rm_ref, h1_ref, st_ref)

    h1, stats1 = pl.pallas_call(
        conv1_kernel,
        out_shape=(jax.ShapeDtypeStruct((Rp, L), jnp.bfloat16),
                   jax.ShapeDtypeStruct((ntiles * 8, L), jnp.float32)),
        grid=(ntiles,),
        in_specs=[pl.BlockSpec((G, L), prev_halo_map),
                  pl.BlockSpec((TM, L), curr_map),
                  pl.BlockSpec((G, L), next_halo_map),
                  pl.BlockSpec((TM, 1), curr_map),
                  pl.BlockSpec((n_panels, 9, K_u, P), const4),
                  pl.BlockSpec((1, L), const2)],
        out_specs=(pl.BlockSpec((TM, L), curr_map),
                   pl.BlockSpec((8, L), curr_map)),
        scratch_shapes=[pltpu.VMEM((TM + 2 * G, L), jnp.bfloat16)],
        compiler_params=cparams,
    )(xgb, xgb, xgb, rmask, w1p, b1l)

    # ---- tiny (C,)-sized BN finalization between passes (plain JAX) --------
    # NOTE: E[x^2]-mean^2 in f32 can cancel for very large volumes; fine here.
    def bn_affine(stats, gamma, beta):
        s = stats.reshape(ntiles, 8, L)[:, 0:2, :].sum(axis=0)          # (2, L)
        s = s[:, :WpC].reshape(2, Wp, C)[:, 1:Wp - 1, :].sum(axis=1)    # (2, C)
        mean = s[0] / count
        var = jnp.maximum(s[1] / count - mean * mean, 0.0)              # biased var
        scale = gamma.astype(jnp.float32) * jax.lax.rsqrt(var + eps)
        shift = beta.astype(jnp.float32) - mean * scale

        def lanes(v):            # tile over Wp; zero w-pad columns and extra lanes
            t = jnp.tile(v, Wp).reshape(Wp, C)
            t = t.at[0, :].set(0.0).at[Wp - 1, :].set(0.0)
            return jnp.pad(t.reshape(WpC), (0, L - WpC)).reshape(1, L)

        return lanes(scale), lanes(shift)

    sc1, sh1 = bn_affine(stats1, gamma1, beta1)

    # ---- pass B: bn1 + leaky relu + row mask -> conv2 + BN2 partials --------
    def conv2_kernel(hp_ref, hc_ref, hn_ref, rp_ref, rc_ref, rn_ref,
                     sc_ref, sh_ref, w_ref, b_ref, h2_ref, st_ref, win_ref):
        sc = sc_ref[...]
        sh = sh_ref[...]

        def act(h_ref_, rm_ref_):
            # f32 VPU math; lane (w-pad) zeroing is folded into sc/sh == 0
            a = h_ref_[...].astype(jnp.float32) * sc + sh
            a = jnp.where(a >= 0, a, 0.2 * a)
            a = jnp.where(rm_ref_[...] > 0.5, a, 0.0)   # zero rows = conv2 padding
            return a.astype(jnp.bfloat16)               # single cast at window fill

        win_ref[0:G, :] = act(hp_ref, rp_ref)
        win_ref[G:G + TM, :] = act(hc_ref, rc_ref)
        win_ref[G + TM:G + TM + G, :] = act(hn_ref, rn_ref)
        conv_and_stats(win_ref, w_ref, b_ref, rc_ref, h2_ref, st_ref)

    h2, stats2 = pl.pallas_call(
        conv2_kernel,
        out_shape=(jax.ShapeDtypeStruct((Rp, L), jnp.bfloat16),
                   jax.ShapeDtypeStruct((ntiles * 8, L), jnp.float32)),
        grid=(ntiles,),
        in_specs=[pl.BlockSpec((G, L), prev_halo_map),
                  pl.BlockSpec((TM, L), curr_map),
                  pl.BlockSpec((G, L), next_halo_map),
                  pl.BlockSpec((G, 1), prev_halo_map),
                  pl.BlockSpec((TM, 1), curr_map),
                  pl.BlockSpec((G, 1), next_halo_map),
                  pl.BlockSpec((1, L), const2),
                  pl.BlockSpec((1, L), const2),
                  pl.BlockSpec((n_panels, 9, K_u, P), const4),
                  pl.BlockSpec((1, L), const2)],
        out_specs=(pl.BlockSpec((TM, L), curr_map),
                   pl.BlockSpec((8, L), curr_map)),
        scratch_shapes=[pltpu.VMEM((TM + 2 * G, L), jnp.bfloat16)],
        compiler_params=cparams,
    )(h1, h1, h1, rmask, rmask, rmask, sc1, sh1, w2p, b2l)

    sc2, sh2 = bn_affine(stats2, gamma2, beta2)

    # ---- pass C: bn2 affine + residual add (bigger tiles, pure HBM-bound) ---
    gc = max(1, min(ntiles, max(1, 1024 // TM)))
    if ntiles >= 2:
        gc = min(gc, max(1, ntiles // 2))      # keep >= 2 tiles for 2 TCs
    while ntiles % gc != 0:
        gc -= 1
    TMC = TM * gc
    ntiles_c = Rp // TMC

    def bn_res_kernel(h2_ref, x_ref, sc_ref, sh_ref, o_ref):
        o_ref[...] = (h2_ref[...].astype(jnp.float32) * sc_ref[...]
                      + sh_ref[...] + x_ref[...])

    out_flat = pl.pallas_call(
        bn_res_kernel,
        out_shape=jax.ShapeDtypeStruct((Rp, L), jnp.float32),
        grid=(ntiles_c,),
        in_specs=[pl.BlockSpec((TMC, L), curr_map),
                  pl.BlockSpec((TMC, L), curr_map),
                  pl.BlockSpec((1, L), const2),
                  pl.BlockSpec((1, L), const2)],
        out_specs=pl.BlockSpec((TMC, L), curr_map),
        compiler_params=cparams,
    )(h2, xg, sc2, sh2)

    out5 = out_flat[:R, :WpC].reshape(N, Dp, Hp, Wp, C)[:, 1:-1, 1:-1, 1:-1, :]
    return jnp.transpose(out5, (0, 4, 1, 2, 3))                       # NCDHW


# ---- pure-JAX reference (numerical sanity check) ----
def ref_residual_block(x, w1, b1, gamma1, beta1, w2, b2, gamma2, beta2):
    eps = 1e-5
    dn = ('NCDHW', 'OIDHW', 'NCDHW')

    def conv(y, w, b):
        out = jax.lax.conv_general_dilated(
            y, w, window_strides=(1, 1, 1),
            padding=((1, 1), (1, 1), (1, 1)),
            dimension_numbers=dn, precision=jax.lax.Precision.HIGHEST)
        return out + b[None, :, None, None, None]

    def bn(y, gamma, beta):
        mean = jnp.mean(y, axis=(0, 2, 3, 4), keepdims=True)
        var = jnp.mean((y - mean) ** 2, axis=(0, 2, 3, 4), keepdims=True)
        yn = (y - mean) / jnp.sqrt(var + eps)
        return yn * gamma[None, :, None, None, None] + beta[None, :, None, None, None]

    h = bn(conv(x, w1, b1), gamma1, beta1)
    h = jnp.where(h >= 0, h, 0.2 * h)
    o = bn(conv(h, w2, b2), gamma2, beta2)
    return o + x


if __name__ == "__main__":
    key = jax.random.PRNGKey(0)
    N, C, D, H, W = 2, 4, 8, 8, 8
    ks = jax.random.split(key, 9)

    x = jax.random.normal(ks[0], (N, C, D, H, W), jnp.float32)
    w1 = 0.1 * jax.random.normal(ks[1], (C, C, 3, 3, 3), jnp.float32)
    b1 = 0.1 * jax.random.normal(ks[2], (C,), jnp.float32)
    gamma1 = 1.0 + 0.1 * jax.random.normal(ks[3], (C,), jnp.float32)
    beta1 = 0.1 * jax.random.normal(ks[4], (C,), jnp.float32)
    w2 = 0.1 * jax.random.normal(ks[5], (C, C, 3, 3, 3), jnp.float32)
    b2 = 0.1 * jax.random.normal(ks[6], (C,), jnp.float32)
    gamma2 = 1.0 + 0.1 * jax.random.normal(ks[7], (C,), jnp.float32)
    beta2 = 0.1 * jax.random.normal(ks[8], (C,), jnp.float32)

    # small tile so the multi-tile / halo / clamped-edge paths are exercised
    out = residual_block(x, w1, b1, gamma1, beta1, w2, b2, gamma2, beta2,
                         tile_rows=64)
    out = jax.block_until_ready(out)

    ref = ref_residual_block(x, w1, b1, gamma1, beta1, w2, b2, gamma2, beta2)
    max_err = float(jnp.max(jnp.abs(out - ref)))
    assert out.shape == (N, C, D, H, W), out.shape
    assert max_err < 5e-2, f"max abs err too large: {max_err}"
    print("KERNEL_OK")
</pallas_src>

<mosaic_0001>
module attributes {stable_mosaic.version = 11 : i64} {
  func.func @conv1_kernel(%arg0: i32, %arg1: memref<16x128xbf16, #tpu.memory_space<vmem>>, %arg2: memref<64x128xbf16, #tpu.memory_space<vmem>>, %arg3: memref<16x128xbf16, #tpu.memory_space<vmem>>, %arg4: memref<64x1xf32, #tpu.memory_space<vmem>>, %arg5: memref<1x9x128x128xbf16, #tpu.memory_space<vmem>>, %arg6: memref<1x128xf32, #tpu.memory_space<vmem>>, %arg7: memref<64x128xbf16, #tpu.memory_space<vmem>>, %arg8: memref<8x128xf32, #tpu.memory_space<vmem>>, %arg9: memref<96x128xbf16, #tpu.memory_space<vmem>>) attributes {dimension_semantics = [#tpu.dimension_semantics<parallel>], iteration_bounds = array<i64: 4>, scalar_prefetch = 0 : i64, scratch_operands = 1 : i64, tpu.core_type = #tpu.core_type<tc>, window_params = [{transform_indices = @transform_0, window_bounds = array<i64: 16, 128>}, {transform_indices = @transform_1, window_bounds = array<i64: 64, 128>}, {transform_indices = @transform_2, window_bounds = array<i64: 16, 128>}, {transform_indices = @transform_3, window_bounds = array<i64: 64, 1>}, {pipeline_mode = #tpu.pipeline_mode<synchronous>, transform_indices = @transform_4, window_bounds = array<i64: 1, 9, 128, 128>}, {pipeline_mode = #tpu.pipeline_mode<synchronous>, transform_indices = @transform_5, window_bounds = array<i64: 1, 128>}, {transform_indices = @transform_6, window_bounds = array<i64: 64, 128>}, {transform_indices = @transform_7, window_bounds = array<i64: 8, 128>}]} {
    %c0 = arith.constant 0 : index
    %c0_0 = arith.constant 0 : index
    %0 = vector.load %arg1[%c0, %c0_0] : memref<16x128xbf16, #tpu.memory_space<vmem>>, vector<16x128xbf16>
    %c0_1 = arith.constant 0 : index
    %c0_2 = arith.constant 0 : index
    %1 = vector.load %arg9[%c0_1, %c0_2] : memref<96x128xbf16, #tpu.memory_space<vmem>>, vector<16x128xbf16>
    tpu.vector_store %arg9[%c0_1, %c0_2], %0 {strides = array<i32>} : memref<96x128xbf16, #tpu.memory_space<vmem>>, vector<16x128xbf16>,
    %c0_3 = arith.constant 0 : index
    %c0_4 = arith.constant 0 : index
    %2 = vector.load %arg2[%c0_3, %c0_4] : memref<64x128xbf16, #tpu.memory_space<vmem>>, vector<64x128xbf16>
    %c16 = arith.constant 16 : index
    %c0_5 = arith.constant 0 : index
    %3 = vector.load %arg9[%c16, %c0_5] : memref<96x128xbf16, #tpu.memory_space<vmem>>, vector<64x128xbf16>
    tpu.vector_store %arg9[%c16, %c0_5], %2 {strides = array<i32>} : memref<96x128xbf16, #tpu.memory_space<vmem>>, vector<64x128xbf16>,
    %c0_6 = arith.constant 0 : index
    %c0_7 = arith.constant 0 : index
    %4 = vector.load %arg3[%c0_6, %c0_7] : memref<16x128xbf16, #tpu.memory_space<vmem>>, vector<16x128xbf16>
    %c80 = arith.constant 80 : index
    %c0_8 = arith.constant 0 : index
    %5 = vector.load %arg9[%c80, %c0_8] : memref<96x128xbf16, #tpu.memory_space<vmem>>, vector<16x128xbf16>
    tpu.vector_store %arg9[%c80, %c0_8], %4 {strides = array<i32>} : memref<96x128xbf16, #tpu.memory_space<vmem>>, vector<16x128xbf16>,
    %c0_9 = arith.constant 0 : index
    %c0_10 = arith.constant 0 : index
    %6 = vector.load %arg6[%c0_9, %c0_10] : memref<1x128xf32, #tpu.memory_space<vmem>>, vector<1x128xf32>
    %cst = arith.constant 0.000000e+00 : f32
    %7 = vector.broadcast %cst : f32 to vector<1x128xf32>
    %cst_11 = arith.constant 0.000000e+00 : f32
    %8 = vector.broadcast %cst_11 : f32 to vector<1x128xf32>
    %c0_12 = arith.constant 0 : index
    %c0_13 = arith.constant 0 : index
    %9 = vector.load %arg4[%c0_12, %c0_13] : memref<64x1xf32, #tpu.memory_space<vmem>>, vector<64x1xf32>
    %cst_14 = arith.constant 5.000000e-01 : f32
    %10 = vector.broadcast %cst_14 : f32 to vector<64x1xf32>
    %11 = arith.cmpf ogt, %9, %10 : vector<64x1xf32>
    %c5 = arith.constant 5 : index
    %c0_15 = arith.constant 0 : index
    %12 = vector.load %arg9[%c5, %c0_15] : memref<96x128xbf16, #tpu.memory_space<vmem>>, vector<64x128xbf16>
    %c0_16 = arith.constant 0 : index
    %c0_17 = arith.constant 0 : index
    %c0_18 = arith.constant 0 : index
    %c0_19 = arith.constant 0 : index
    %13 = vector.load %arg5[%c0_16, %c0_17, %c0_18, %c0_19] : memref<1x9x128x128xbf16, #tpu.memory_space<vmem>>, vector<1x1x128x128xbf16>
    %14 = vector.shape_cast %13 : vector<1x1x128x128xbf16> to vector<128x128xbf16>
    %cst_20 = arith.constant dense<0.000000e+00> : vector<64x128xf32>
    %15 = tpu.matmul %12, %14, %cst_20 {dimension_numbers = #tpu.dot_dimension_numbers<[1], [0], [0], [1], [0, 0, 1, 1], [], []>} : vector<64x128xbf16>, vector<128x128xbf16>, vector<64x128xf32> -> vector<64x128xf32>
    %c6 = arith.constant 6 : index
    %c0_21 = arith.constant 0 : index
    %16 = vector.load %arg9[%c6, %c0_21] : memref<96x128xbf16, #tpu.memory_space<vmem>>, vector<64x128xbf16>
    %c0_22 = arith.constant 0 : index
    %c1 = arith.constant 1 : index
    %c0_23 = arith.constant 0 : index
    %c0_24 = arith.constant 0 : index
    %17 = vector.load %arg5[%c0_22, %c1, %c0_23, %c0_24] : memref<1x9x128x128xbf16, #tpu.memory_space<vmem>>, vector<1x1x128x128xbf16>
    %18 = vector.shape_cast %17 : vector<1x1x128x128xbf16> to vector<128x128xbf16>
    %cst_25 = arith.constant dense<0.000000e+00> : vector<64x128xf32>
    %19 = tpu.matmul %16, %18, %cst_25 {dimension_numbers = #tpu.dot_dimension_numbers<[1], [0], [0], [1], [0, 0, 1, 1], [], []>} : vector<64x128xbf16>, vector<128x128xbf16>, vector<64x128xf32> -> vector<64x128xf32>
    %20 = arith.addf %15, %19 : vector<64x128xf32>
    %c7 = arith.constant 7 : index
    %c0_26 = arith.constant 0 : index
    %21 = vector.load %arg9[%c7, %c0_26] : memref<96x128xbf16, #tpu.memory_space<vmem>>, vector<64x128xbf16>
    %c0_27 = arith.constant 0 : index
    %c2 = arith.constant 2 : index
    %c0_28 = arith.constant 0 : index
    %c0_29 = arith.constant 0 : index
    %22 = vector.load %arg5[%c0_27, %c2, %c0_28, %c0_29] : memref<1x9x128x128xbf16, #tpu.memory_space<vmem>>, vector<1x1x128x128xbf16>
    %23 = vector.shape_cast %22 : vector<1x1x128x128xbf16> to vector<128x128xbf16>
    %cst_30 = arith.constant dense<0.000000e+00> : vector<64x128xf32>
    %24 = tpu.matmul %21, %23, %cst_30 {dimension_numbers = #tpu.dot_dimension_numbers<[1], [0], [0], [1], [0, 0, 1, 1], [], []>} : vector<64x128xbf16>, vector<128x128xbf16>, vector<64x128xf32> -> vector<64x128xf32>
    %25 = arith.addf %20, %24 : vector<64x128xf32>
    %c15 = arith.constant 15 : index
    %c0_31 = arith.constant 0 : index
    %26 = vector.load %arg9[%c15, %c0_31] : memref<96x128xbf16, #tpu.memory_space<vmem>>, vector<64x128xbf16>
    %c0_32 = arith.constant 0 : index
    %c3 = arith.constant 3 : index
    %c0_33 = arith.constant 0 : index
    %c0_34 = arith.constant 0 : index
    %27 = vector.load %arg5[%c0_32, %c3, %c0_33, %c0_34] : memref<1x9x128x128xbf16, #tpu.memory_space<vmem>>, vector<1x1x128x128xbf16>
    %28 = vector.shape_cast %27 : vector<1x1x128x128xbf16> to vector<128x128xbf16>
    %cst_35 = arith.constant dense<0.000000e+00> : vector<64x128xf32>
    %29 = tpu.matmul %26, %28, %cst_35 {dimension_numbers = #tpu.dot_dimension_numbers<[1], [0], [0], [1], [0, 0, 1, 1], [], []>} : vector<64x128xbf16>, vector<128x128xbf16>, vector<64x128xf32> -> vector<64x128xf32>
    %30 = arith.addf %25, %29 : vector<64x128xf32>
    %c16_36 = arith.constant 16 : index
    %c0_37 = arith.constant 0 : index
    %31 = vector.load %arg9[%c16_36, %c0_37] : memref<96x128xbf16, #tpu.memory_space<vmem>>, vector<64x128xbf16>
    %c0_38 = arith.constant 0 : index
    %c4 = arith.constant 4 : index
    %c0_39 = arith.constant 0 : index
    %c0_40 = arith.constant 0 : index
    %32 = vector.load %arg5[%c0_38, %c4, %c0_39, %c0_40] : memref<1x9x128x128xbf16, #tpu.memory_space<vmem>>, vector<1x1x128x128xbf16>
    %33 = vector.shape_cast %32 : vector<1x1x128x128xbf16> to vector<128x128xbf16>
    %cst_41 = arith.constant dense<0.000000e+00> : vector<64x128xf32>
    %34 = tpu.matmul %31, %33, %cst_41 {dimension_numbers = #tpu.dot_dimension_numbers<[1], [0], [0], [1], [0, 0, 1, 1], [], []>} : vector<64x128xbf16>, vector<128x128xbf16>, vector<64x128xf32> -> vector<64x128xf32>
    %35 = arith.addf %30, %34 : vector<64x128xf32>
    %c17 = arith.constant 17 : index
    %c0_42 = arith.constant 0 : index
    %36 = vector.load %arg9[%c17, %c0_42] : memref<96x128xbf16, #tpu.memory_space<vmem>>, vector<64x128xbf16>
    %c0_43 = arith.constant 0 : index
    %c5_44 = arith.constant 5 : index
    %c0_45 = arith.constant 0 : index
    %c0_46 = arith.constant 0 : index
    %37 = vector.load %arg5[%c0_43, %c5_44, %c0_45, %c0_46] : memref<1x9x128x128xbf16, #tpu.memory_space<vmem>>, vector<1x1x128x128xbf16>
    %38 = vector.shape_cast %37 : vector<1x1x128x128xbf16> to vector<128x128xbf16>
    %cst_47 = arith.constant dense<0.000000e+00> : vector<64x128xf32>
    %39 = tpu.matmul %36, %38, %cst_47 {dimension_numbers = #tpu.dot_dimension_numbers<[1], [0], [0], [1], [0, 0, 1, 1], [], []>} : vector<64x128xbf16>, vector<128x128xbf16>, vector<64x128xf32> -> vector<64x128xf32>
    %40 = arith.addf %35, %39 : vector<64x128xf32>
    %c25 = arith.constant 25 : index
    %c0_48 = arith.constant 0 : index
    %41 = vector.load %arg9[%c25, %c0_48] : memref<96x128xbf16, #tpu.memory_space<vmem>>, vector<64x128xbf16>
    %c0_49 = arith.constant 0 : index
    %c6_50 = arith.constant 6 : index
    %c0_51 = arith.constant 0 : index
    %c0_52 = arith.constant 0 : index
    %42 = vector.load %arg5[%c0_49, %c6_50, %c0_51, %c0_52] : memref<1x9x128x128xbf16, #tpu.memory_space<vmem>>, vector<1x1x128x128xbf16>
    %43 = vector.shape_cast %42 : vector<1x1x128x128xbf16> to vector<128x128xbf16>
    %cst_53 = arith.constant dense<0.000000e+00> : vector<64x128xf32>
    %44 = tpu.matmul %41, %43, %cst_53 {dimension_numbers = #tpu.dot_dimension_numbers<[1], [0], [0], [1], [0, 0, 1, 1], [], []>} : vector<64x128xbf16>, vector<128x128xbf16>, vector<64x128xf32> -> vector<64x128xf32>
    %45 = arith.addf %40, %44 : vector<64x128xf32>
    %c26 = arith.constant 26 : index
    %c0_54 = arith.constant 0 : index
    %46 = vector.load %arg9[%c26, %c0_54] : memref<96x128xbf16, #tpu.memory_space<vmem>>, vector<64x128xbf16>
    %c0_55 = arith.constant 0 : index
    %c7_56 = arith.constant 7 : index
    %c0_57 = arith.constant 0 : index
    %c0_58 = arith.constant 0 : index
    %47 = vector.load %arg5[%c0_55, %c7_56, %c0_57, %c0_58] : memref<1x9x128x128xbf16, #tpu.memory_space<vmem>>, vector<1x1x128x128xbf16>
    %48 = vector.shape_cast %47 : vector<1x1x128x128xbf16> to vector<128x128xbf16>
    %cst_59 = arith.constant dense<0.000000e+00> : vector<64x128xf32>
    %49 = tpu.matmul %46, %48, %cst_59 {dimension_numbers = #tpu.dot_dimension_numbers<[1], [0], [0], [1], [0, 0, 1, 1], [], []>} : vector<64x128xbf16>, vector<128x128xbf16>, vector<64x128xf32> -> vector<64x128xf32>
    %50 = arith.addf %45, %49 : vector<64x128xf32>
    %c27 = arith.constant 27 : index
    %c0_60 = arith.constant 0 : index
    %51 = vector.load %arg9[%c27, %c0_60] : memref<96x128xbf16, #tpu.memory_space<vmem>>, vector<64x128xbf16>
    %c0_61 = arith.constant 0 : index
    %c8 = arith.constant 8 : index
    %c0_62 = arith.constant 0 : index
    %c0_63 = arith.constant 0 : index
    %52 = vector.load %arg5[%c0_61, %c8, %c0_62, %c0_63] : memref<1x9x128x128xbf16, #tpu.memory_space<vmem>>, vector<1x1x128x128xbf16>
    %53 = vector.shape_cast %52 : vector<1x1x128x128xbf16> to vector<128x128xbf16>
    %cst_64 = arith.constant dense<0.000000e+00> : vector<64x128xf32>
    %54 = tpu.matmul %51, %53, %cst_64 {dimension_numbers = #tpu.dot_dimension_numbers<[1], [0], [0], [1], [0, 0, 1, 1], [], []>} : vector<64x128xbf16>, vector<128x128xbf16>, vector<64x128xf32> -> vector<64x128xf32>
    %55 = arith.addf %50, %54 : vector<64x128xf32>
    %56 = vector.broadcast %6 : vector<1x128xf32> to vector<64x128xf32>
    %57 = arith.addf %55, %56 : vector<64x128xf32>
    %58 = arith.truncf %57 : vector<64x128xf32> to vector<64x128xbf16>
    %c0_65 = arith.constant 0 : index
    %c0_66 = arith.constant 0 : index
    %59 = vector.load %arg7[%c0_65, %c0_66] : memref<64x128xbf16, #tpu.memory_space<vmem>>, vector<64x128xbf16>
    tpu.vector_store %arg7[%c0_65, %c0_66], %58 {strides = array<i32>} : memref<64x128xbf16, #tpu.memory_space<vmem>>, vector<64x128xbf16>,
    %cst_67 = arith.constant 0.000000e+00 : f32
    %60 = vector.shape_cast %11 : vector<64x1xi1> to vector<64x1xi1>
    %61 = vector.broadcast %60 : vector<64x1xi1> to vector<64x128xi1>
    %62 = vector.broadcast %cst_67 : f32 to vector<64x128xf32>
    %63 = arith.select %61, %57, %62 : vector<64x128xi1>, vector<64x128xf32>
    %cst_68 = arith.constant dense<0.000000e+00> : vector<128xf32>
    %64 = vector.multi_reduction <add>, %63, %cst_68 [0] : vector<64x128xf32> to vector<128xf32>
    %65 = vector.shape_cast %64 : vector<128xf32> to vector<1x128xf32>
    %66 = arith.addf %7, %65 : vector<1x128xf32>
    %67 = arith.mulf %63, %63 : vector<64x128xf32>
    %cst_69 = arith.constant dense<0.000000e+00> : vector<128xf32>
    %68 = vector.multi_reduction <add>, %67, %cst_69 [0] : vector<64x128xf32> to vector<128xf32>
    %69 = vector.shape_cast %68 : vector<128xf32> to vector<1x128xf32>
    %70 = arith.addf %8, %69 : vector<1x128xf32>
    %cst_70 = arith.constant 0.000000e+00 : f32
    %71 = vector.broadcast %cst_70 : f32 to vector<6x128xf32>
    %72 = tpu.concatenate %66, %70, %71 in 0 : vector<1x128xf32>, vector<1x128xf32>, vector<6x128xf32> -> vector<8x128xf32>
    %c0_71 = arith.constant 0 : index
    %c0_72 = arith.constant 0 : index
    %73 = vector.load %arg8[%c0_71, %c0_72] : memref<8x128xf32, #tpu.memory_space<vmem>>, vector<8x128xf32>
    tpu.vector_store %arg8[%c0_71, %c0_72], %72 {strides = array<i32>} : memref<8x128xf32, #tpu.memory_space<vmem>>, vector<8x128xf32>,
    return
  }
  func.func @transform_0(%arg0: i32) -> (i32, i32) {
    %c4_i32 = arith.constant 4 : i32
    %0 = arith.muli %arg0, %c4_i32 : i32
    %c1_i32 = arith.constant 1 : i32
    %1 = arith.subi %0, %c1_i32 : i32
    %c0_i32 = arith.constant 0 : i32
    %2 = arith.maxsi %1, %c0_i32 : i32
    %c0_i32_0 = arith.constant 0 : i32
    %c0_i32_1 = arith.constant 0 : i32
    return %2, %c0_i32_0 : i32, i32
  }
  func.func @transform_1(%arg0: i32) -> (i32, i32) {
    %c0_i32 = arith.constant 0 : i32
    %c0_i32_0 = arith.constant 0 : i32
    return %arg0, %c0_i32 : i32, i32
  }
  func.func @transform_2(%arg0: i32) -> (i32, i32) {
    %c1_i32 = arith.constant 1 : i32
    %0 = arith.addi %arg0, %c1_i32 : i32
    %c4_i32 = arith.constant 4 : i32
    %1 = arith.muli %0, %c4_i32 : i32
    %c15_i32 = arith.constant 15 : i32
    %2 = arith.minsi %1, %c15_i32 : i32
    %c0_i32 = arith.constant 0 : i32
    %c0_i32_0 = arith.constant 0 : i32
    return %2, %c0_i32 : i32, i32
  }
  func.func @transform_3(%arg0: i32) -> (i32, i32) {
    %c0_i32 = arith.constant 0 : i32
    %c0_i32_0 = arith.constant 0 : i32
    return %arg0, %c0_i32 : i32, i32
  }
  func.func @transform_4(%arg0: i32) -> (i32, i32, i32, i32) {
    %c0_i32 = arith.constant 0 : i32
    %c0_i32_0 = arith.constant 0 : i32
    %c0_i32_1 = arith.constant 0 : i32
    %c0_i32_2 = arith.constant 0 : i32
    %c0_i32_3 = arith.constant 0 : i32
    return %c0_i32, %c0_i32_0, %c0_i32_1, %c0_i32_2 : i32, i32, i32, i32
  }
  func.func @transform_5(%arg0: i32) -> (i32, i32) {
    %c0_i32 = arith.constant 0 : i32
    %c0_i32_0 = arith.constant 0 : i32
    %c0_i32_1 = arith.constant 0 : i32
    return %c0_i32, %c0_i32_0 : i32, i32
  }
  func.func @transform_6(%arg0: i32) -> (i32, i32) {
    %c0_i32 = arith.constant 0 : i32
    %c0_i32_0 = arith.constant 0 : i32
    return %arg0, %c0_i32 : i32, i32
  }
  func.func @transform_7(%arg0: i32) -> (i32, i32) {
    %c0_i32 = arith.constant 0 : i32
    %c0_i32_0 = arith.constant 0 : i32
    return %arg0, %c0_i32 : i32, i32
  }
}

module attributes {stable_mosaic.version = 11 : i64} {
  func.func @conv2_kernel(%arg0: i32, %arg1: memref<16x128xbf16, #tpu.memory_space<vmem>>, %arg2: memref<64x128xbf16, #tpu.memory_space<vmem>>, %arg3: memref<16x128xbf16, #tpu.memory_space<vmem>>, %arg4: memref<16x1xf32, #tpu.memory_space<vmem>>, %arg5: memref<64x1xf32, #tpu.memory_space<vmem>>, %arg6: memref<16x1xf32, #tpu.memory_space<vmem>>, %arg7: memref<1x128xf32, #tpu.memory_space<vmem>>, %arg8: memref<1x128xf32, #tpu.memory_space<vmem>>, %arg9: memref<1x9x128x128xbf16, #tpu.memory_space<vmem>>, %arg10: memref<1x128xf32, #tpu.memory_space<vmem>>, %arg11: memref<64x128xbf16, #tpu.memory_space<vmem>>, %arg12: memref<8x128xf32, #tpu.memory_space<vmem>>, %arg13: memref<96x128xbf16, #tpu.memory_space<vmem>>) attributes {dimension_semantics = [#tpu.dimension_semantics<parallel>], iteration_bounds = array<i64: 4>, scalar_prefetch = 0 : i64, scratch_operands = 1 : i64, tpu.core_type = #tpu.core_type<tc>, window_params = [{transform_indices = @transform_0, window_bounds = array<i64: 16, 128>}, {transform_indices = @transform_1, window_bounds = array<i64: 64, 128>}, {transform_indices = @transform_2, window_bounds = array<i64: 16, 128>}, {transform_indices = @transform_3, window_bounds = array<i64: 16, 1>}, {transform_indices = @transform_4, window_bounds = array<i64: 64, 1>}, {transform_indices = @transform_5, window_bounds = array<i64: 16, 1>}, {pipeline_mode = #tpu.pipeline_mode<synchronous>, transform_indices = @transform_6, window_bounds = array<i64: 1, 128>}, {pipeline_mode = #tpu.pipeline_mode<synchronous>, transform_indices = @transform_7, window_bounds = array<i64: 1, 128>}, {pipeline_mode = #tpu.pipeline_mode<synchronous>, transform_indices = @transform_8, window_bounds = array<i64: 1, 9, 128, 128>}, {pipeline_mode = #tpu.pipeline_mode<synchronous>, transform_indices = @transform_9, window_bounds = array<i64: 1, 128>}, {transform_indices = @transform_10, window_bounds = array<i64: 64, 128>}, {transform_indices = @transform_11, window_bounds = array<i64: 8, 128>}]} {
    %c0 = arith.constant 0 : index
    %c0_0 = arith.constant 0 : index
    %0 = vector.load %arg7[%c0, %c0_0] : memref<1x128xf32, #tpu.memory_space<vmem>>, vector<1x128xf32>
    %c0_1 = arith.constant 0 : index
    %c0_2 = arith.constant 0 : index
    %1 = vector.load %arg8[%c0_1, %c0_2] : memref<1x128xf32, #tpu.memory_space<vmem>>, vector<1x128xf32>
    %c0_3 = arith.constant 0 : index
    %c0_4 = arith.constant 0 : index
    %2 = vector.load %arg1[%c0_3, %c0_4] : memref<16x128xbf16, #tpu.memory_space<vmem>>, vector<16x128xbf16>
    %3 = arith.extf %2 : vector<16x128xbf16> to vector<16x128xf32>
    %4 = vector.broadcast %0 : vector<1x128xf32> to vector<16x128xf32>
    %5 = arith.mulf %3, %4 : vector<16x128xf32>
    %6 = vector.broadcast %1 : vector<1x128xf32> to vector<16x128xf32>
    %7 = arith.addf %5, %6 : vector<16x128xf32>
    %cst = arith.constant 0.000000e+00 : f32
    %8 = vector.broadcast %cst : f32 to vector<16x128xf32>
    %9 = arith.cmpf oge, %7, %8 : vector<16x128xf32>
    %cst_5 = arith.constant 2.000000e-01 : f32
    %10 = vector.broadcast %cst_5 : f32 to vector<16x128xf32>
    %11 = arith.mulf %10, %7 : vector<16x128xf32>
    %12 = arith.select %9, %7, %11 : vector<16x128xi1>, vector<16x128xf32>
    %c0_6 = arith.constant 0 : index
    %c0_7 = arith.constant 0 : index
    %13 = vector.load %arg4[%c0_6, %c0_7] : memref<16x1xf32, #tpu.memory_space<vmem>>, vector<16x1xf32>
    %cst_8 = arith.constant 5.000000e-01 : f32
    %14 = vector.broadcast %cst_8 : f32 to vector<16x1xf32>
    %15 = arith.cmpf ogt, %13, %14 : vector<16x1xf32>
    %cst_9 = arith.constant 0.000000e+00 : f32
    %16 = vector.shape_cast %15 : vector<16x1xi1> to vector<16x1xi1>
    %17 = vector.broadcast %16 : vector<16x1xi1> to vector<16x128xi1>
    %18 = vector.broadcast %cst_9 : f32 to vector<16x128xf32>
    %19 = arith.select %17, %12, %18 : vector<16x128xi1>, vector<16x128xf32>
    %20 = arith.truncf %19 : vector<16x128xf32> to vector<16x128xbf16>
    %c0_10 = arith.constant 0 : index
    %c0_11 = arith.constant 0 : index
    %21 = vector.load %arg13[%c0_10, %c0_11] : memref<96x128xbf16, #tpu.memory_space<vmem>>, vector<16x128xbf16>
    tpu.vector_store %arg13[%c0_10, %c0_11], %20 {strides = array<i32>} : memref<96x128xbf16, #tpu.memory_space<vmem>>, vector<16x128xbf16>,
    %c0_12 = arith.constant 0 : index
    %c0_13 = arith.constant 0 : index
    %22 = vector.load %arg2[%c0_12, %c0_13] : memref<64x128xbf16, #tpu.memory_space<vmem>>, vector<64x128xbf16>
    %23 = arith.extf %22 : vector<64x128xbf16> to vector<64x128xf32>
    %24 = vector.broadcast %0 : vector<1x128xf32> to vector<64x128xf32>
    %25 = arith.mulf %23, %24 : vector<64x128xf32>
    %26 = vector.broadcast %1 : vector<1x128xf32> to vector<64x128xf32>
    %27 = arith.addf %25, %26 : vector<64x128xf32>
    %cst_14 = arith.constant 0.000000e+00 : f32
    %28 = vector.broadcast %cst_14 : f32 to vector<64x128xf32>
    %29 = arith.cmpf oge, %27, %28 : vector<64x128xf32>
    %cst_15 = arith.constant 2.000000e-01 : f32
    %30 = vector.broadcast %cst_15 : f32 to vector<64x128xf32>
    %31 = arith.mulf %30, %27 : vector<64x128xf32>
    %32 = arith.select %29, %27, %31 : vector<64x128xi1>, vector<64x128xf32>
    %c0_16 = arith.constant 0 : index
    %c0_17 = arith.constant 0 : index
    %33 = vector.load %arg5[%c0_16, %c0_17] : memref<64x1xf32, #tpu.memory_space<vmem>>, vector<64x1xf32>
    %cst_18 = arith.constant 5.000000e-01 : f32
    %34 = vector.broadcast %cst_18 : f32 to vector<64x1xf32>
    %35 = arith.cmpf ogt, %33, %34 : vector<64x1xf32>
    %cst_19 = arith.constant 0.000000e+00 : f32
    %36 = vector.shape_cast %35 : vector<64x1xi1> to vector<64x1xi1>
    %37 = vector.broadcast %36 : vector<64x1xi1> to vector<64x128xi1>
    %38 = vector.broadcast %cst_19 : f32 to vector<64x128xf32>
    %39 = arith.select %37, %32, %38 : vector<64x128xi1>, vector<64x128xf32>
    %40 = arith.truncf %39 : vector<64x128xf32> to vector<64x128xbf16>
    %c16 = arith.constant 16 : index
    %c0_20 = arith.constant 0 : index
    %41 = vector.load %arg13[%c16, %c0_20] : memref<96x128xbf16, #tpu.memory_space<vmem>>, vector<64x128xbf16>
    tpu.vector_store %arg13[%c16, %c0_20], %40 {strides = array<i32>} : memref<96x128xbf16, #tpu.memory_space<vmem>>, vector<64x128xbf16>,
    %c0_21 = arith.constant 0 : index
    %c0_22 = arith.constant 0 : index
    %42 = vector.load %arg3[%c0_21, %c0_22] : memref<16x128xbf16, #tpu.memory_space<vmem>>, vector<16x128xbf16>
    %43 = arith.extf %42 : vector<16x128xbf16> to vector<16x128xf32>
    %44 = vector.broadcast %0 : vector<1x128xf32> to vector<16x128xf32>
    %45 = arith.mulf %43, %44 : vector<16x128xf32>
    %46 = vector.broadcast %1 : vector<1x128xf32> to vector<16x128xf32>
    %47 = arith.addf %45, %46 : vector<16x128xf32>
    %cst_23 = arith.constant 0.000000e+00 : f32
    %48 = vector.broadcast %cst_23 : f32 to vector<16x128xf32>
    %49 = arith.cmpf oge, %47, %48 : vector<16x128xf32>
    %cst_24 = arith.constant 2.000000e-01 : f32
    %50 = vector.broadcast %cst_24 : f32 to vector<16x128xf32>
    %51 = arith.mulf %50, %47 : vector<16x128xf32>
    %52 = arith.select %49, %47, %51 : vector<16x128xi1>, vector<16x128xf32>
    %c0_25 = arith.constant 0 : index
    %c0_26 = arith.constant 0 : index
    %53 = vector.load %arg6[%c0_25, %c0_26] : memref<16x1xf32, #tpu.memory_space<vmem>>, vector<16x1xf32>
    %cst_27 = arith.constant 5.000000e-01 : f32
    %54 = vector.broadcast %cst_27 : f32 to vector<16x1xf32>
    %55 = arith.cmpf ogt, %53, %54 : vector<16x1xf32>
    %cst_28 = arith.constant 0.000000e+00 : f32
    %56 = vector.shape_cast %55 : vector<16x1xi1> to vector<16x1xi1>
    %57 = vector.broadcast %56 : vector<16x1xi1> to vector<16x128xi1>
    %58 = vector.broadcast %cst_28 : f32 to vector<16x128xf32>
    %59 = arith.select %57, %52, %58 : vector<16x128xi1>, vector<16x128xf32>
    %60 = arith.truncf %59 : vector<16x128xf32> to vector<16x128xbf16>
    %c80 = arith.constant 80 : index
    %c0_29 = arith.constant 0 : index
    %61 = vector.load %arg13[%c80, %c0_29] : memref<96x128xbf16, #tpu.memory_space<vmem>>, vector<16x128xbf16>
    tpu.vector_store %arg13[%c80, %c0_29], %60 {strides = array<i32>} : memref<96x128xbf16, #tpu.memory_space<vmem>>, vector<16x128xbf16>,
    %c0_30 = arith.constant 0 : index
    %c0_31 = arith.constant 0 : index
    %62 = vector.load %arg10[%c0_30, %c0_31] : memref<1x128xf32, #tpu.memory_space<vmem>>, vector<1x128xf32>
    %cst_32 = arith.constant 0.000000e+00 : f32
    %63 = vector.broadcast %cst_32 : f32 to vector<1x128xf32>
    %cst_33 = arith.constant 0.000000e+00 : f32
    %64 = vector.broadcast %cst_33 : f32 to vector<1x128xf32>
    %c0_34 = arith.constant 0 : index
    %c0_35 = arith.constant 0 : index
    %65 = vector.load %arg5[%c0_34, %c0_35] : memref<64x1xf32, #tpu.memory_space<vmem>>, vector<64x1xf32>
    %cst_36 = arith.constant 5.000000e-01 : f32
    %66 = vector.broadcast %cst_36 : f32 to vector<64x1xf32>
    %67 = arith.cmpf ogt, %65, %66 : vector<64x1xf32>
    %c5 = arith.constant 5 : index
    %c0_37 = arith.constant 0 : index
    %68 = vector.load %arg13[%c5, %c0_37] : memref<96x128xbf16, #tpu.memory_space<vmem>>, vector<64x128xbf16>
    %c0_38 = arith.constant 0 : index
    %c0_39 = arith.constant 0 : index
    %c0_40 = arith.constant 0 : index
    %c0_41 = arith.constant 0 : index
    %69 = vector.load %arg9[%c0_38, %c0_39, %c0_40, %c0_41] : memref<1x9x128x128xbf16, #tpu.memory_space<vmem>>, vector<1x1x128x128xbf16>
    %70 = vector.shape_cast %69 : vector<1x1x128x128xbf16> to vector<128x128xbf16>
    %cst_42 = arith.constant dense<0.000000e+00> : vector<64x128xf32>
    %71 = tpu.matmul %68, %70, %cst_42 {dimension_numbers = #tpu.dot_dimension_numbers<[1], [0], [0], [1], [0, 0, 1, 1], [], []>} : vector<64x128xbf16>, vector<128x128xbf16>, vector<64x128xf32> -> vector<64x128xf32>
    %c6 = arith.constant 6 : index
    %c0_43 = arith.constant 0 : index
    %72 = vector.load %arg13[%c6, %c0_43] : memref<96x128xbf16, #tpu.memory_space<vmem>>, vector<64x128xbf16>
    %c0_44 = arith.constant 0 : index
    %c1 = arith.constant 1 : index
    %c0_45 = arith.constant 0 : index
    %c0_46 = arith.constant 0 : index
    %73 = vector.load %arg9[%c0_44, %c1, %c0_45, %c0_46] : memref<1x9x128x128xbf16, #tpu.memory_space<vmem>>, vector<1x1x128x128xbf16>
    %74 = vector.shape_cast %73 : vector<1x1x128x128xbf16> to vector<128x128xbf16>
    %cst_47 = arith.constant dense<0.000000e+00> : vector<64x128xf32>
    %75 = tpu.matmul %72, %74, %cst_47 {dimension_numbers = #tpu.dot_dimension_numbers<[1], [0], [0], [1], [0, 0, 1, 1], [], []>} : vector<64x128xbf16>, vector<128x128xbf16>, vector<64x128xf32> -> vector<64x128xf32>
    %76 = arith.addf %71, %75 : vector<64x128xf32>
    %c7 = arith.constant 7 : index
    %c0_48 = arith.constant 0 : index
    %77 = vector.load %arg13[%c7, %c0_48] : memref<96x128xbf16, #tpu.memory_space<vmem>>, vector<64x128xbf16>
    %c0_49 = arith.constant 0 : index
    %c2 = arith.constant 2 : index
    %c0_50 = arith.constant 0 : index
    %c0_51 = arith.constant 0 : index
    %78 = vector.load %arg9[%c0_49, %c2, %c0_50, %c0_51] : memref<1x9x128x128xbf16, #tpu.memory_space<vmem>>, vector<1x1x128x128xbf16>
    %79 = vector.shape_cast %78 : vector<1x1x128x128xbf16> to vector<128x128xbf16>
    %cst_52 = arith.constant dense<0.000000e+00> : vector<64x128xf32>
    %80 = tpu.matmul %77, %79, %cst_52 {dimension_numbers = #tpu.dot_dimension_numbers<[1], [0], [0], [1], [0, 0, 1, 1], [], []>} : vector<64x128xbf16>, vector<128x128xbf16>, vector<64x128xf32> -> vector<64x128xf32>
    %81 = arith.addf %76, %80 : vector<64x128xf32>
    %c15 = arith.constant 15 : index
    %c0_53 = arith.constant 0 : index
    %82 = vector.load %arg13[%c15, %c0_53] : memref<96x128xbf16, #tpu.memory_space<vmem>>, vector<64x128xbf16>
    %c0_54 = arith.constant 0 : index
    %c3 = arith.constant 3 : index
    %c0_55 = arith.constant 0 : index
    %c0_56 = arith.constant 0 : index
    %83 = vector.load %arg9[%c0_54, %c3, %c0_55, %c0_56] : memref<1x9x128x128xbf16, #tpu.memory_space<vmem>>, vector<1x1x128x128xbf16>
    %84 = vector.shape_cast %83 : vector<1x1x128x128xbf16> to vector<128x128xbf16>
    %cst_57 = arith.constant dense<0.000000e+00> : vector<64x128xf32>
    %85 = tpu.matmul %82, %84, %cst_57 {dimension_numbers = #tpu.dot_dimension_numbers<[1], [0], [0], [1], [0, 0, 1, 1], [], []>} : vector<64x128xbf16>, vector<128x128xbf16>, vector<64x128xf32> -> vector<64x128xf32>
    %86 = arith.addf %81, %85 : vector<64x128xf32>
    %c16_58 = arith.constant 16 : index
    %c0_59 = arith.constant 0 : index
    %87 = vector.load %arg13[%c16_58, %c0_59] : memref<96x128xbf16, #tpu.memory_space<vmem>>, vector<64x128xbf16>
    %c0_60 = arith.constant 0 : index
    %c4 = arith.constant 4 : index
    %c0_61 = arith.constant 0 : index
    %c0_62 = arith.constant 0 : index
    %88 = vector.load %arg9[%c0_60, %c4, %c0_61, %c0_62] : memref<1x9x128x128xbf16, #tpu.memory_space<vmem>>, vector<1x1x128x128xbf16>
    %89 = vector.shape_cast %88 : vector<1x1x128x128xbf16> to vector<128x128xbf16>
    %cst_63 = arith.constant dense<0.000000e+00> : vector<64x128xf32>
    %90 = tpu.matmul %87, %89, %cst_63 {dimension_numbers = #tpu.dot_dimension_numbers<[1], [0], [0], [1], [0, 0, 1, 1], [], []>} : vector<64x128xbf16>, vector<128x128xbf16>, vector<64x128xf32> -> vector<64x128xf32>
    %91 = arith.addf %86, %90 : vector<64x128xf32>
    %c17 = arith.constant 17 : index
    %c0_64 = arith.constant 0 : index
    %92 = vector.load %arg13[%c17, %c0_64] : memref<96x128xbf16, #tpu.memory_space<vmem>>, vector<64x128xbf16>
    %c0_65 = arith.constant 0 : index
    %c5_66 = arith.constant 5 : index
    %c0_67 = arith.constant 0 : index
    %c0_68 = arith.constant 0 : index
    %93 = vector.load %arg9[%c0_65, %c5_66, %c0_67, %c0_68] : memref<1x9x128x128xbf16, #tpu.memory_space<vmem>>, vector<1x1x128x128xbf16>
    %94 = vector.shape_cast %93 : vector<1x1x128x128xbf16> to vector<128x128xbf16>
    %cst_69 = arith.constant dense<0.000000e+00> : vector<64x128xf32>
    %95 = tpu.matmul %92, %94, %cst_69 {dimension_numbers = #tpu.dot_dimension_numbers<[1], [0], [0], [1], [0, 0, 1, 1], [], []>} : vector<64x128xbf16>, vector<128x128xbf16>, vector<64x128xf32> -> vector<64x128xf32>
    %96 = arith.addf %91, %95 : vector<64x128xf32>
    %c25 = arith.constant 25 : index
    %c0_70 = arith.constant 0 : index
    %97 = vector.load %arg13[%c25, %c0_70] : memref<96x128xbf16, #tpu.memory_space<vmem>>, vector<64x128xbf16>
    %c0_71 = arith.constant 0 : index
    %c6_72 = arith.constant 6 : index
    %c0_73 = arith.constant 0 : index
    %c0_74 = arith.constant 0 : index
    %98 = vector.load %arg9[%c0_71, %c6_72, %c0_73, %c0_74] : memref<1x9x128x128xbf16, #tpu.memory_space<vmem>>, vector<1x1x128x128xbf16>
    %99 = vector.shape_cast %98 : vector<1x1x128x128xbf16> to vector<128x128xbf16>
    %cst_75 = arith.constant dense<0.000000e+00> : vector<64x128xf32>
    %100 = tpu.matmul %97, %99, %cst_75 {dimension_numbers = #tpu.dot_dimension_numbers<[1], [0], [0], [1], [0, 0, 1, 1], [], []>} : vector<64x128xbf16>, vector<128x128xbf16>, vector<64x128xf32> -> vector<64x128xf32>
    %101 = arith.addf %96, %100 : vector<64x128xf32>
    %c26 = arith.constant 26 : index
    %c0_76 = arith.constant 0 : index
    %102 = vector.load %arg13[%c26, %c0_76] : memref<96x128xbf16, #tpu.memory_space<vmem>>, vector<64x128xbf16>
    %c0_77 = arith.constant 0 : index
    %c7_78 = arith.constant 7 : index
    %c0_79 = arith.constant 0 : index
    %c0_80 = arith.constant 0 : index
    %103 = vector.load %arg9[%c0_77, %c7_78, %c0_79, %c0_80] : memref<1x9x128x128xbf16, #tpu.memory_space<vmem>>, vector<1x1x128x128xbf16>
    %104 = vector.shape_cast %103 : vector<1x1x128x128xbf16> to vector<128x128xbf16>
    %cst_81 = arith.constant dense<0.000000e+00> : vector<64x128xf32>
    %105 = tpu.matmul %102, %104, %cst_81 {dimension_numbers = #tpu.dot_dimension_numbers<[1], [0], [0], [1], [0, 0, 1, 1], [], []>} : vector<64x128xbf16>, vector<128x128xbf16>, vector<64x128xf32> -> vector<64x128xf32>
    %106 = arith.addf %101, %105 : vector<64x128xf32>
    %c27 = arith.constant 27 : index
    %c0_82 = arith.constant 0 : index
    %107 = vector.load %arg13[%c27, %c0_82] : memref<96x128xbf16, #tpu.memory_space<vmem>>, vector<64x128xbf16>
    %c0_83 = arith.constant 0 : index
    %c8 = arith.constant 8 : index
    %c0_84 = arith.constant 0 : index
    %c0_85 = arith.constant 0 : index
    %108 = vector.load %arg9[%c0_83, %c8, %c0_84, %c0_85] : memref<1x9x128x128xbf16, #tpu.memory_space<vmem>>, vector<1x1x128x128xbf16>
    %109 = vector.shape_cast %108 : vector<1x1x128x128xbf16> to vector<128x128xbf16>
    %cst_86 = arith.constant dense<0.000000e+00> : vector<64x128xf32>
    %110 = tpu.matmul %107, %109, %cst_86 {dimension_numbers = #tpu.dot_dimension_numbers<[1], [0], [0], [1], [0, 0, 1, 1], [], []>} : vector<64x128xbf16>, vector<128x128xbf16>, vector<64x128xf32> -> vector<64x128xf32>
    %111 = arith.addf %106, %110 : vector<64x128xf32>
    %112 = vector.broadcast %62 : vector<1x128xf32> to vector<64x128xf32>
    %113 = arith.addf %111, %112 : vector<64x128xf32>
    %114 = arith.truncf %113 : vector<64x128xf32> to vector<64x128xbf16>
    %c0_87 = arith.constant 0 : index
    %c0_88 = arith.constant 0 : index
    %115 = vector.load %arg11[%c0_87, %c0_88] : memref<64x128xbf16, #tpu.memory_space<vmem>>, vector<64x128xbf16>
    tpu.vector_store %arg11[%c0_87, %c0_88], %114 {strides = array<i32>} : memref<64x128xbf16, #tpu.memory_space<vmem>>, vector<64x128xbf16>,
    %cst_89 = arith.constant 0.000000e+00 : f32
    %116 = vector.shape_cast %67 : vector<64x1xi1> to vector<64x1xi1>
    %117 = vector.broadcast %116 : vector<64x1xi1> to vector<64x128xi1>
    %118 = vector.broadcast %cst_89 : f32 to vector<64x128xf32>
    %119 = arith.select %117, %113, %118 : vector<64x128xi1>, vector<64x128xf32>
    %cst_90 = arith.constant dense<0.000000e+00> : vector<128xf32>
    %120 = vector.multi_reduction <add>, %119, %cst_90 [0] : vector<64x128xf32> to vector<128xf32>
    %121 = vector.shape_cast %120 : vector<128xf32> to vector<1x128xf32>
    %122 = arith.addf %63, %121 : vector<1x128xf32>
    %123 = arith.mulf %119, %119 : vector<64x128xf32>
    %cst_91 = arith.constant dense<0.000000e+00> : vector<128xf32>
    %124 = vector.multi_reduction <add>, %123, %cst_91 [0] : vector<64x128xf32> to vector<128xf32>
    %125 = vector.shape_cast %124 : vector<128xf32> to vector<1x128xf32>
    %126 = arith.addf %64, %125 : vector<1x128xf32>
    %cst_92 = arith.constant 0.000000e+00 : f32
    %127 = vector.broadcast %cst_92 : f32 to vector<6x128xf32>
    %128 = tpu.concatenate %122, %126, %127 in 0 : vector<1x128xf32>, vector<1x128xf32>, vector<6x128xf32> -> vector<8x128xf32>
    %c0_93 = arith.constant 0 : index
    %c0_94 = arith.constant 0 : index
    %129 = vector.load %arg12[%c0_93, %c0_94] : memref<8x128xf32, #tpu.memory_space<vmem>>, vector<8x128xf32>
    tpu.vector_store %arg12[%c0_93, %c0_94], %128 {strides = array<i32>} : memref<8x128xf32, #tpu.memory_space<vmem>>, vector<8x128xf32>,
    return
  }
  func.func @transform_0(%arg0: i32) -> (i32, i32) {
    %c4_i32 = arith.constant 4 : i32
    %0 = arith.muli %arg0, %c4_i32 : i32
    %c1_i32 = arith.constant 1 : i32
    %1 = arith.subi %0, %c1_i32 : i32
    %c0_i32 = arith.constant 0 : i32
    %2 = arith.maxsi %1, %c0_i32 : i32
    %c0_i32_0 = arith.constant 0 : i32
    %c0_i32_1 = arith.constant 0 : i32
    return %2, %c0_i32_0 : i32, i32
  }
  func.func @transform_1(%arg0: i32) -> (i32, i32) {
    %c0_i32 = arith.constant 0 : i32
    %c0_i32_0 = arith.constant 0 : i32
    return %arg0, %c0_i32 : i32, i32
  }
  func.func @transform_2(%arg0: i32) -> (i32, i32) {
    %c1_i32 = arith.constant 1 : i32
    %0 = arith.addi %arg0, %c1_i32 : i32
    %c4_i32 = arith.constant 4 : i32
    %1 = arith.muli %0, %c4_i32 : i32
    %c15_i32 = arith.constant 15 : i32
    %2 = arith.minsi %1, %c15_i32 : i32
    %c0_i32 = arith.constant 0 : i32
    %c0_i32_0 = arith.constant 0 : i32
    return %2, %c0_i32 : i32, i32
  }
  func.func @transform_3(%arg0: i32) -> (i32, i32) {
    %c4_i32 = arith.constant 4 : i32
    %0 = arith.muli %arg0, %c4_i32 : i32
    %c1_i32 = arith.constant 1 : i32
    %1 = arith.subi %0, %c1_i32 : i32
    %c0_i32 = arith.constant 0 : i32
    %2 = arith.maxsi %1, %c0_i32 : i32
    %c0_i32_0 = arith.constant 0 : i32
    %c0_i32_1 = arith.constant 0 : i32
    return %2, %c0_i32_0 : i32, i32
  }
  func.func @transform_4(%arg0: i32) -> (i32, i32) {
    %c0_i32 = arith.constant 0 : i32
    %c0_i32_0 = arith.constant 0 : i32
    return %arg0, %c0_i32 : i32, i32
  }
  func.func @transform_5(%arg0: i32) -> (i32, i32) {
    %c1_i32 = arith.constant 1 : i32
    %0 = arith.addi %arg0, %c1_i32 : i32
    %c4_i32 = arith.constant 4 : i32
    %1 = arith.muli %0, %c4_i32 : i32
    %c15_i32 = arith.constant 15 : i32
    %2 = arith.minsi %1, %c15_i32 : i32
    %c0_i32 = arith.constant 0 : i32
    %c0_i32_0 = arith.constant 0 : i32
    return %2, %c0_i32 : i32, i32
  }
  func.func @transform_6(%arg0: i32) -> (i32, i32) {
    %c0_i32 = arith.constant 0 : i32
    %c0_i32_0 = arith.constant 0 : i32
    %c0_i32_1 = arith.constant 0 : i32
    return %c0_i32, %c0_i32_0 : i32, i32
  }
  func.func @transform_7(%arg0: i32) -> (i32, i32) {
    %c0_i32 = arith.constant 0 : i32
    %c0_i32_0 = arith.constant 0 : i32
    %c0_i32_1 = arith.constant 0 : i32
    return %c0_i32, %c0_i32_0 : i32, i32
  }
  func.func @transform_8(%arg0: i32) -> (i32, i32, i32, i32) {
    %c0_i32 = arith.constant 0 : i32
    %c0_i32_0 = arith.constant 0 : i32
    %c0_i32_1 = arith.constant 0 : i32
    %c0_i32_2 = arith.constant 0 : i32
    %c0_i32_3 = arith.constant 0 : i32
    return %c0_i32, %c0_i32_0, %c0_i32_1, %c0_i32_2 : i32, i32, i32, i32
  }
  func.func @transform_9(%arg0: i32) -> (i32, i32) {
    %c0_i32 = arith.constant 0 : i32
    %c0_i32_0 = arith.constant 0 : i32
    %c0_i32_1 = arith.constant 0 : i32
    return %c0_i32, %c0_i32_0 : i32, i32
  }
  func.func @transform_10(%arg0: i32) -> (i32, i32) {
    %c0_i32 = arith.constant 0 : i32
    %c0_i32_0 = arith.constant 0 : i32
    return %arg0, %c0_i32 : i32, i32
  }
  func.func @transform_11(%arg0: i32) -> (i32, i32) {
    %c0_i32 = arith.constant 0 : i32
    %c0_i32_0 = arith.constant 0 : i32
    return %arg0, %c0_i32 : i32, i32
  }
}

module attributes {stable_mosaic.version = 11 : i64} {
  func.func @bn_res_kernel(%arg0: i32, %arg1: memref<128x128xbf16, #tpu.memory_space<vmem>>, %arg2: memref<128x128xf32, #tpu.memory_space<vmem>>, %arg3: memref<1x128xf32, #tpu.memory_space<vmem>>, %arg4: memref<1x128xf32, #tpu.memory_space<vmem>>, %arg5: memref<128x128xf32, #tpu.memory_space<vmem>>) attributes {dimension_semantics = [#tpu.dimension_semantics<parallel>], iteration_bounds = array<i64: 2>, scalar_prefetch = 0 : i64, scratch_operands = 0 : i64, tpu.core_type = #tpu.core_type<tc>, window_params = [{transform_indices = @transform_0, window_bounds = array<i64: 128, 128>}, {transform_indices = @transform_1, window_bounds = array<i64: 128, 128>}, {pipeline_mode = #tpu.pipeline_mode<synchronous>, transform_indices = @transform_2, window_bounds = array<i64: 1, 128>}, {pipeline_mode = #tpu.pipeline_mode<synchronous>, transform_indices = @transform_3, window_bounds = array<i64: 1, 128>}, {transform_indices = @transform_4, window_bounds = array<i64: 128, 128>}]} {
    %c0 = arith.constant 0 : index
    %c0_0 = arith.constant 0 : index
    %0 = vector.load %arg1[%c0, %c0_0] : memref<128x128xbf16, #tpu.memory_space<vmem>>, vector<128x128xbf16>
    %1 = arith.extf %0 : vector<128x128xbf16> to vector<128x128xf32>
    %c0_1 = arith.constant 0 : index
    %c0_2 = arith.constant 0 : index
    %2 = vector.load %arg3[%c0_1, %c0_2] : memref<1x128xf32, #tpu.memory_space<vmem>>, vector<1x128xf32>
    %3 = vector.broadcast %2 : vector<1x128xf32> to vector<128x128xf32>
    %4 = arith.mulf %1, %3 : vector<128x128xf32>
    %c0_3 = arith.constant 0 : index
    %c0_4 = arith.constant 0 : index
    %5 = vector.load %arg4[%c0_3, %c0_4] : memref<1x128xf32, #tpu.memory_space<vmem>>, vector<1x128xf32>
    %6 = vector.broadcast %5 : vector<1x128xf32> to vector<128x128xf32>
    %7 = arith.addf %4, %6 : vector<128x128xf32>
    %c0_5 = arith.constant 0 : index
    %c0_6 = arith.constant 0 : index
    %8 = vector.load %arg2[%c0_5, %c0_6] : memref<128x128xf32, #tpu.memory_space<vmem>>, vector<128x128xf32>
    %9 = arith.addf %7, %8 : vector<128x128xf32>
    %c0_7 = arith.constant 0 : index
    %c0_8 = arith.constant 0 : index
    %10 = vector.load %arg5[%c0_7, %c0_8] : memref<128x128xf32, #tpu.memory_space<vmem>>, vector<128x128xf32>
    tpu.vector_store %arg5[%c0_7, %c0_8], %9 {strides = array<i32>} : memref<128x128xf32, #tpu.memory_space<vmem>>, vector<128x128xf32>,
    return
  }
  func.func @transform_0(%arg0: i32) -> (i32, i32) {
    %c0_i32 = arith.constant 0 : i32
    %c0_i32_0 = arith.constant 0 : i32
    return %arg0, %c0_i32 : i32, i32
  }
  func.func @transform_1(%arg0: i32) -> (i32, i32) {
    %c0_i32 = arith.constant 0 : i32
    %c0_i32_0 = arith.constant 0 : i32
    return %arg0, %c0_i32 : i32, i32
  }
  func.func @transform_2(%arg0: i32) -> (i32, i32) {
    %c0_i32 = arith.constant 0 : i32
    %c0_i32_0 = arith.constant 0 : i32
    %c0_i32_1 = arith.constant 0 : i32
    return %c0_i32, %c0_i32_0 : i32, i32
  }
  func.func @transform_3(%arg0: i32) -> (i32, i32) {
    %c0_i32 = arith.constant 0 : i32
    %c0_i32_0 = arith.constant 0 : i32
    %c0_i32_1 = arith.constant 0 : i32
    return %c0_i32, %c0_i32_0 : i32, i32
  }
  func.func @transform_4(%arg0: i32) -> (i32, i32) {
    %c0_i32 = arith.constant 0 : i32
    %c0_i32_0 = arith.constant 0 : i32
    return %arg0, %c0_i32 : i32, i32
  }
}

</mosaic_0001>

<bundles_post_ra>
// kernel: tile.29
= control target key start
LH: loop header
LB: loop body
LE: loop exit
PB: predicated region body
PF: predicated region fallthrough
CT: control target
= control target key end

     0   :  { %s28_s0 = inlined_call_operand.vmem [shape: f32[4], index: 0, kind: input, shape index: {}]   ;;  %s29_s1 = inlined_call_operand.vmem [shape: f32[10,4], index: 1, kind: output, shape index: {}]  }
   0x1   :  { %v4_v0 = vld [vmem:[%s28_s0] ss:$0 sm:$0xff] }
   0x2   :  { %5 = vst [vmem:[%s29_s1] sm:$0xff] %v4_v0  ;;  %8 = vst [vmem:[%s29_s1 + $0x8] sm:$0xff] %v4_v0 }

// kernel: tile.30
= control target key start
LH: loop header
LB: loop body
LE: loop exit
PB: predicated region body
PF: predicated region fallthrough
CT: control target
= control target key end

     0   :  { %s83_s10 = smov 36   ;;  %s84_s11 = smov 28   ;;  %vm3_vm0 = vcmask 31744   ;;  %vm9_vm1 = vcmask 326944   ;;  %vm15_vm2 = vcmask 294144   ;;  %vm21_vm3 = vcmask 261344   ;;  %s135_s0 = inlined_call_operand.vmem [shape: f32[10,4], index: 0, kind: input, shape index: {}]   ;;  %s136_s1 = inlined_call_operand.vmem [shape: f32[40], index: 1, kind: output, shape index: {}]  }
   0x1   :  { %v65_v0 = vld [vmem:[%s135_s0 + $0x9] sm:$0x1]   ;;  %v67_v1 = vld [vmem:[%s135_s0 + $0x7] sm:$0x1]   ;;  %v66_v2 = vld [vmem:[%s135_s0 + $0x8] sm:$0x1]  }
   0x2   :  { %7 = vrot.lane.b32.xlu0 %v65_v0, %s83_s10  ;;  %19 = vrot.lane.b32.xlu1 %v67_v1, %s84_s11  ;;  %v68_v3 = vld [vmem:[%s135_s0 + $0x6] sm:$0x1]   ;;  %v2_v4 = vld [vmem:[%s135_s0] sm:$0x1]   ;;  %s85_s18 = smov 32   ;;  %s86_s19 = smov 24  }
   0x3   :  { %v69_v5 = vld [vmem:[%s135_s0 + $0x5] sm:$0x1]   ;;  %v70_v6 = vld [vmem:[%s135_s0 + $0x4] sm:$0x1]   ;;  %4 = vst.msk [vmem:[#allocation0] sm:$0x1] %vm3_vm0, %v2_v4  }
   0x4   :  { %s87_s24 = smov 20   ;;  %s88_s25 = smov 16   ;;  %v71_v7 = vld [vmem:[%s135_s0 + $0x3] sm:$0x1]   ;;  %v72_v8 = vld [vmem:[%s135_s0 + $0x2] sm:$0x1]  }
   0x5   :  { %s89_s30 = smov 12   ;;  %s90_s2 = smov 8   ;;  %v73_v9 = vld [vmem:[%s135_s0 + $0x1] sm:$0x1]   ;;  %vm27_vm4 = vcmask 228544   ;;  %vm33_vm5 = vcmask 195744  }
   0x6   :  { %13 = vrot.lane.b32.xlu0 %v66_v2, %s85_s18  ;;  %25 = vrot.lane.b32.xlu1 %v68_v3, %s86_s19  ;;  %s91_s0 = smov 4   ;;  %vm39_vm6 = vcmask 162944   ;;  %vm45_vm7 = vcmask 130144   ;;  %vm51_vm8 = vcmask 97344   ;;  %vm57_vm9 = vcmask 64544  }
   0xa   :  { %31 = vrot.lane.b32.xlu0 %v69_v5, %s87_s24  ;;  %37 = vrot.lane.b32.xlu1 %v70_v6, %s88_s25 }
   0xe   :  { %43 = vrot.lane.b32.xlu0 %v71_v7, %s89_s30  ;;  %49 = vrot.lane.b32.xlu1 %v72_v8, %s90_s2 }
  0x12   :  { %55 = vrot.lane.b32.xlu0 %v73_v9, %s91_s0 }
  0x74   :  { %v8_v10 = vpop.permute.xlu0 %7   ;;  %v20_v11 = vpop.permute.xlu1 %19  }
  0x75   :  { %10 = vst.msk [vmem:[#allocation0] sm:$0x1] %vm9_vm1, %v8_v10  }
  0x78   :  { %v14_v12 = vpop.permute.xlu0 %13   ;;  %v26_v13 = vpop.permute.xlu1 %25  }
  0x79   :  { %16 = vst.msk [vmem:[#allocation0] sm:$0x1] %vm15_vm2, %v14_v12  }
  0x7a   :  { %22 = vst.msk [vmem:[#allocation0] sm:$0x1] %vm21_vm3, %v20_v11  }
  0x7b   :  { %28 = vst.msk [vmem:[#allocation0] sm:$0x1] %vm27_vm4, %v26_v13  }
  0x7c   :  { %v32_v14 = vpop.permute.xlu0 %31   ;;  %v38_v15 = vpop.permute.xlu1 %37  }
  0x7d   :  { %34 = vst.msk [vmem:[#allocation0] sm:$0x1] %vm33_vm5, %v32_v14  }
  0x7e   :  { %40 = vst.msk [vmem:[#allocation0] sm:$0x1] %vm39_vm6, %v38_v15  }
  0x80   :  { %v44_v16 = vpop.permute.xlu0 %43   ;;  %v50_v17 = vpop.permute.xlu1 %49  }
  0x81   :  { %46 = vst.msk [vmem:[#allocation0] sm:$0x1] %vm45_vm7, %v44_v16  }
  0x82   :  { %52 = vst.msk [vmem:[#allocation0] sm:$0x1] %vm51_vm8, %v50_v17  }
  0x84   :  { %v56_v18 = vpop.permute.xlu0 %55  }
  0x85   :  { %58 = vst.msk [vmem:[#allocation0] sm:$0x1] %vm57_vm9, %v56_v18  }
  0x8c   :  { %v62_v19 = vld [vmem:[#allocation0] sm:$0x1] }
  0x8d   :  { %64 = vst [vmem:[%s136_s1] sm:$0x1] %v62_v19 }

// kernel: residual_block.3
= control target key start
LH: loop header
LB: loop body
LE: loop exit
PB: predicated region body
PF: predicated region fallthrough
CT: control target
= control target key end

     0   :  { %s4394_s0 = inlined_call_operand.hbm [shape: bf16[256,128], index: 0, kind: input, shape index: {}, may-alias: {0,1,2}]   ;;  %s4395_s1 = inlined_call_operand.hbm [shape: bf16[256,128], index: 1, kind: input, shape index: {}, may-alias: {0,1,2}]   ;;  %s4396_s2 = inlined_call_operand.hbm [shape: bf16[256,128], index: 2, kind: input, shape index: {}, may-alias: {0,1,2}]   ;;  %s4397_s3 = inlined_call_operand.hbm [shape: f32[256,1], index: 3, kind: input, shape index: {}]   ;;  %s4398_s4 = inlined_call_operand.hbm [shape: bf16[1,9,128,128], index: 4, kind: input, shape index: {}]   ;;  %s4399_s5 = inlined_call_operand.hbm [shape: f32[1,128], index: 5, kind: input, shape index: {}]   ;;  %s4400_s6 = inlined_call_operand.hbm [shape: bf16[256,128], index: 6, kind: output, shape index: {0}]   ;;  %s4401_s7 = inlined_call_operand.hbm [shape: f32[32,128], index: 7, kind: output, shape index: {1}]  }
   0x1   :  { %4431 = sst [smem:[#allocation34_spill]] %s4395_s1 }
   0x2   :  { %4432 = sst [smem:[#allocation35_spill]] %s4398_s4 }
   0x3   :  { %4433 = sst [smem:[#allocation36_spill]] %s4399_s5 }
   0x4   :  { %4434 = sst [smem:[#allocation37_spill]] %s4400_s6 }
   0x5   :  { %4435 = sst [smem:[#allocation38_spill]] %s4401_s7 }
   0x6   :  { %13 = vsyncpa [#allocation4], 0 }
   0x7   :  { %15 = vsyncpa [#allocation4 + $0x1], 0 }
   0x8   :  { %16 = vsyncpa [#allocation7], 0 }
   0x9   :  { %18 = vsyncpa [#allocation7 + $0x1], 0 }
   0xa   :  { %19 = vsyncpa [#allocation10], 0 }
   0xb   :  { %21 = vsyncpa [#allocation10 + $0x1], 0 }
   0xc   :  { %22 = vsyncpa [#allocation13], 0 }
   0xd   :  { %23 = vsyncpa [#allocation5], 0 }
   0xe   :  { %25 = vsyncpa [#allocation5 + $0x1], 0 }
   0xf   :  { %26 = vsyncpa [#allocation16], 0 }
  0x10   :  { %28 = vsyncpa [#allocation16 + $0x1], 0  ;;  %s3625_s24 = smov 0   ;;  %s3627_s25 = smov 0  }
  0x11   :  { %s3629_s26 = smov 0   ;;  %s3631_s27 = smov 0  }
  0x12   :  { %s3633_s28 = smov 0   ;;  %s3635_s29 = smov 0  }
  0x13   :  { %s3637_s30 = smov 0   ;;  %s3639_s8 = smov 0  }
  0x14   :  { %s3641_s9 = smov 0   ;;  %s3643_s10 = smov 0  }
  0x15 LB: > { %4436 = sst [smem:[#allocation25_spill]] %s3544_s27  ;;  %s3570_s11 = smov [#allocation11]   ;;  %s3568_s10 = sphi %s3643_s10, %s4496_s10   ;;  %s3564_s9 = sphi %s3641_s9, %s4507_s9   ;;  %s3560_s8 = sphi %s3639_s8, %s4506_s8   ;;  %s3556_s30 = sphi %s3637_s30, %s4505_s30   ;;  %s3552_s29 = sphi %s3635_s29, %s4499_s29   ;;  %s3548_s28 = sphi %s3633_s28, %s4504_s28   ;;  %s3544_s27 = sphi %s3631_s27, %s4497_s27   ;;  %s3540_s26 = sphi %s3629_s26, %s4503_s26   ;;  %s3536_s25 = sphi %s3627_s25, %s4502_s25   ;;  %s3532_s24 = sphi %s3625_s24, %s4501_s24  }
  0x16   : > { %4437 = sst [smem:[#allocation26_spill]] %s3548_s28  ;;  %s265_s12 = sshll.u32 %s3570_s11, 4  ;;  %s266_s12 = int_to_ptr.vmem [resolvable:$true] %s265_s12 }
  0x17   : > { %4438 = sst [smem:[#allocation27_spill]] %s3552_s29  ;;  %s3676_s13 = sadd.s32 4294967295, %s3568_s10  }
  0x18   : > { %p2432_p0 = scmp.ge.s32.totalorder %s3568_s10, 1  ;;  %p4402_p1 = scmp.eq.s32.totalorder %s3676_s13, 0 }
  0x19   : > { %p253_p3 = scmp.lt.s32.totalorder %s3568_s10, 5  ;;  %s3696_s17 = sadd.s32 1, %s3568_s10  }
  0x1a   : > { %4442 = sst [smem:[#allocation29_spill]] %s3696_s17  ;;  %s4443_s4 = sld [smem:[#allocation35_spill]] }
  0x1b   : > { %p3682_p4 = pnand %p2432_p0, %p253_p3 }
  0x1d   : > { %s4439_s14 = scalar_select %p3682_p4, 1, 0 }
  0x1e   : > { %p3024_p5 = pneg %p3682_p4 }
  0x1f   : > { %4440 = sst [smem:[#allocation28_spill]] %s4439_s14 }
  0x20   : > { %p3690_p6 = pnand %p3024_p5, %p4402_p1  ;;  %s3226_s20 = scalar_lea.hbm %s4443_s4, 9216 }
  0x21   : > { %p3227_p7 = scmp.ne.s32.totalorder %s4443_s4, %s3226_s20  ;;  %p3233_p11 = scmp.lt.u32.totalorder %s3226_s20, %s4443_s4 }
  0x22   : > { %p4418_p8 = pneg %p3690_p6 }
  0x24   : > { %p3229_p9 = pnand %p4418_p8, %p3227_p7 }
  0x26   : > { %p3230_p10 = pneg %p3229_p9 }
  0x28   : > { %p3235_p12 = pnand %p3233_p11, %p3230_p10 }
  0x2a   : > { %3238 = shalt.err (!%p3235_p12)
}
  0x2b   : > { %s3239_s16 = scalar_lea.vmem %s266_s12, 9216  ;;  %p3247_p5 = scmp.lt.s32.totalorder %s266_s12, %s266_s12 }
  0x2c   : > { %p3240_p13 = scmp.ne.s32.totalorder %s266_s12, %s3239_s16  ;;  %p3248_p2 = scmp.lt.s32.totalorder %s3239_s16, %s3239_s16 }
  0x2e   : > { %p3242_p0 = pnand %p3240_p13, %p4418_p8  ;;  %p3249_p1 = por %p3248_p2, %p3247_p5 }
  0x30   : > { %p3243_p3 = pneg %p3242_p0 }
  0x32   : > { %p3250_p4 = pnand %p3249_p1, %p3243_p3 }
  0x34   : > { %3253 = shalt.err (!%p3250_p4)
}
  0x35   : > { %s4404_s18 = smov 64   ;;  %s4406_s16 = smov 4  }
  0x36   : > { %3027 = dma.hbm_to_vmem [thread:$0]  (!%p3690_p6), %s4443_s4, 9216, %s266_s12, [#allocation10], %s4404_s18, %s4404_s18, %s4406_s16  }
  0x37   : > { %p4417_p1 = scmp.eq.s32.totalorder %s3568_s10, 0  ;;  %s72_s21 = ssub.s32 %s3568_s10, %s3696_s17 }
  0x38   : > { %p73_p2 = scmp.eq.s32.totalorder %s72_s21, 0  ;;  %s75_s22 = sadd.s32 1, %s3552_s29 }
  0x39   : > { %p82_p4 = scmp.ne.s32.totalorder %s3552_s29, %s3548_s28  ;;  %p88_p7 = scmp.ne.s32.totalorder %s3548_s28, %s3544_s27 }
  0x3a   : > { %s3732_s23 = scalar_select %p73_p2, %s3552_s29, %s75_s22  }
  0x3b   : > { %p84_p9 = por %p82_p4, %p4417_p1  ;;  %p4445_p10 = scmp.eq.s32.totalorder %s3676_s13, 0 }
  0x3c   : > { %4444 = sst [smem:[#allocation30_spill]] %s3732_s23  ;;  %p4448_p12 = scmp.eq.s32.totalorder %s3676_s13, 3 }
  0x3d   : > { %p3738_p11 = por %p88_p7, %p4445_p10  ;;  %s4451_s19 = sadd.s32 4294967294, %s3568_s10  }
  0x3e   : > { %p3744_p13 = por %p4448_p12, %p82_p4  ;;  %p220_p0 = scmp.eq.s32.totalorder %s4451_s19, 3 }
  0x3f   : > { %s4446_s11 = scalar_select %p3738_p11, 1, 0 }
  0x40   : > { %s4449_s12 = scalar_select %p3744_p13, 1, 0 }
  0x41   : > { %4447 = sst [smem:[#allocation31_spill]] %s4446_s11  ;;  %p4416_p3 = scmp.lt.s32.totalorder %s3568_s10, 4 }
  0x42   : > { %4450 = sst [smem:[#allocation32_spill]] %s4449_s12  ;;  %p3752_p5 = por %p220_p0, %p88_p7 }
  0x43   : > { %s4411_s22 = sand.u32 1, %s3552_s29   ;;  %s2561_s18 = sshll.u32 %s3568_s10, 9 }
  0x44   : > { %s4452_s21 = scalar_select %p3752_p5, 1, 0 }
  0x45   : > { %s2441_s16 = sshll.u32 %s4411_s22, 5  ;;  %s4454_s1 = sld [smem:[#allocation34_spill]] }
  0x46   : > { %4453 = sst [smem:[#allocation33_spill]] %s4452_s21  ;;  %p3767_p2 = pnand %p4416_p3, %p84_p9 }
  0x47   : > { %s319_s20 = scalar_lea.vmem [#allocation6], %s2441_s16  ;;  %s4456_s22 = sand.u32 1, %s3568_s10  }
  0x48   : > { %s4455_s19 = scalar_select %p3767_p2, 1, 0 }
  0x49   : > { %s326_s21 = sshll.u32 %s319_s20, 4  ;;  %s3775_s27 = scalar_lea.sflag [#allocation7], %s4456_s22  ;;  %s3771_s21 = int_to_ptr.vmem [resolvable:$true] %s326_s21 }
  0x4a   : > { %p4426_p7 = pneg %p3767_p2 }
  0x4b   : > { %s3763_s17 = scalar_lea.hbm %s4454_s1, %s2561_s18  ;;  %s3259_s7 = scalar_lea.hbm %s4454_s1, 2048 }
  0x4c   : > { %s3254_s4 = scalar_lea.hbm %s3763_s17, 512  ;;  %p3260_p12 = scmp.lt.u32.totalorder %s3763_s17, %s4454_s1 }
  0x4d   : > { %p3255_p4 = scmp.ne.s32.totalorder %s3763_s17, %s3254_s4  ;;  %p3261_p0 = scmp.lt.u32.totalorder %s3259_s7, %s3254_s4 }
  0x4e   : > { %p3263_p1 = scmp.lt.u32.totalorder %s3254_s4, %s3763_s17 }
  0x4f   : > { %p3257_p10 = pnand %p4426_p7, %p3255_p4  ;;  %p3262_p3 = por %p3261_p0, %p3260_p12 }
  0x51   : > { %p3258_p9 = pneg %p3257_p10  ;;  %p3264_p8 = por %p3263_p1, %p3262_p3 }
  0x53   : > { %p3265_p5 = pnand %p3264_p8, %p3258_p9 }
  0x55   : > { %3268 = shalt.err (!%p3265_p5)
}
  0x56   : > { %s3269_s20 = scalar_lea.vmem %s3771_s21, 512  ;;  %s3573_s22 = smov [#allocation6]  }
  0x57   : > { %p3270_p4 = scmp.ne.s32.totalorder %s3771_s21, %s3269_s20  ;;  %s3274_s18 = sshll.u32 %s3573_s22, 4  ;;  %s3275_s18 = int_to_ptr.vmem [resolvable:$false] %s3274_s18 }
  0x58   : > { %s3276_s12 = scalar_lea.vmem %s3275_s18, 1024  ;;  %p3277_p11 = scmp.lt.s32.totalorder %s3771_s21, %s3275_s18 }
  0x59   : > { %p3272_p10 = pnand %p3270_p4, %p4426_p7  ;;  %p3278_p12 = scmp.lt.s32.totalorder %s3276_s12, %s3269_s20 }
  0x5b   : > { %p3273_p13 = pneg %p3272_p10  ;;  %p3279_p0 = por %p3278_p12, %p3277_p11 }
  0x5d   : > { %p3280_p1 = pnand %p3279_p0, %p3273_p13 }
  0x5f   : > { %3283 = shalt.err (!%p3280_p1)
}
  0x60   : > { %s4457_s7 = smov 4   ;;  %s4458_s4 = smov 64  }
  0x61   : > { %3037 = dma.hbm_to_vmem [thread:$0]  (!%p3767_p2), %s3763_s17, 512, %s3771_s21, %s3775_s27, %s4458_s4, %s4458_s4, %s4457_s7  }
  0x62   : > { %s4459_s23 = sand.u32 1, %s3552_s29   ;;  %s3574_s22 = smov [#allocation12]  }
  0x63   : > { %s2448_s16 = sshll.u32 %s4459_s23, 6  ;;  %s279_s1 = sshll.u32 %s3574_s22, 4  ;;  %s280_s1 = int_to_ptr.vmem [resolvable:$true] %s279_s1 }
  0x64   : > { %s365_s18 = scalar_lea.vmem [#allocation9], %s2448_s16  ;;  %s4460_s5 = sld [smem:[#allocation36_spill]] }
  0x65   : > { %s3808_s20 = sshll.u32 %s365_s18, 4  ;;  %p4461_p11 = pneg %p3690_p6  ;;  %s3980_s20 = int_to_ptr.vmem [resolvable:$true] %s3808_s20 }
  0x6a   : > { %s3284_s11 = scalar_lea.hbm %s4460_s5, 16 }
  0x6b   : > { %p3285_p8 = scmp.ne.s32.totalorder %s4460_s5, %s3284_s11  ;;  %p3291_p5 = scmp.lt.u32.totalorder %s3284_s11, %s4460_s5 }
  0x6d   : > { %p3287_p13 = pnand %p3285_p8, %p4461_p11 }
  0x6f   : > { %p3288_p3 = pneg %p3287_p13 }
  0x71   : > { %p3293_p9 = pnand %p3291_p5, %p3288_p3 }
  0x73   : > { %3296 = shalt.err (!%p3293_p9)
}
  0x74   : > { %s3297_s23 = scalar_lea.vmem %s280_s1, 16  ;;  %p4462_p10 = pmov %p4461_p11 }
  0x75   : > { %p3298_p4 = scmp.ne.s32.totalorder %s280_s1, %s3297_s23  ;;  %s3304_s6 = scalar_lea.vmem %s280_s1, 32 }
  0x76   : > { %p3305_p1 = scmp.lt.s32.totalorder %s280_s1, %s280_s1  ;;  %p3306_p7 = scmp.lt.s32.totalorder %s3304_s6, %s3297_s23 }
  0x77   : > { %p3300_p12 = pnand %p3298_p4, %p4462_p10 }
  0x78   : > { %p3307_p2 = por %p3306_p7, %p3305_p1 }
  0x79   : > { %p3301_p0 = pneg %p3300_p12 }
  0x7b   : > { %p3308_p8 = pnand %p3307_p2, %p3301_p0 }
  0x7d   : > { %3311 = shalt.err (!%p3308_p8)
}
  0x7e   : > { %3030 = dma.hbm_to_vmem [thread:$0]  (!%p3690_p6), %s4460_s5, 16, %s280_s1, [#allocation13]  }
  0x7f   : > { %s2426_s11 = sshll.u32 %s3568_s10, 2  ;;  %s49_s16 = sadd.s32 1, %s3564_s9 }
  0x80   : > { %s2427_s22 = sadd.s32 4294967295, %s2426_s11  ;;  %s3832_s18 = sadd.s32 4, %s2426_s11 }
  0x81   : > { %p40_p2 = scmp.gt.s32.totalorder %s2427_s22, 0  ;;  %s2429_s15 = sadd.s32 4294967295, %s3832_s18 }
  0x82   : > { %p44_p7 = scmp.gt.s32.totalorder %s2429_s15, 0  ;;  %p56_p11 = scmp.ne.s32.totalorder %s3564_s9, %s3560_s8 }
  0x83   : > { %s4509_s22 = smov (!%p40_p2, %s2427_s22), 0  ;;  %p4463_p13 = scmp.eq.s32.totalorder %s3568_s10, 0 }
  0x84   : > { %s4511_s15 = smov (!%p44_p7, %s2429_s15), 0  ;;  %p62_p3 = scmp.ne.s32.totalorder %s3560_s8, %s3556_s30 }
  0x85   : > { %p3839_p6 = por %p4463_p13, %p56_p11  ;;  %s46_s12 = ssub.s32 %s4509_s22, %s4511_s15 }
  0x86   : > { %s2559_s17 = sadd.s32 4, %s3832_s18  ;;  %p47_p5 = scmp.eq.s32.totalorder %s46_s12, 0 }
  0x87   : > { %p4465_p9 = scmp.eq.s32.totalorder %s3676_s13, 0  ;;  %p3854_p10 = scmp.lt.s32.totalorder %s2559_s17, 15 }
  0x88   : > { %s290_s6 = sand.u32 1, %s3564_s9   ;;  %s2560_s11 = sshll.u32 %s4509_s22, 7 }
  0x89   : > { %p3848_p4 = por %p4465_p9, %p62_p3  ;;  %s2436_s14 = sshll.u32 %s290_s6, 3 }
  0x8a   : > { %s3860_s28 = scalar_select %p47_p5, %s3564_s9, %s49_s16  }
  0x8b   : > { %s4466_s21 = scalar_select %p3848_p4, 1, 0 }
  0x8c   : > { %s3865_s15 = scalar_lea.hbm %s4394_s0, %s2560_s11  ;;  %s294_s12 = scalar_lea.vmem [#allocation3], %s2436_s14 }
  0x8d   : > { %s305_s29 = sshll.u32 %s294_s12, 4  ;;  %p4468_p12 = scmp.lt.s32.totalorder %s3568_s10, 4  ;;  %s3867_s29 = int_to_ptr.vmem [resolvable:$true] %s305_s29 }
  0x8e   : > { %s3877_s22 = scalar_lea.sflag [#allocation4], %s290_s6  ;;  %s3312_s5 = scalar_lea.hbm %s3865_s15, 128 }
  0x8f   : > { %p3873_p0 = pnand %p4468_p12, %p3839_p6  ;;  %p3313_p1 = scmp.ne.s32.totalorder %s3865_s15, %s3312_s5 }
  0x90   : > { %s3317_s1 = scalar_lea.hbm %s4394_s0, 2048  ;;  %p3318_p11 = scmp.lt.u32.totalorder %s3865_s15, %s4394_s0 }
  0x91   : > { %p3314_p8 = pneg %p3873_p0  ;;  %p3319_p13 = scmp.lt.u32.totalorder %s3317_s1, %s3312_s5 }
  0x92   : > { %p3321_p3 = scmp.lt.u32.totalorder %s3312_s5, %s3865_s15 }
  0x93   : > { %p3315_p2 = pnand %p3314_p8, %p3313_p1  ;;  %p3320_p6 = por %p3319_p13, %p3318_p11 }
  0x95   : > { %p3316_p7 = pneg %p3315_p2  ;;  %p3322_p5 = por %p3321_p3, %p3320_p6 }
  0x97   : > { %p3323_p9 = pnand %p3322_p5, %p3316_p7 }
  0x99   : > { %3326 = shalt.err (!%p3323_p9)
}
  0x9a   : > { %s3327_s6 = scalar_lea.vmem %s3867_s29, 128  ;;  %s3575_s14 = smov [#allocation3]  }
  0x9b   : > { %p3328_p12 = scmp.ne.s32.totalorder %s3867_s29, %s3327_s6  ;;  %s3332_s11 = sshll.u32 %s3575_s14, 4  ;;  %s3333_s11 = int_to_ptr.vmem [resolvable:$false] %s3332_s11 }
  0x9c   : > { %s3334_s30 = scalar_lea.vmem %s3333_s11, 256  ;;  %p3335_p4 = scmp.lt.s32.totalorder %s3867_s29, %s3333_s11 }
  0x9d   : > { %p3330_p1 = pnand %p3328_p12, %p3314_p8  ;;  %p3336_p11 = scmp.lt.s32.totalorder %s3334_s30, %s3327_s6 }
  0x9f   : > { %p3331_p2 = pneg %p3330_p1  ;;  %p3337_p13 = por %p3336_p11, %p3335_p4 }
  0xa1   : > { %p3338_p6 = pnand %p3337_p13, %p3331_p2 }
  0xa3   : > { %3341 = shalt.err (!%p3338_p6)
}
  0xa4   : > { %3034 = dma.hbm_to_vmem [thread:$0]  (!%p3873_p0), %s3865_s15, 128, %s3867_s29, %s3877_s22, %s4458_s4, %s4458_s4, %s4457_s7  }
  0xa5   : > { %p100_p4 = scmp.lt.s32.totalorder %s3832_s18, 15  ;;  %s4513_s17 = smov (!%p3854_p10, %s2559_s17), 15 }
  0xa6   : > { %s109_s16 = sadd.s32 1, %s3540_s26  ;;  %p116_p8 = scmp.ne.s32.totalorder %s3540_s26, %s3536_s25 }
  0xa7   : > { %s4515_s18 = smov (!%p100_p4, %s3832_s18), 15  ;;  %p122_p7 = scmp.ne.s32.totalorder %s3536_s25, %s3532_s24 }
  0xa8   : > { %s106_s5 = ssub.s32 %s4515_s18, %s4513_s17  ;;  %p4470_p5 = scmp.eq.s32.totalorder %s3568_s10, 0 }
  0xa9   : > { %p107_p3 = scmp.eq.s32.totalorder %s106_s5, 0  ;;  %p4471_p12 = scmp.eq.s32.totalorder %s3676_s13, 0 }
  0xaa   : > { %p118_p9 = por %p116_p8, %p4470_p5  ;;  %s338_s29 = sand.u32 1, %s3540_s26  }
  0xab   : > { %p3923_p1 = por %p122_p7, %p4471_p12  ;;  %s2444_s23 = sshll.u32 %s338_s29, 3 }
  0xac   : > { %s3929_s15 = scalar_select %p107_p3, %s3540_s26, %s109_s16  }
  0xad   : > { %s2564_s22 = sshll.u32 %s4515_s18, 7  ;;  %s340_s24 = scalar_lea.vmem [#allocation8], %s2444_s23 }
  0xae   : > { %s3934_s14 = scalar_lea.hbm %s4396_s2, %s2564_s22  ;;  %s351_s17 = sshll.u32 %s340_s24, 4  ;;  %s3942_s17 = int_to_ptr.vmem [resolvable:$true] %s351_s17 }
  0xaf   : > { %p4473_p10 = scmp.lt.s32.totalorder %s3568_s10, 4  ;;  %s2565_s18 = sshll.u32 %s3568_s10, 10 }
  0xb0   : > { %s3948_s5 = scalar_lea.hbm %s4397_s3, %s2565_s18  ;;  %s3342_s29 = scalar_lea.hbm %s3934_s14, 128 }
  0xb1   : > { %p3938_p0 = pnand %p4473_p10, %p118_p9  ;;  %p3343_p2 = scmp.ne.s32.totalorder %s3934_s14, %s3342_s29 }
  0xb2   : > { %s3347_s12 = scalar_lea.hbm %s4396_s2, 2048  ;;  %p3348_p4 = scmp.lt.u32.totalorder %s3934_s14, %s4396_s2 }
  0xb3   : > { %p3344_p11 = pneg %p3938_p0  ;;  %p3349_p8 = scmp.lt.u32.totalorder %s3347_s12, %s3342_s29 }
  0xb4   : > { %p3351_p3 = scmp.lt.u32.totalorder %s3342_s29, %s3934_s14 }
  0xb5   : > { %p3345_p13 = pnand %p3344_p11, %p3343_p2  ;;  %p3350_p7 = por %p3349_p8, %p3348_p4 }
  0xb7   : > { %p3346_p6 = pneg %p3345_p13  ;;  %p3352_p5 = por %p3351_p3, %p3350_p7 }
  0xb9   : > { %p3353_p9 = pnand %p3352_p5, %p3346_p6 }
  0xbb   : > { %3356 = shalt.err (!%p3353_p9)
}
  0xbc   : > { %s3357_s18 = scalar_lea.vmem %s3942_s17, 128  ;;  %s3576_s30 = smov [#allocation8]  }
  0xbd   : > { %p3358_p12 = scmp.ne.s32.totalorder %s3942_s17, %s3357_s18  ;;  %s3362_s16 = sshll.u32 %s3576_s30, 4  ;;  %s3363_s16 = int_to_ptr.vmem [resolvable:$false] %s3362_s16 }
  0xbe   : > { %s3364_s23 = scalar_lea.vmem %s3363_s16, 256  ;;  %p3365_p13 = scmp.lt.s32.totalorder %s3942_s17, %s3363_s16 }
  0xbf   : > { %p3360_p10 = pnand %p3358_p12, %p3344_p11  ;;  %p3366_p4 = scmp.lt.s32.totalorder %s3364_s23, %s3357_s18 }
  0xc1   : > { %p3361_p2 = pneg %p3360_p10  ;;  %p3367_p8 = por %p3366_p4, %p3365_p13 }
  0xc3   : > { %p3368_p7 = pnand %p3367_p8, %p3361_p2 }
  0xc5   : > { %3371 = shalt.err (!%p3368_p7)
}
  0xc6   : > { %3040 = dma.hbm_to_vmem [thread:$0]  (!%p3938_p0), %s3934_s14, 128, %s3942_s17, %s3775_s27, %s4458_s4, %s4458_s4, %s4457_s7  }
  0xc7   : > { %s4475_s29 = sand.u32 1, %s3568_s10   ;;  %s3372_s11 = scalar_lea.hbm %s3948_s5, 1024 }
  0xc8   : > { %s3984_s22 = scalar_lea.sflag [#allocation10], %s4475_s29  ;;  %p3373_p11 = scmp.ne.s32.totalorder %s3948_s5, %s3372_s11 }
  0xc9   : > { %p4476_p6 = scmp.ne.s32.totalorder %s4455_s19, 0  ;;  %s3377_s24 = scalar_lea.hbm %s4397_s3, 4096 }
  0xca   : > { %p3378_p12 = scmp.lt.u32.totalorder %s3948_s5, %s4397_s3  ;;  %p3379_p0 = scmp.lt.u32.totalorder %s3377_s24, %s3372_s11 }
  0xcb   : > { %p4477_p3 = pneg %p4476_p6  ;;  %p3381_p2 = scmp.lt.u32.totalorder %s3372_s11, %s3948_s5 }
  0xcc   : > { %p3380_p10 = por %p3379_p0, %p3378_p12 }
  0xcd   : > { %p3375_p5 = pnand %p3373_p11, %p4477_p3 }
  0xce   : > { %p3382_p13 = por %p3381_p2, %p3380_p10 }
  0xcf   : > { %p3376_p9 = pneg %p3375_p5 }
  0xd1   : > { %p3383_p4 = pnand %p3382_p13, %p3376_p9 }
  0xd3   : > { %3386 = shalt.err (!%p3383_p4)
}
  0xd4   : > { %s3387_s27 = scalar_lea.vmem %s3980_s20, 1024  ;;  %p4478_p7 = pmov %p4477_p3 }
  0xd5   : > { %p3388_p8 = scmp.ne.s32.totalorder %s3980_s20, %s3387_s27  ;;  %s3577_s7 = smov [#allocation9]  }
  0xd6   : > { %s3392_s4 = sshll.u32 %s3577_s7, 4  ;;  %s3393_s4 = int_to_ptr.vmem [resolvable:$false] %s3392_s4 }
  0xd7   : > { %p3390_p11 = pnand %p3388_p8, %p4478_p7  ;;  %s3394_s14 = scalar_lea.vmem %s3393_s4, 2048 }
  0xd8   : > { %p3395_p5 = scmp.lt.s32.totalorder %s3980_s20, %s3393_s4  ;;  %p3396_p12 = scmp.lt.s32.totalorder %s3394_s14, %s3387_s27 }
  0xd9   : > { %p3391_p3 = pneg %p3390_p11 }
  0xda   : > { %p3397_p0 = por %p3396_p12, %p3395_p5 }
  0xdc   : > { %p3398_p10 = pnand %p3397_p0, %p3391_p3 }
  0xde   : > { %3401 = shalt.err (!%p3398_p10)
}
  0xdf   : > { %s3578_s17 = smov 128   ;;  %s3579_s16 = smov 8  }
  0xe0   : > { %3043 = dma.hbm_to_vmem [thread:$0]  (!%p4476_p6), %s3948_s5, 1024, %s3980_s20, %s3984_s22, %s3578_s17, %s3578_s17, %s3579_s16  }
  0xe1   : > { %s4479_s23 = sld [smem:[#allocation28_spill]] }
  0xe7   : > { %p4480_p9 = scmp.ne.s32.totalorder %s4479_s23, 0 }
  0xe8   : > { %s386_s29 = sand.u32 (!%p4480_p9), 1, %s3560_s8   ;;  %p4481_p2 = scmp.ne.s32.totalorder (!%p4480_p9), %s4466_s21, 0 }
  0xe9   : > { %384 = sbr.rel (%p4480_p9) target bundleno = 702 (0x2be), region = 44  ;;  %s4013_s11 = sshll.u32 (!%p4480_p9), %s386_s29, 3 }
  0xea   : > { %s387_s12 = scalar_lea.sflag (!%p4480_p9), [#allocation4], %s386_s29  ;;  %s390_s6 = scalar_lea.vmem (!%p4480_p9), [#allocation3], %s4013_s11 }
  0xf0   : > { %3499 = dma.done.wait (%p4481_p2), %s387_s12, 128  }
  0xf1   : > { %3501 = vsyncadd (%p4481_p2), %s387_s12, 4294967168  ;;  %s4482_s24 = sld [smem:[#allocation26_spill]]  ;;  %s4483_s19 = sld [smem:[#allocation31_spill]] }
  0xf2   : > { %s395_s20 = sand.u32 1, %s3676_s13  }
  0xf3   : > { %s396_s18 = scalar_lea.sflag [#allocation7], %s395_s20 }
  0xf7   : > { %s4022_s5 = sand.u32 1, %s4482_s24   ;;  %p4484_p6 = scmp.ne.s32.totalorder %s4483_s19, 0 }
  0xf8   : > { %s2453_s22 = sshll.u32 %s4022_s5, 5 }
  0xf9   : > { %s4027_s30 = scalar_lea.vmem [#allocation6], %s2453_s22 }
  0xfa   : > { %3503 = dma.done.wait (%p4484_p6), %s396_s18, 512  }
  0xfb   : > { %3505 = vsyncadd (%p4484_p6), %s396_s18, 4294966784  ;;  %s406_s21 = sand.u32 1, %s3536_s25  }
  0xfc   : > { %s4034_s27 = sshll.u32 %s406_s21, 3 }
  0xfd   : > { %s408_s7 = scalar_lea.vmem [#allocation8], %s4034_s27 }
  0xfe   : > { %3507 = dma.done.wait (%p3923_p1), %s396_s18, 128  }
  0xff   : > { %3509 = vsyncadd (%p3923_p1), %s396_s18, 4294967168  ;;  %s2455_s4 = sshll.u32 %s4022_s5, 6  ;;  %s414_s14 = scalar_lea.sflag [#allocation10], %s395_s20 }
 0x100   : > { %s4042_s17 = scalar_lea.vmem [#allocation9], %s2455_s4 }
 0x101   : > { %3511 = dma.done.wait (%p4484_p6), %s414_s14, 1024  }
 0x102   : > { %3513 = vsyncadd (%p4484_p6), %s414_s14, 4294966272  ;;  %p4485_p13 = scmp.eq.s32.totalorder %s3676_s13, 0 }
 0x104   : > { %3515 = dma.done.wait (%p4485_p13), [#allocation10], 9216   ;;  %p4486_p4 = pmov %p4485_p13 }
 0x106   : > { %3517 = vsyncadd (%p4486_p4), [#allocation10], 4294958080  ;;  %p4487_p8 = pmov %p4486_p4 }
 0x107   : > { %p4488_p1 = pmov %p4486_p4 }
 0x108   : > { %3519 = dma.done.wait (%p4487_p8), [#allocation13], 16  }
 0x109   : > { %3521 = vsyncadd (%p4488_p1), [#allocation13], 4294967280  ;;  %v3148_v0 = vld [vmem:[#allocation11 + $0x40] sm:$0xff]   ;;  %v3150_v2 = vld [vmem:[#allocation11 + $0x48] sm:$0xff]   ;;  %vm605_vm0 = vcmask 1044480   ;;  %vm1752_vm3 = vcmask 1042432  }
 0x10a   : > { %v3149_v1 = vld [vmem:[#allocation11 + $0x100] sm:$0xff]   ;;  %2708 = vmatprep.subr.bf16.mxu1 %v3148_v0  ;;  %v3151_v3 = vld [vmem:[#allocation11 + $0x108] sm:$0xff]   ;;  %v3152_v4 = vld [vmem:[#allocation11 + $0x50] sm:$0xff]   ;;  %vm1393_vm1 = vsmask.f32 7424  ;;  %s4279_s1 = scalar_lea.vmem [#allocation14], %s2453_s22 }
 0x10b   : > { %2804 = vmatprep.subr.bf16.mxu0 %v3149_v1  ;;  %2709 = vmatpush3.bf16.msra.mxu1 %v3148_v0  ;;  %v3153_v5 = vld [vmem:[#allocation11 + $0x110] sm:$0xff]   ;;  %v3154_v6 = vld [vmem:[#allocation11 + $0x58] sm:$0xff]   ;;  %v3156_v8 = vld [vmem:[#allocation11 + $0x60] sm:$0xff]   ;;  %vm732_vm2 = vsmask.f32 5376  ;;  %s2222_s16 = sshll.u32 %s4279_s1, 4  ;;  %s4287_s16 = int_to_ptr.vmem [resolvable:$true] %s2222_s16 }
 0x10c   : > { %2805 = vmatpush3.bf16.msra.mxu0 %v3149_v1  ;;  %2710 = vmatprep.subr.bf16.mxu1 %v3150_v2  ;;  %v3155_v7 = vld [vmem:[#allocation11 + $0x118] sm:$0xff]   ;;  %v3157_v9 = vld [vmem:[#allocation11 + $0x120] sm:$0xff]   ;;  %v3158_v10 = vld [vmem:[#allocation11 + $0x68] sm:$0xff]   ;;  %vm912_vm4 = vsmask.f32 4352  ;;  %s2574_s23 = sshll.u32 %s3676_s13, 9 }
 0x10d   : > { %2806 = vmatprep.subr.bf16.mxu0 %v3151_v3  ;;  %v3159_v11 = vld [vmem:[#allocation11 + $0x128] sm:$0xff]   ;;  %v3165_v13 = vld [vmem:[%s4027_s30] sm:$0xff]   ;;  %v4060_v16 = vld [vmem:[%s4027_s30 + $0x8] sm:$0xff]   ;;  %vm1574_vm5 = vsmask.f32 3328  ;;  %s4489_s12 = sld [smem:[#allocation37_spill]] }
 0x10e   : > { %v3164_v12 = vld [vmem:[%s390_s6] sm:$0xff]   ;;  %v3160_v14 = vld [vmem:[#allocation11 + $0x70] sm:$0xff]   ;;  %531 = vst [vmem:[#allocation2 + $0x8] sm:$0xff] %v3165_v13  ;;  %2820 = vmatprep.mubr.bf16.mxu0 %v3165_v13  ;;  %v3162_v17 = vld [vmem:[#allocation11 + $0x78] sm:$0xff]   ;;  %v607_v18 = vrot.slane %v3165_v13, 3  ;;  %v609_v22 = vrot.slane %v4060_v16, 3 }
 0x10f   : > { %2711 = vmatpush3.bf16.msra.mxu1 %v3150_v2  ;;  %498 = vst [vmem:[#allocation2] sm:$0xff] %v3164_v12  ;;  %v3161_v15 = vld [vmem:[#allocation11 + $0x130] sm:$0xff]   ;;  %v3163_v19 = vld [vmem:[#allocation11 + $0x138] sm:$0xff]   ;;  %v3166_v24 = vld [vmem:[#allocation11] sm:$0xff]   ;;  %v4067_v26 = vshll.u32 %v3165_v13, 16  ;;  %v4070_v29 = vshrl.u32 %v3165_v13, 16 }
 0x110   : > { %2807 = vmatpush3.bf16.msra.mxu0 %v3151_v3  ;;  %2712 = vmatprep.subr.bf16.mxu1 %v3152_v4  ;;  %v3167_v25 = vld [vmem:[#allocation11 + $0x140] sm:$0xff]   ;;  %v610_v27 = vsel %vm605_vm0, %v607_v18, %v609_v22  ;;  %v3169_v28 = vld [vmem:[#allocation11 + $0x8] sm:$0xff]   ;;  %v4076_v31 = vshll.u32 %v4060_v16, 16  ;;  %v3171_v36 = vld [vmem:[#allocation11 + $0x10] sm:$0xff]   ;;  %v4098_v57 = vshrl.u32 %v4060_v16, 16  ;;  %s4490_s24 = sld [smem:[#allocation32_spill]] }
 0x111   : > { %2808 = vmatprep.subr.bf16.mxu0 %v3153_v5  ;;  %v4073_v30 = vld [vmem:[%s4027_s30 + $0x10] sm:$0xff]   ;;  %v3170_v32 = vld [vmem:[#allocation11 + $0x148] sm:$0xff]   ;;  %v1399_v34 = vrot.slane %v4067_v26, 1  ;;  %v3172_v38 = vld [vmem:[#allocation11 + $0x150] sm:$0xff]   ;;  %v744_v40 = vrot.slane %v4070_v29, 2  ;;  %v747_v46 = vrot.slane %v4067_v26, 3 }
 0x112   : > { %v611_v33 = vrot.slane %v4073_v30, 3  ;;  %v4082_v35 = vld [vmem:[%s4027_s30 + $0x18] sm:$0xff]   ;;  %v1404_v42 = vrot.slane %v4076_v31, 1  ;;  %v3173_v43 = vld [vmem:[#allocation11 + $0x18] sm:$0xff]   ;;  %v3175_v53 = vld [vmem:[#allocation11 + $0x20] sm:$0xff]   ;;  %v753_v0 = vrot.slane %v4098_v57, 2 }
 0x113   : > { %2713 = vmatpush3.bf16.msra.mxu1 %v3152_v4  ;;  %534 = vst [vmem:[#allocation2 + $0x20] sm:$0xff] %v4082_v35  ;;  %v1400_v41 = vor.u32 %v1399_v34, %v4070_v29  ;;  %v3174_v47 = vld [vmem:[#allocation11 + $0x158] sm:$0xff]   ;;  %v4095_v52 = vor.u32 %v747_v46, %v744_v40  ;;  %v3176_v55 = vld [vmem:[#allocation11 + $0x160] sm:$0xff]   ;;  %v3177_v60 = vld [vmem:[#allocation11 + $0x28] sm:$0xff]   ;;  %v756_v1 = vrot.slane %v4076_v31, 3  ;;  %v4121_v12 = vshrl.u32 %v4082_v35, 16  ;;  %s4294_s6 = scalar_lea.hbm %s4489_s12, %s2574_s23 }
 0x114   : > { %2809 = vmatpush3.bf16.msra.mxu0 %v3153_v5  ;;  %2714 = vmatprep.subr.bf16.mxu1 %v3154_v6  ;;  %v612_v37 = vsel %vm605_vm0, %v609_v22, %v611_v33  ;;  %v3178_v62 = vld [vmem:[#allocation11 + $0x168] sm:$0xff]   ;;  %v3180_v2 = vld [vmem:[#allocation11 + $0x30] sm:$0xff]   ;;  %v4110_v5 = vshrl.u32 %v4073_v30, 16  ;;  %v4124_v13 = vshll.u32 %v4082_v35, 16  ;;  %v1408_v22 = vor.u32 %v1404_v42, %v4098_v57  ;;  %s2204_s19 = scalar_lea.sflag [#allocation5], %s4022_s5  ;;  %s3402_s20 = scalar_lea.vmem %s4287_s16, 512 }
 0x115   : > { %2810 = vmatprep.subr.bf16.mxu0 %v3155_v7  ;;  %v1405_v50 = vsel %vm1393_vm1, %v1400_v41, %v1404_v42  ;;  %v3181_v4 = vld [vmem:[#allocation11 + $0x170] sm:$0xff]   ;;  %vm1086_vm6 = vsmask.f32 256  ;;  %vm1905_vm7 = vsmask.f32 2304  ;;  %p3403_p7 = scmp.ne.s32.totalorder %s4287_s16, %s3402_s20  ;;  %s3581_s22 = smov [#allocation14]  }
 0x116   : > { %v4062_v20 = vld [vmem:[#allocation2] sm:$0xf8]  ;;  %p4491_p11 = scmp.ne.s32.totalorder %s4490_s24, 0  ;;  %s3406_s18 = sshll.u32 %s3581_s22, 4  ;;  %s3407_s18 = int_to_ptr.vmem [resolvable:$false] %s3406_s18 }
 0x117   : > { %2715 = vmatpush3.bf16.msra.mxu1 %v3154_v6  ;;  %v606_v21 = vrot.slane %v4062_v20, 3  ;;  %v561_v39 = vld [vmem:[#allocation2] sm:$0xfc]  ;;  %v914_v61 = vshrl.u32 %v4062_v20, 16  ;;  %v917_v63 = vshll.u32 %v4062_v20, 16  ;;  %s3408_s30 = scalar_lea.vmem %s3407_s18, 1024  ;;  %p3409_p12 = scmp.lt.s32.totalorder %s4287_s16, %s3407_s18 }
 0x118   : > { %2811 = vmatpush3.bf16.msra.mxu0 %v3155_v7  ;;  %2716 = vmatprep.subr.bf16.mxu1 %v3156_v8  ;;  %v734_v44 = vshrl.u32 %v561_v39, 16  ;;  %v737_v45 = vshll.u32 %v561_v39, 16  ;;  %v3199_v6 = vld [vmem:[%s408_s7] sm:$0xff]   ;;  %p3404_p3 = pnand %p3403_p7, %p4491_p11  ;;  %p3410_p0 = scmp.lt.s32.totalorder %s3408_s30, %s3402_s20 }
 0x119   : > { %2812 = vmatprep.subr.bf16.mxu0 %v3157_v9  ;;  %v608_v23 = vsel %vm605_vm0, %v606_v21, %v607_v18  ;;  %v4107_v3 = vrot.slane %v914_v61, 3  ;;  %v4114_v7 = vrot.slane %v917_v63, 4  ;;  %543 = vst [vmem:[#allocation2 + $0x28] sm:$0xff] %v3199_v6  ;;  %v1555_v20 = vld [vmem:[#allocation2 + $0x8] sm:$0xf0]  ;;  %v3185_v21 = vld [vmem:[#allocation11 + $0x80] sm:$0xff]  }
 0x11a   : > { %2724 = vmatprep.mubr.bf16.mxu1 %v608_v23  ;;  %v736_v48 = vrot.slane %v734_v44, 2  ;;  %v739_v49 = vrot.slane %v737_v45, 3  ;;  %v565_v54 = vld [vmem:[#allocation2 + $0x20] sm:$0x7]  ;;  %v3186_v23 = vld [vmem:[#allocation11 + $0x180] sm:$0xff]   ;;  %v1579_v40 = vshll.u32 %v1555_v20, 16  ;;  %p3405_p5 = pneg %p3404_p3  ;;  %p3411_p10 = por %p3410_p0, %p3409_p12 }
 0x11b   : > { %2717 = vmatpush3.bf16.msra.mxu1 %v3156_v8  ;;  %v613_v56 = vrot.slane %v565_v54, 3  ;;  %v4117_v8 = vshll.u32 %v4073_v30, 16  ;;  %v772_v18 = vshll.u32 %v565_v54, 16  ;;  %v1583_v44 = vrot.slane %v4098_v57, 4  ;;  %v3189_v46 = vld [vmem:[#allocation11 + $0x90] sm:$0xff]  }
 0x11c   : > { %2813 = vmatpush3.bf16.msra.mxu0 %v3157_v9  ;;  %2718 = vmatprep.subr.bf16.mxu1 %v3158_v10  ;;  %v740_v51 = vor.u32 %v739_v49, %v736_v48  ;;  %v921_v9 = vrot.slane %v4070_v29, 3  ;;  %v1584_v45 = vrot.slane %v4076_v31, 5  ;;  %v1097_v61 = vrot.slane %v4110_v5, 7  ;;  %p3412_p9 = pnand %p3411_p10, %p3405_p5 }
 0x11d   : > { %2814 = vmatprep.subr.bf16.mxu0 %v3159_v11  ;;  %v614_v58 = vsel %vm605_vm0, %v611_v33, %v613_v56  ;;  %v1576_v33 = vshrl.u32 %v1555_v20, 16  ;;  %v1756_v56 = vrot.slane %v4073_v30, 5  ;;  %v920_v63 = vor.u32 %v4114_v7, %v4107_v3  ;;  %v3191_v3 = vld [vmem:[#allocation11 + $0x98] sm:$0xff]  }
 0x11e   : > { %v749_v59 = vsel %vm732_vm2, %v740_v51, %v4095_v52  ;;  %v1758_v6 = vrot.slane %v4082_v35, 5 }
 0x11f   : > { %2719 = vmatpush3.bf16.msra.mxu1 %v3158_v10  ;;  %v3183_v10 = vld [vmem:[#allocation11 + $0x38] sm:$0xff]   ;;  %v1578_v49 = vrot.slane %v1576_v33, 4  ;;  %v3198_v33 = vld [vmem:[#allocation11 + $0x1b0] sm:$0xff]  }
 0x120   : > { %2815 = vmatpush3.bf16.msra.mxu0 %v3159_v11  ;;  %2720 = vmatprep.subr.bf16.mxu1 %v3160_v14  ;;  %v769_v11 = vshrl.u32 %v565_v54, 16  ;;  %v1375_v39 = vld [vmem:[#allocation2 + $0x28] sm:$0x1] }
 0x121   : > { %2816 = vmatprep.subr.bf16.mxu0 %v3161_v15  ;;  %v1426_v42 = vshll.u32 %v1375_v39, 16  ;;  %v1587_v39 = vrot.slane %v4110_v5, 4 }
 0x123   : > { %2721 = vmatpush3.bf16.msra.mxu1 %v3160_v14  ;;  %v3184_v14 = vld [vmem:[#allocation11 + $0x178] sm:$0xff]  }
 0x124   : > { %2817 = vmatpush3.bf16.msra.mxu0 %v3161_v15  ;;  %2722 = vmatprep.subr.bf16.mxu1 %v3162_v17  ;;  %v762_v15 = vrot.slane %v4110_v5, 2 }
 0x125   : > { %2818 = vmatprep.subr.bf16.mxu0 %v3163_v19 }
 0x127   : > { %2723 = vmatpush3.bf16.msra.mxu1 %v3162_v17  ;;  %v765_v17 = vrot.slane %v4117_v8, 3 }
 0x128   : > { %2819 = vmatpush3.bf16.msra.mxu0 %v3163_v19  ;;  %2732 = vmatprep.subr.bf16.mxu1 %v3166_v24  ;;  %v757_v19 = vor.u32 %v756_v1, %v753_v0 }
 0x129   : > { %2828 = vmatprep.subr.bf16.mxu0 %v3167_v25 }
 0x12a   : > { %2725 = vmatmul.mubr.bf16.vlgmr.msra.gmra.mrb[0].mxu1 %v610_v27  ;;  %v3187_v27 = vld [vmem:[#allocation11 + $0x88] sm:$0xff]   ;;  %v758_v34 = vsel %vm732_vm2, %v4095_v52, %v757_v19  ;;  %v1581_v52 = vrot.slane %v1579_v40, 5 }
 0x12b   : > { %2733 = vmatpush3.bf16.msra.mxu1 %v3166_v24  ;;  %2821 = vmatmul.mubr.bf16.vlgmr.msra.gmra.mrb[0].mxu0 %v4060_v16  ;;  %v1412_v24 = vrot.slane %v4117_v8, 1 }
 0x12c   : > { %2829 = vmatpush3.bf16.msra.mxu0 %v3167_v25  ;;  %2734 = vmatprep.subr.bf16.mxu1 %v3169_v28  ;;  %v771_v25 = vrot.slane %v769_v11, 2  ;;  %v1582_v1 = vor.u32 %v1581_v52, %v1578_v49  ;;  %v4172_v11 = vsel %vm1752_vm3, %v1756_v56, %v1758_v6  ;;  %v894_v49 = vld [vmem:[#allocation2 + $0x20] sm:$0xf]  ;;  %v549_v52 = vld [vmem:[%s4042_s17 + $0x20] sm:$0xff] }
 0x12d   : > { %2830 = vmatprep.subr.bf16.mxu0 %v3170_v32  ;;  %2728 = vmatprep.mubr.bf16.mxu1 %v612_v37  ;;  %v1416_v37 = vor.u32 %v1412_v24, %v4110_v5  ;;  %v1413_v41 = vsel %vm1393_vm1, %v1408_v22, %v1412_v24  ;;  %v3196_v22 = vld [vmem:[#allocation11 + $0x1a8] sm:$0xff]   ;;  %v3197_v24 = vld [vmem:[#allocation11 + $0xb0] sm:$0xff]   ;;  %vm557_vm12 = vcmp.gt.f32.partialorder %v549_v52, 0.5 }
 0x12e   : > { %2824 = vmatprep.mubr.bf16.mxu0 %v4073_v30 }
 0x12f   : > { %2735 = vmatpush3.bf16.msra.mxu1 %v3169_v28  ;;  %v766_v28 = vor.u32 %v765_v17, %v762_v15  ;;  %v3193_v17 = vld [vmem:[#allocation11 + $0xa0] sm:$0xff]  }
 0x130   : > { %2831 = vmatpush3.bf16.msra.mxu0 %v3170_v32  ;;  %2736 = vmatprep.subr.bf16.mxu1 %v3171_v36  ;;  %v774_v32 = vrot.slane %v772_v18, 3  ;;  %v3194_v18 = vld [vmem:[#allocation11 + $0x1a0] sm:$0xff]  }
 0x131   : > { %2832 = vmatprep.subr.bf16.mxu0 %v3172_v38 }
 0x132   : > { %2729 = vmatmul.mubr.bf16.gmra.mrb[4].mxu1 %v614_v58  ;;  %v775_v48 = vor.u32 %v774_v32, %v771_v25  ;;  %v1103_v58 = vrot.slane %v4121_v12, 7  ;;  %v926_v25 = vrot.slane %v4076_v31, 4  ;;  %v1918_v32 = vrot.slane %v4110_v5, 5 }
 0x133   : > { %2737 = vmatpush3.bf16.msra.mxu1 %v3171_v36  ;;  %2825 = vmatmul.mubr.bf16.gmra.mrb[4].mxu0 %v4082_v35  ;;  %v3188_v36 = vld [vmem:[#allocation11 + $0x188] sm:$0xff]  }
 0x134   : > { %2833 = vmatpush3.bf16.msra.mxu0 %v3172_v38  ;;  %2738 = vmatprep.subr.bf16.mxu1 %v3173_v43  ;;  %v1420_v38 = vrot.slane %v4124_v13, 1  ;;  %v3223_v35 = vld [vmem:[#allocation11 + $0x228] sm:$0xff]  }
 0x135   : > { %2834 = vmatprep.subr.bf16.mxu0 %v3174_v47  ;;  %2844 = vmatprep.mubr.bf16.mxu0 %v1405_v50  ;;  %v1754_v50 = vrot.slane %v4060_v16, 5  ;;  %v3215_v16 = vld [vmem:[#allocation11 + $0x1f0] sm:$0xff]  }
 0x136   : > { %2748 = vmatprep.mubr.bf16.mxu1 %v749_v59  ;;  %v1421_v51 = vsel %vm1393_vm1, %v1416_v37, %v1420_v38  ;;  %v1424_v54 = vor.u32 %v1420_v38, %v4121_v12  ;;  %v3190_v59 = vld [vmem:[#allocation11 + $0x190] sm:$0xff]   ;;  %v1923_v37 = vrot.slane %v4124_v13, 6  ;;  %v545_v38 = vld [vmem:[%s4042_s17] sm:$0xff] }
 0x137   : > { %2739 = vmatpush3.bf16.msra.mxu1 %v3173_v43  ;;  %v922_v43 = vrot.slane %v4067_v26, 4  ;;  %v4161_v30 = vsel %vm1752_vm3, %v1754_v50, %v1756_v56  ;;  %vm553_vm8 = vcmp.gt.f32.partialorder %v545_v38, 0.5 }
 0x138   : > { %2835 = vmatpush3.bf16.msra.mxu0 %v3174_v47  ;;  %2740 = vmatprep.subr.bf16.mxu1 %v3175_v53  ;;  %v767_v47 = vsel %vm732_vm2, %v757_v19, %v766_v28 }
 0x139   : > { %2836 = vmatprep.subr.bf16.mxu0 %v3176_v55  ;;  %v4156_v0 = vor.u32 %v922_v43, %v921_v9  ;;  %v1106_v9 = vor.u32 %v4124_v13, %v1103_v58  ;;  %v930_v58 = vrot.slane %v4117_v8, 4 }
 0x13b   : > { %2741 = vmatpush3.bf16.msra.mxu1 %v3175_v53  ;;  %v1094_v53 = vrot.slane %v4098_v57, 7  ;;  %v4182_v20 = vsel %vm1086_vm6, %v1097_v61, %v1106_v9  ;;  %v3203_v9 = vld [vmem:[#allocation11 + $0x1c0] sm:$0xff]  }
 0x13c   : > { %2837 = vmatpush3.bf16.msra.mxu0 %v3176_v55  ;;  %2742 = vmatprep.subr.bf16.mxu1 %v3177_v60  ;;  %v1428_v55 = vrot.slane %v1426_v42, 1 }
 0x13d   : > { %2838 = vmatprep.subr.bf16.mxu0 %v3178_v62 }
 0x13e   : > { %v1429_v7 = vsel %vm1393_vm1, %v1424_v54, %v1428_v55  ;;  %v4206_v54 = vld [vmem:[#allocation2 + $0x28] sm:$0x1f] }
 0x13f   : > { %2743 = vmatpush3.bf16.msra.mxu1 %v3177_v60  ;;  %v4148_v60 = vor.u32 %v1094_v53, %v4076_v31 }
 0x140   : > { %2839 = vmatpush3.bf16.msra.mxu0 %v3178_v62  ;;  %2744 = vmatprep.subr.bf16.mxu1 %v3180_v2  ;;  %v776_v62 = vsel %vm732_vm2, %v766_v28, %v775_v48  ;;  %v1915_v28 = vrot.slane %v4076_v31, 6  ;;  %v3200_v31 = vld [vmem:[#allocation11 + $0xb8] sm:$0xff]   ;;  %v929_v48 = vrot.slane %v4110_v5, 3 }
 0x141   : > { %2840 = vmatprep.subr.bf16.mxu0 %v3181_v4 }
 0x143   : > { %2745 = vmatpush3.bf16.msra.mxu1 %v3180_v2  ;;  %v4163_v2 = vor.u32 %v1584_v45, %v1583_v44  ;;  %v3580_v44 = vmov 0   ;;  %v548_v45 = vld [vmem:[%s4042_s17 + $0x18] sm:$0xff] }
 0x144   : > { %2841 = vmatpush3.bf16.msra.mxu0 %v3181_v4  ;;  %2746 = vmatprep.subr.bf16.mxu1 %v3183_v10  ;;  %v1098_v4 = vor.u32 %v4117_v8, %v1097_v61  ;;  %vm556_vm11 = vcmp.gt.f32.partialorder %v548_v45, 0.5 }
 0x145   : > { %2842 = vmatprep.subr.bf16.mxu0 %v3184_v14  ;;  %v1586_v15 = vsel %vm1574_vm5, %v1582_v1, %v4163_v2  ;;  %3146 = vset.pattern.permute.xlu0 %v3580_v44  ;;  %v937_v1 = vshll.u32 %v894_v49, 16 }
 0x146   : > { %v4179_v19 = vsel %vm1086_vm6, %v1094_v53, %v1098_v4  ;;  %v3201_v53 = vld [vmem:[#allocation11 + $0x1b8] sm:$0xff]   ;;  %3147 = vset.pattern.permute.xlu1 %v3580_v44  ;;  %v3202_v4 = vld [vmem:[#allocation11 + $0xc0] sm:$0xff]  }
 0x147   : > { %2747 = vmatpush3.bf16.msra.mxu1 %v3183_v10  ;;  %v3192_v10 = vld [vmem:[#allocation11 + $0x198] sm:$0xff]  }
 0x148   : > { %2843 = vmatpush3.bf16.msra.mxu0 %v3184_v14  ;;  %2756 = vmatprep.subr.bf16.mxu1 %v3185_v21  ;;  %v924_v14 = vsel %vm912_vm4, %v920_v63, %v4156_v0  ;;  %v934_v63 = vshrl.u32 %v894_v49, 16 }
 0x149   : > { %2852 = vmatprep.subr.bf16.mxu0 %v3186_v23 }
 0x14a   : > { %2749 = vmatmul.mubr.bf16.vlgmr.msra.gmra.mrb[0].mxu1 %v758_v34  ;;  %v1919_v34 = vrot.slane %v4117_v8, 6 }
 0x14b   : > { %2757 = vmatpush3.bf16.msra.mxu1 %v3185_v21  ;;  %2845 = vmatmul.mubr.bf16.vlgmr.msra.gmra.mrb[0].mxu0 %v1413_v41  ;;  %v3195_v21 = vld [vmem:[#allocation11 + $0xa8] sm:$0xff]  }
 0x14c   : > { %2853 = vmatpush3.bf16.msra.mxu0 %v3186_v23  ;;  %2758 = vmatprep.subr.bf16.mxu1 %v3187_v27  ;;  %v925_v23 = vrot.slane %v4098_v57, 3  ;;  %v546_v41 = vld [vmem:[%s4042_s17 + $0x8] sm:$0xff]  ;;  %v1920_v42 = vor.u32 %v1919_v34, %v1918_v32 }
 0x14d   : > { %2854 = vmatprep.subr.bf16.mxu0 %v3188_v36  ;;  %2752 = vmatprep.mubr.bf16.mxu1 %v767_v47  ;;  %v1588_v47 = vrot.slane %v4117_v8, 5  ;;  %vm554_vm10 = vcmp.gt.f32.partialorder %v546_v41, 0.5  ;;  %v3205_v32 = vld [vmem:[#allocation11 + $0x1c8] sm:$0xff]   ;;  %v4238_v41 = vld [vmem:[#allocation2 + $0x8] sm:$0xe0] }
 0x14e   : > { %2848 = vmatprep.mubr.bf16.mxu0 %v1421_v51  ;;  %v2114_v51 = vsel %vm553_vm8, 1, %v3580_v44  ;;  %v2115_v61 = vsel %vm554_vm10, 1, %v3580_v44 }
 0x14f   : > { %2759 = vmatpush3.bf16.msra.mxu1 %v3187_v27  ;;  %v1914_v27 = vrot.slane %v4098_v57, 5  ;;  %v547_v57 = vld [vmem:[%s4042_s17 + $0x10] sm:$0xff]  ;;  %2123 = vperm.xlu0 %3146, %v2114_v51   ;;  %v1589_v8 = vor.u32 %v1588_v47, %v1587_v39  ;;  %v3208_v51 = vld [vmem:[#allocation11 + $0xd8] sm:$0xff]  }
 0x150   : > { %2855 = vmatpush3.bf16.msra.mxu0 %v3188_v36  ;;  %2760 = vmatprep.subr.bf16.mxu1 %v3189_v46  ;;  %v1922_v36 = vrot.slane %v4121_v12, 5  ;;  %vm555_vm9 = vcmp.gt.f32.partialorder %v547_v57, 0.5  ;;  %v3206_v39 = vld [vmem:[#allocation11 + $0xd0] sm:$0xff]  }
 0x151   : > { %2856 = vmatprep.subr.bf16.mxu0 %v3190_v59  ;;  %v4194_v40 = vor.u32 %v1915_v28, %v1914_v27  ;;  %v2116_v5 = vsel %vm555_vm9, 1, %v3580_v44 }
 0x152   : > { %2753 = vmatmul.mubr.bf16.gmra.mrb[4].mxu1 %v776_v62  ;;  %v4198_v43 = vor.u32 %v1923_v37, %v1922_v36  ;;  %v1592_v62 = vrot.slane %v4124_v13, 5  ;;  %2129 = vperm.xlu1 %3147, %v2116_v5   ;;  %v931_v13 = vor.u32 %v930_v58, %v929_v48  ;;  %v1091_v36 = vrot.slane %v4070_v29, 7  ;;  %v3211_v58 = vld [vmem:[#allocation11 + $0x1e0] sm:$0xff]  }
 0x153   : > { %2761 = vmatpush3.bf16.msra.mxu1 %v3189_v46  ;;  %2849 = vmatmul.mubr.bf16.gmra.mrb[4].mxu0 %v1429_v7  ;;  %v927_v46 = vor.u32 %v926_v25, %v925_v23  ;;  %v4214_v56 = vsel %vm1905_vm7, %v4194_v40, %v1920_v42  ;;  %v2117_v7 = vsel %vm556_vm11, 1, %v3580_v44  ;;  %v1067_v23 = vld [vmem:[#allocation2] sm:$0x80]  ;;  %v3204_v25 = vld [vmem:[#allocation11 + $0xc8] sm:$0xff]   ;;  %v1753_v48 = vrot.slane %v4238_v41, 5 }
 0x154   : > { %2857 = vmatpush3.bf16.msra.mxu0 %v3190_v59  ;;  %2762 = vmatprep.subr.bf16.mxu1 %v3191_v3  ;;  %v4210_v55 = vsel %vm1905_vm7, %v1920_v42, %v4198_v43  ;;  %v1591_v59 = vrot.slane %v4121_v12, 4  ;;  %v1596_v12 = vshrl.u32 %v4206_v54, 16  ;;  %v1088_v34 = vshrl.u32 %v1067_v23, 16  ;;  %v3207_v42 = vld [vmem:[#allocation11 + $0x1d0] sm:$0xff]  }
 0x155   : > { %2858 = vmatprep.subr.bf16.mxu0 %v3192_v10  ;;  %2772 = vmatprep.mubr.bf16.mxu1 %v924_v14  ;;  %v2118_v14 = vsel %vm557_vm12, 1, %v3580_v44 }
 0x156   : > { %2868 = vmatprep.mubr.bf16.mxu0 %v1586_v15  ;;  %2126 = vperm.xlu0 %3146, %v2115_v61   ;;  %v551_v15 = vld [vmem:[%s4042_s17 + $0x30] sm:$0xff]  ;;  %v1598_v27 = vrot.slane %v1596_v12, 4  ;;  %v1090_v45 = vrot.slane %v1088_v34, 7  ;;  %v3213_v61 = vld [vmem:[#allocation11 + $0x1e8] sm:$0xff]   ;;  %v1096_v12 = vsel %vm1086_vm6, %v1091_v36, %v4148_v60 }
 0x157   : > { %2763 = vmatpush3.bf16.msra.mxu1 %v3191_v3  ;;  %v1599_v3 = vshll.u32 %v4206_v54, 16  ;;  %2132 = vperm.xlu1 %3147, %v2117_v7   ;;  %vm559_vm14 = vcmp.gt.f32.partialorder %v551_v15, 0.5 }
 0x158   : > { %2859 = vmatpush3.bf16.msra.mxu0 %v3192_v10  ;;  %2764 = vmatprep.subr.bf16.mxu1 %v3193_v17  ;;  %v550_v10 = vld [vmem:[%s4042_s17 + $0x28] sm:$0xff] }
 0x159   : > { %2860 = vmatprep.subr.bf16.mxu0 %v3194_v18  ;;  %v1601_v28 = vrot.slane %v1599_v3, 5  ;;  %vm558_vm13 = vcmp.gt.f32.partialorder %v550_v10, 0.5  ;;  %v3219_v3 = vld [vmem:[#allocation11 + $0x208] sm:$0xff]   ;;  %v1760_v10 = vrot.slane %v4206_v54, 5 }
 0x15a   : > { %2135 = vperm.xlu0 %3146, %v2118_v14   ;;  %v2119_v38 = vsel %vm558_vm13, 1, %v3580_v44 }
 0x15b   : > { %2765 = vmatpush3.bf16.msra.mxu1 %v3193_v17  ;;  %v928_v17 = vsel %vm912_vm4, %v4156_v0, %v927_v46  ;;  %v552_v0 = vld [vmem:[%s4042_s17 + $0x38] sm:$0xff]  ;;  %v1602_v57 = vor.u32 %v1601_v28, %v1598_v27  ;;  %2138 = vperm.xlu1 %3147, %v2119_v38   ;;  %v1761_v60 = vsel %vm1752_vm3, %v1758_v6, %v1760_v10 }
 0x15c   : > { %2861 = vmatpush3.bf16.msra.mxu0 %v3194_v18  ;;  %2766 = vmatprep.subr.bf16.mxu1 %v3195_v21  ;;  %v1593_v18 = vor.u32 %v1592_v62, %v1591_v59  ;;  %vm560_vm15 = vcmp.gt.f32.partialorder %v552_v0, 0.5  ;;  %v3212_v59 = vld [vmem:[#allocation11 + $0xe8] sm:$0xff]   ;;  %v3214_v62 = vld [vmem:[#allocation11 + $0xf0] sm:$0xff]   ;;  %v1887_v6 = vld [vmem:[#allocation2 + $0x28] sm:$0x3f] }
 0x15d   : > { %2862 = vmatprep.subr.bf16.mxu0 %v3196_v22  ;;  %v2121_v49 = vsel %vm560_vm15, 1, %v3580_v44 }
 0x15e   : > { %v1594_v37 = vsel %vm1574_vm5, %v1589_v8, %v1593_v18  ;;  %v1603_v52 = vsel %vm1574_vm5, %v1593_v18, %v1602_v57 }
 0x15f   : > { %2767 = vmatpush3.bf16.msra.mxu1 %v3195_v21  ;;  %v936_v21 = vrot.slane %v934_v63, 3  ;;  %2144 = vperm.xlu1 %3147, %v2121_v49   ;;  %v3217_v63 = vld [vmem:[#allocation11 + $0x1f8] sm:$0xff]  }
 0x160   : > { %2863 = vmatpush3.bf16.msra.mxu0 %v3196_v22  ;;  %2768 = vmatprep.subr.bf16.mxu1 %v3197_v24  ;;  %v939_v22 = vrot.slane %v937_v1, 4  ;;  %v3218_v1 = vld [vmem:[#allocation11 + $0x200] sm:$0xff]  }
 0x161   : > { %2864 = vmatprep.subr.bf16.mxu0 %v3198_v33 }
 0x163   : > { %2769 = vmatpush3.bf16.msra.mxu1 %v3197_v24  ;;  %v1590_v24 = vsel %vm1574_vm5, %v4163_v2, %v1589_v8  ;;  %v940_v2 = vor.u32 %v939_v22, %v936_v21  ;;  %v1910_v8 = vshll.u32 %v4238_v41, 16 }
 0x164   : > { %2865 = vmatpush3.bf16.msra.mxu0 %v3198_v33  ;;  %2770 = vmatprep.subr.bf16.mxu1 %v3200_v31  ;;  %v932_v33 = vsel %vm912_vm4, %v927_v46, %v931_v13  ;;  %v1092_v46 = vor.u32 %v1091_v36, %v4067_v26  ;;  %v1755_v26 = vsel %vm1752_vm3, %v1753_v48, %v1754_v50  ;;  %v3216_v50 = vld [vmem:[#allocation11 + $0xf8] sm:$0xff]  }
 0x165   : > { %2866 = vmatprep.subr.bf16.mxu0 %v3201_v53  ;;  %v941_v47 = vsel %vm912_vm4, %v931_v13, %v940_v2  ;;  %v3220_v13 = vld [vmem:[#allocation11 + $0x210] sm:$0xff]  }
 0x166   : > { %v1093_v5 = vsel %vm1086_vm6, %v1090_v45, %v1092_v46 }
 0x167   : > { %2771 = vmatpush3.bf16.msra.mxu1 %v3200_v31  ;;  %v2120_v31 = vsel %vm559_vm14, 1, %v3580_v44  ;;  %v3210_v44 = vld [vmem:[#allocation11 + $0xe0] sm:$0xff]  }
 0x168   : > { %2867 = vmatpush3.bf16.msra.mxu0 %v3201_v53  ;;  %2780 = vmatprep.subr.bf16.mxu1 %v3202_v4  ;;  %v3209_v53 = vld [vmem:[#allocation11 + $0x1d8] sm:$0xff]  }
 0x169   : > { %2876 = vmatprep.subr.bf16.mxu0 %v3203_v9  ;;  %2141 = vperm.xlu0 %3146, %v2120_v31  }
 0x16a   : > { %2773 = vmatmul.mubr.bf16.vlgmr.msra.gmra.mrb[0].mxu1 %v928_v17  ;;  %v3225_v17 = vld [vmem:[#allocation11 + $0x238] sm:$0xff]  }
 0x16b   : > { %2781 = vmatpush3.bf16.msra.mxu1 %v3202_v4  ;;  %2869 = vmatmul.mubr.bf16.vlgmr.msra.gmra.mrb[0].mxu0 %v1590_v24  ;;  %v1907_v4 = vshrl.u32 %v4238_v41, 16 }
 0x16c   : > { %2877 = vmatpush3.bf16.msra.mxu0 %v3203_v9  ;;  %2782 = vmatprep.subr.bf16.mxu1 %v3204_v25  ;;  %v1912_v9 = vrot.slane %v1910_v8, 6 }
 0x16d   : > { %2878 = vmatprep.subr.bf16.mxu0 %v3205_v32  ;;  %2776 = vmatprep.mubr.bf16.mxu1 %v932_v33  ;;  %v1909_v7 = vrot.slane %v1907_v4, 5 }
 0x16e   : > { %2872 = vmatprep.mubr.bf16.mxu0 %v1594_v37 }
 0x16f   : > { %2783 = vmatpush3.bf16.msra.mxu1 %v3204_v25  ;;  %v1913_v29 = vor.u32 %v1912_v9, %v1909_v7 }
 0x170   : > { %2879 = vmatpush3.bf16.msra.mxu0 %v3205_v32  ;;  %2784 = vmatprep.subr.bf16.mxu1 %v3206_v39 }
 0x171   : > { %2880 = vmatprep.subr.bf16.mxu0 %v3207_v42  ;;  %v1917_v54 = vsel %vm1905_vm7, %v1913_v29, %v4194_v40  ;;  %v3224_v40 = vld [vmem:[#allocation11 + $0x230] sm:$0xff]  }
 0x172   : > { %2777 = vmatmul.mubr.bf16.gmra.mrb[4].mxu1 %v941_v47  ;;  %v2538_v47 = vld [vmem:[#allocation12] ss:$0 sm:$0xff] }
 0x173   : > { %2785 = vmatpush3.bf16.msra.mxu1 %v3206_v39  ;;  %2873 = vmatmul.mubr.bf16.gmra.mrb[4].mxu0 %v1603_v52 }
 0x174   : > { %2881 = vmatpush3.bf16.msra.mxu0 %v3207_v42  ;;  %2786 = vmatprep.subr.bf16.mxu1 %v3208_v51 }
 0x175   : > { %2882 = vmatprep.subr.bf16.mxu0 %v3209_v53  ;;  %2796 = vmatprep.mubr.bf16.mxu1 %v1093_v5 }
 0x176   : > { %2892 = vmatprep.mubr.bf16.mxu0 %v1755_v26 }
 0x177   : > { %2787 = vmatpush3.bf16.msra.mxu1 %v3208_v51 }
 0x178   : > { %2883 = vmatpush3.bf16.msra.mxu0 %v3209_v53  ;;  %2788 = vmatprep.subr.bf16.mxu1 %v3210_v44 }
 0x179   : > { %2884 = vmatprep.subr.bf16.mxu0 %v3211_v58 }
 0x17b   : > { %2789 = vmatpush3.bf16.msra.mxu1 %v3210_v44 }
 0x17c   : > { %2885 = vmatpush3.bf16.msra.mxu0 %v3211_v58  ;;  %2790 = vmatprep.subr.bf16.mxu1 %v3212_v59 }
 0x17d   : > { %2886 = vmatprep.subr.bf16.mxu0 %v3213_v61 }
 0x17f   : > { %2791 = vmatpush3.bf16.msra.mxu1 %v3212_v59 }
 0x180   : > { %2887 = vmatpush3.bf16.msra.mxu0 %v3213_v61  ;;  %2792 = vmatprep.subr.bf16.mxu1 %v3214_v62 }
 0x181   : > { %2888 = vmatprep.subr.bf16.mxu0 %v3215_v16 }
 0x183   : > { %2793 = vmatpush3.bf16.msra.mxu1 %v3214_v62 }
 0x184   : > { %2889 = vmatpush3.bf16.msra.mxu0 %v3215_v16  ;;  %2794 = vmatprep.subr.bf16.mxu1 %v3216_v50 }
 0x185   : > { %2890 = vmatprep.subr.bf16.mxu0 %v3217_v63 }
 0x187   : > { %2795 = vmatpush3.bf16.msra.mxu1 %v3216_v50 }
 0x188   : > { %2891 = vmatpush3.bf16.msra.mxu0 %v3217_v63  ;;  %2924 = vmatprep.subr.bf16.mxu1 %v3218_v1 }
 0x189   : > { %2900 = vmatprep.subr.bf16.mxu0 %v3218_v1 }
 0x18a   : > { %2797 = vmatmul.mubr.bf16.vlgmr.msra.gmra.mrb[0].mxu1 %v1096_v12 }
 0x18b   : > { %2893 = vmatmul.mubr.bf16.vlgmr.msra.gmra.mrb[0].mxu0 %v4161_v30  ;;  %2932 = vmatpush3.bf16.msra.mxu1 %v3218_v1  ;;  %v3221_v30 = vld [vmem:[#allocation11 + $0x218] sm:$0xff]  }
 0x18c   : > { %2901 = vmatpush3.bf16.msra.mxu0 %v3218_v1  ;;  %2925 = vmatprep.subr.bf16.mxu1 %v3219_v3 }
 0x18d   : > { %2902 = vmatprep.subr.bf16.mxu0 %v3219_v3  ;;  %2800 = vmatprep.mubr.bf16.mxu1 %v4179_v19  ;;  %v1927_v19 = vshrl.u32 %v1887_v6, 16 }
 0x18e   : > { %2896 = vmatprep.mubr.bf16.mxu0 %v4172_v11  ;;  %v3222_v11 = vld [vmem:[#allocation11 + $0x220] sm:$0xff]  }
 0x18f   : > { %2933 = vmatpush3.bf16.msra.mxu1 %v3219_v3  ;;  %v1929_v14 = vrot.slane %v1927_v19, 5 }
 0x190   : > { %2903 = vmatpush3.bf16.msra.mxu0 %v3219_v3  ;;  %2926 = vmatprep.subr.bf16.mxu1 %v3220_v13 }
 0x191   : > { %2904 = vmatprep.subr.bf16.mxu0 %v3220_v13 }
 0x192   : > { %2801 = vmatmul.mubr.bf16.gmra.mrb[4].mxu1 %v4182_v20  ;;  %v1930_v20 = vshll.u32 %v1887_v6, 16 }
 0x193   : > { %2897 = vmatmul.mubr.bf16.gmra.mrb[4].mxu0 %v1761_v60  ;;  %2934 = vmatpush3.bf16.msra.mxu1 %v3220_v13 }
 0x194   : > { %2905 = vmatpush3.bf16.msra.mxu0 %v3220_v13  ;;  %2927 = vmatprep.subr.bf16.mxu1 %v3221_v30  ;;  %v1932_v15 = vrot.slane %v1930_v20, 6 }
 0x195   : > { %2906 = vmatprep.subr.bf16.mxu0 %v3221_v30  ;;  %2916 = vmatprep.mubr.bf16.mxu0 %v1917_v54 }
 0x196   : > { %2920 = vmatprep.mubr.bf16.mxu1 %v4210_v55  ;;  %v1933_v55 = vor.u32 %v1932_v15, %v1929_v14 }
 0x197   : > { %2935 = vmatpush3.bf16.msra.mxu1 %v3221_v30 }
 0x198   : > { %2907 = vmatpush3.bf16.msra.mxu0 %v3221_v30  ;;  %2928 = vmatprep.subr.bf16.mxu1 %v3222_v11  ;;  %v1934_v18 = vsel %vm1905_vm7, %v4198_v43, %v1933_v55 }
 0x199   : > { %2908 = vmatprep.subr.bf16.mxu0 %v3222_v11 }
 0x19b   : > { %2936 = vmatpush3.bf16.msra.mxu1 %v3222_v11 }
 0x19c   : > { %2909 = vmatpush3.bf16.msra.mxu0 %v3222_v11  ;;  %2929 = vmatprep.subr.bf16.mxu1 %v3223_v35 }
 0x19d   : > { %2910 = vmatprep.subr.bf16.mxu0 %v3223_v35 }
 0x19f   : > { %2937 = vmatpush3.bf16.msra.mxu1 %v3223_v35 }
 0x1a0   : > { %2911 = vmatpush3.bf16.msra.mxu0 %v3223_v35  ;;  %2930 = vmatprep.subr.bf16.mxu1 %v3224_v40 }
 0x1a1   : > { %2912 = vmatprep.subr.bf16.mxu0 %v3224_v40 }
 0x1a3   : > { %2938 = vmatpush3.bf16.msra.mxu1 %v3224_v40 }
 0x1a4   : > { %2913 = vmatpush3.bf16.msra.mxu0 %v3224_v40  ;;  %2931 = vmatprep.subr.bf16.mxu1 %v3225_v17 }
 0x1a5   : > { %2914 = vmatprep.subr.bf16.mxu0 %v3225_v17 }
 0x1a7   : > { %2939 = vmatpush3.bf16.msra.mxu1 %v3225_v17 }
 0x1a8   : > { %2915 = vmatpush3.bf16.msra.mxu0 %v3225_v17 }
 0x1aa   : > { %2921 = vmatmul.mubr.bf16.vlgmr.msra.gmra.mrb[8].mxu1 %v1934_v18 }
 0x1ab   : > { %2917 = vmatmul.mubr.bf16.vlgmr.msra.gmra.mrb[0].mxu0 %v4214_v56 }
 0x1ce   : > { %v2124_v39 = vpop.permute.xlu0 %2123 }
 0x1cf   : > { %vm2146_vm0 = vcmp.eq.s32.totalorder %v2124_v39, 1 }
 0x1d1   : > { %v2130_v57 = vpop.permute.xlu1 %2129 }
 0x1d2   : > { %vm2148_vm1 = vcmp.eq.s32.totalorder %v2130_v57, 1 }
 0x1d5   : > { %v2127_v41 = vpop.permute.xlu0 %2126 }
 0x1d6   : > { %v2133_v56 = vpop.permute.xlu1 %2132  ;;  %vm2147_vm2 = vcmp.eq.s32.totalorder %v2127_v41, 1 }
 0x1d7   : > { %vm2149_vm3 = vcmp.eq.s32.totalorder %v2133_v56, 1 }
 0x1d9   : > { %v2136_v1 = vpop.permute.xlu0 %2135 }
 0x1da   : > { %v4285_v3 = vpop.permute.xlu1 %2138  ;;  %vm2150_vm4 = vcmp.eq.s32.totalorder %v2136_v1, 1 }
 0x1db   : > { %vm2151_vm5 = vcmp.eq.s32.totalorder %v4285_v3, 1 }
 0x1de   : > { %v2145_v18 = vpop.permute.xlu1 %2144 }
 0x1e8   : > { %v2142_v20 = vpop.permute.xlu0 %2141 }
 0x25d   : > { %v2798_v21 = vpop.f32.mrb[0].mxu1 }
 0x25e   : > { %v1194_v22 = vpop.f32.mrb[1].mxu1 }
 0x25f   : > { %v2799_v23 = vpop.f32.mrb[2].mxu1 }
 0x260   : > { %v1197_v24 = vpop.f32.mrb[3].mxu1 }
 0x265   : > { %v2802_v25 = vpop.f32.mrb[4].mxu1 }
 0x266   : > { %v2898_v27 = vpop.f32.mrb[4].mxu0  ;;  %v1210_v28 = vpop.f32.mrb[5].mxu1 }
 0x267   : > { %v2944_v32 = vadd.f32 %v2898_v27, %v2802_v25  ;;  %v1864_v0 = vpop.f32.mrb[5].mxu0  ;;  %v2803_v33 = vpop.f32.mrb[6].mxu1 }
 0x268   : > { %v2946_v34 = vadd.f32 %v1864_v0, %v1210_v28  ;;  %v2899_v36 = vpop.f32.mrb[6].mxu0  ;;  %v1213_v37 = vpop.f32.mrb[7].mxu1 }
 0x269   : > { %v2948_v2 = vadd.f32 %v2899_v36, %v2803_v33  ;;  %v1867_v38 = vpop.f32.mrb[7].mxu0 }
 0x26a   : > { %v2950_v43 = vadd.f32 %v1867_v38, %v1213_v37 }
 0x27d   : > { %v2922_v31 = vpop.f32.mrb[8].mxu1 }
 0x27e   : > { %v2918_v42 = vpop.f32.mrb[0].mxu0  ;;  %v2945_v45 = vadd.f32 %v2944_v32, %v2922_v31  ;;  %v2037_v46 = vpop.f32.mrb[9].mxu1 }
 0x27f   : > { %v2940_v48 = vadd.f32 %v2918_v42, %v2798_v21  ;;  %v2021_v49 = vpop.f32.mrb[1].mxu0  ;;  %v2947_v51 = vadd.f32 %v2946_v34, %v2037_v46  ;;  %v2923_v52 = vpop.f32.mrb[10].mxu1 }
 0x280   : > { %v2941_v53 = vadd.f32 %v2021_v49, %v1194_v22  ;;  %v2919_v5 = vpop.f32.mrb[2].mxu0  ;;  %v2949_v26 = vadd.f32 %v2948_v2, %v2923_v52  ;;  %v2040_v44 = vpop.f32.mrb[11].mxu1  ;;  %v4273_v62 = vadd.f32 %v2945_v45, %v2538_v47 }
 0x281   : > { %v2942_v58 = vadd.f32 %v2919_v5, %v2799_v23  ;;  %v2024_v59 = vpop.f32.mrb[3].mxu0  ;;  %v2951_v61 = vadd.f32 %v2950_v43, %v2040_v44  ;;  %v2068_v4 = vadd.f32 %v2940_v48, %v2538_v47  ;;  %v2070_v13 = vadd.f32 %v2947_v51, %v2538_v47 }
 0x282   : > { %v2066_v16 = vadd.f32 %v2941_v53, %v2538_v47  ;;  %v4275_v50 = vadd.f32 %v2949_v26, %v2538_v47  ;;  %v2943_v63 = vadd.f32 %v2024_v59, %v1197_v24 }
 0x283   : > { %v2069_v8 = vadd.f32 %v2942_v58, %v2538_v47  ;;  %v2071_v29 = vadd.f32 %v2951_v61, %v2538_v47  ;;  %v2156_v60 = vsel %vm2148_vm1, %v2068_v4, 0.0  ;;  %v2158_v55 = vsel %vm2150_vm4, %v2070_v13, 0.0 }
 0x284   : > { %v2593_v12 = vpack.c.bf16 %v4275_v50, %v4273_v62  ;;  %v2154_v7 = vsel %vm2146_vm0, %v2066_v16, 0.0  ;;  %v2067_v10 = vadd.f32 %v2943_v63, %v2538_v47  ;;  %v2178_v14 = vmul.f32 %v2156_v60, %v2156_v60 }
 0x285   : > { %v2583_v9 = vpack.c.bf16 %v2069_v8, %v2068_v4  ;;  %v2176_v11 = vmul.f32 %v2154_v7, %v2154_v7  ;;  %v2588_v19 = vpack.c.bf16 %v2071_v29, %v2070_v13  ;;  %v2157_v40 = vsel %vm2149_vm3, %v2069_v8, 0.0 }
 0x286   : > { %2599 = vst [vmem:[%s4279_s1 + $0x18] sm:$0xff] %v2593_v12   ;;  %v2578_v30 = vpack.c.bf16 %v2067_v10, %v2066_v16  ;;  %v2155_v54 = vsel %vm2147_vm2, %v2067_v10, 0.0 }
 0x287   : > { %2597 = vst [vmem:[%s4279_s1 + $0x8] sm:$0xff] %v2583_v9   ;;  %v2162_v35 = vadd.f32 %v2155_v54, %v2154_v7  ;;  %v2177_v6 = vmul.f32 %v2155_v54, %v2155_v54  ;;  %2598 = vst [vmem:[%s4279_s1 + $0x10] sm:$0xff] %v2588_v19  }
 0x288   : > { %2579 = vst [vmem:[%s4279_s1] sm:$0xff] %v2578_v30  }
 0x289   : > { %v2163_v15 = vadd.f32 %v2162_v35, %v2156_v60  ;;  %v2184_v17 = vadd.f32 %v2177_v6, %v2176_v11 }
 0x28a   : > { %3415 = shalt.err (!%p3412_p9)
}
 0x28b   : > { %s3416_s21 = scalar_lea.hbm %s4294_s6, 512  ;;  %s3420_s4 = scalar_lea.hbm %s4489_s12, 2048 }
 0x28c   : > { %p3417_p2 = scmp.ne.s32.totalorder %s4294_s6, %s3416_s21  ;;  %p3421_p4 = scmp.lt.u32.totalorder %s4294_s6, %s4489_s12 }
 0x28d   : > { %p3422_p8 = scmp.lt.u32.totalorder %s3420_s4, %s3416_s21  ;;  %p3424_p7 = scmp.lt.u32.totalorder %s3416_s21, %s4294_s6 }
 0x28e   : > { %p3418_p6 = pnand %p3417_p2, %p4491_p11 }
 0x28f   : > { %p3423_p1 = por %p3422_p8, %p3421_p4 }
 0x290   : > { %p3419_p13 = pneg %p3418_p6 }
 0x291   : > { %p3425_p3 = por %p3424_p7, %p3423_p1 }
 0x293   : > { %p3426_p5 = pnand %p3425_p3, %p3419_p13 }
 0x295   : > { %3429 = shalt.err (!%p3426_p5)
}
 0x296   : > { %s3582_s1 = smov 64   ;;  %s3583_s23 = smov 4   ;;  %vm2152_vm6 = vcmp.eq.s32.totalorder %v2142_v20, 1  ;;  %v2179_v21 = vmul.f32 %v2157_v40, %v2157_v40  ;;  %v2185_v22 = vadd.f32 %v2184_v17, %v2178_v14  ;;  %v2164_v23 = vadd.f32 %v2163_v15, %v2157_v40 }
 0x297   : > { %3020 = dma.vmem_to_hbm [thread:$0]  (%p4491_p11), %s4287_s16, 512, %s4294_s6, %s2204_s19, %s3582_s1, %s3582_s1, %s3583_s23   ;;  %v2159_v24 = vsel %vm2151_vm5, %v2071_v29, 0.0  ;;  %v2180_v25 = vmul.f32 %v2158_v55, %v2158_v55  ;;  %vm2153_vm7 = vcmp.eq.s32.totalorder %v2145_v18, 1  ;;  %v2160_v32 = vsel %vm2152_vm6, %v4273_v62, 0.0 }
 0x298   : > { %v2165_v27 = vadd.f32 %v2164_v23, %v2158_v55  ;;  %v2186_v28 = vadd.f32 %v2185_v22, %v2179_v21  ;;  %v2181_v33 = vmul.f32 %v2159_v24, %v2159_v24  ;;  %v2161_v36 = vsel %vm2153_vm7, %v4275_v50, 0.0  ;;  %s2459_s16 = sshll.u32 %s4022_s5, 3  ;;  %s2551_s29 = sshll.u32 %s3676_s13, 7 }
 0x299   : > { %v2182_v37 = vmul.f32 %v2160_v32, %v2160_v32  ;;  %v2183_v39 = vmul.f32 %v2161_v36, %v2161_v36  ;;  %vm2198_vm8 = vcmask 1040384   ;;  %s475_s11 = scalar_lea.vmem [#allocation15], %s2459_s16  ;;  %vm2200_vm9 = vcmask 1041408   ;;  %s4492_s22 = sld [smem:[#allocation38_spill]] }
 0x29a   : > { %v2166_v0 = vadd.f32 %v2165_v27, %v2159_v24  ;;  %v2187_v34 = vadd.f32 %v2186_v28, %v2180_v25  ;;  %s2238_s6 = sshll.u32 %s475_s11, 4  ;;  %s2209_s30 = scalar_lea.sflag [#allocation16], %s4022_s5  ;;  %s4335_s6 = int_to_ptr.vmem [resolvable:$true] %s2238_s6 }
 0x29b   : > { %s3430_s13 = scalar_lea.vmem %s4335_s6, 128  ;;  %s3584_s21 = smov [#allocation15]  }
 0x29c   : > { %v2188_v2 = vadd.f32 %v2187_v34, %v2181_v33  ;;  %v2167_v38 = vadd.f32 %v2166_v0, %v2160_v32  ;;  %p3431_p12 = scmp.ne.s32.totalorder %s4335_s6, %s3430_s13  ;;  %s3434_s27 = sshll.u32 %s3584_s21, 4  ;;  %s3435_s27 = int_to_ptr.vmem [resolvable:$false] %s3434_s27 }
 0x29d   : > { %s3436_s7 = scalar_lea.vmem %s3435_s27, 256  ;;  %p3437_p9 = scmp.lt.s32.totalorder %s4335_s6, %s3435_s27 }
 0x29e   : > { %v2168_v43 = vadd.f32 %v2167_v38, %v2161_v36  ;;  %v2189_v57 = vadd.f32 %v2188_v2, %v2182_v37  ;;  %p3432_p0 = pnand %p3431_p12, %p4491_p11  ;;  %p3438_p2 = scmp.lt.s32.totalorder %s3436_s7, %s3430_s13 }
 0x29f   : > { %s4333_s18 = scalar_lea.hbm %s4492_s22, %s2551_s29 }
 0x2a0   : > { %v2169_v41 = vrot.slane %v2168_v43, 4  ;;  %v2190_v56 = vadd.f32 %v2189_v57, %v2183_v39  ;;  %p3433_p10 = pneg %p3432_p0  ;;  %p3439_p6 = por %p3438_p2, %p3437_p9 }
 0x2a2   : > { %v2170_v31 = vadd.f32 %v2169_v41, %v2168_v43  ;;  %v2191_v42 = vrot.slane %v2190_v56, 4  ;;  %p3440_p13 = pnand %p3439_p6, %p3433_p10 }
 0x2a4   : > { %v2171_v45 = vrot.slane %v2170_v31, 2  ;;  %v2192_v46 = vadd.f32 %v2191_v42, %v2190_v56 }
 0x2a6   : > { %v2172_v47 = vadd.f32 %v2171_v45, %v2170_v31  ;;  %v2193_v48 = vrot.slane %v2192_v46, 2 }
 0x2a8   : > { %v2173_v49 = vrot.slane %v2172_v47, 1  ;;  %v2194_v51 = vadd.f32 %v2193_v48, %v2192_v46 }
 0x2aa   : > { %v2195_v52 = vrot.slane %v2194_v51, 1  ;;  %v2174_v53 = vadd.f32 %v2173_v49, %v2172_v47 }
 0x2ac   : > { %v2196_v5 = vadd.f32 %v2195_v52, %v2194_v51 }
 0x2ae   : > { %v2199_v26 = vsel %vm2198_vm8, %v2174_v53, %v2196_v5 }
 0x2af   : > { %v2201_v44 = vsel %vm2200_vm9, %v2199_v26, 0.0 }
 0x2b0   : > { %2202 = vst [vmem:[%s475_s11] sm:$0xff] %v2201_v44 }
 0x2b1   : > { %3443 = shalt.err (!%p3440_p13)
}
 0x2b2   : > { %s3444_s5 = scalar_lea.hbm %s4333_s18, 128  ;;  %s3448_s17 = scalar_lea.hbm %s4492_s22, 512 }
 0x2b3   : > { %p3445_p4 = scmp.ne.s32.totalorder %s4333_s18, %s3444_s5  ;;  %p3449_p7 = scmp.lt.u32.totalorder %s4333_s18, %s4492_s22 }
 0x2b4   : > { %p3450_p3 = scmp.lt.u32.totalorder %s3448_s17, %s3444_s5  ;;  %p3452_p12 = scmp.lt.u32.totalorder %s3444_s5, %s4333_s18 }
 0x2b5   : > { %p3446_p8 = pnand %p3445_p4, %p4491_p11 }
 0x2b6   : > { %p3451_p5 = por %p3450_p3, %p3449_p7 }
 0x2b7   : > { %p3447_p1 = pneg %p3446_p8 }
 0x2b8   : > { %p3453_p0 = por %p3452_p12, %p3451_p5 }
 0x2ba   : > { %p3454_p10 = pnand %p3453_p0, %p3447_p1 }
 0x2bc   : > { %3457 = shalt.err (!%p3454_p10)
}
 0x2bd   : > { %3021 = dma.vmem_to_hbm [thread:$0]  (%p4491_p11), %s4335_s6, 128, %s4333_s18, %s2209_s30  }
 0x2be PF: > { %s4493_s16 = sld [smem:[#allocation25_spill]]  ;;  %s4494_s29 = sld [smem:[#allocation33_spill]] }
 0x2bf   : > { %p3056_p9 = scmp.ge.s32.totalorder %s3568_s10, 2 }
 0x2c4   : > { %s2250_s11 = sand.u32 1, %s4493_s16   ;;  %p4495_p2 = scmp.ne.s32.totalorder %s4494_s29, 0 }
 0x2c5   : > { %s2251_s19 = scalar_lea.sflag [#allocation5], %s2250_s11 }
 0x2c6   : > { %p3045_p6 = pnand %p3056_p9, %p4495_p2 }
 0x2c8   : > { %3523 = dma.done.wait (!%p3045_p6), %s2251_s19, 512  }
 0x2c9   : > { %3525 = vsyncadd (!%p3045_p6), %s2251_s19, 4294966784  ;;  %s2260_s20 = scalar_lea.sflag [#allocation16], %s2250_s11 }
 0x2ca   : > { %3527 = dma.done.wait (!%p3045_p6), %s2260_s20, 128  }
 0x2cb   : > { %3529 = vsyncadd (!%p3045_p6), %s2260_s20, 4294967168  ;;  %s4496_s10 = sld [smem:[#allocation29_spill]]  ;;  %s4497_s27 = sld [smem:[#allocation26_spill]] }
 0x2cc   : > { %s4498_s6 = sld [smem:[#allocation27_spill]]  ;;  %s4499_s29 = sld [smem:[#allocation30_spill]] }
 0x2cd   : > { %s4500_s18 = smov %s3860_s28  ;;  %s4501_s24 = smov %s3536_s25 }
 0x2ce   : > { %s4502_s25 = smov %s3540_s26  ;;  %s4503_s26 = smov %s3929_s15 }
 0x2cf   : > { %s4505_s30 = smov %s3560_s8  ;;  %s4506_s8 = smov %s3564_s9 }
 0x2d0   : > { %s4507_s9 = smov %s4500_s18 }
 0x2d1   : > { %p31_p11 = scmp.ge.s32.totalorder %s4496_s10, 6  }
 0x2d2   : > { %s4504_s28 = smov %s4498_s6 }
 0x2d3   :  { %33 = sbr.rel (!%p31_p11) target bundleno = 21 (0x15), region = 159 }
 0x2da   :  { %2265 = vsyncpa [#allocation4], 1 }
 0x2db   :  { %2267 = vsyncpa [#allocation4 + $0x1], 1 }
 0x2dc   :  { %2268 = vsyncpa [#allocation7], 1 }
 0x2dd   :  { %2270 = vsyncpa [#allocation7 + $0x1], 1 }
 0x2de   :  { %2271 = vsyncpa [#allocation10], 1 }
 0x2df   :  { %2273 = vsyncpa [#allocation10 + $0x1], 1 }
 0x2e0   :  { %2274 = vsyncpa [#allocation13], 1 }
 0x2e1   :  { %2275 = vsyncpa [#allocation5], 1 }
 0x2e2   :  { %2277 = vsyncpa [#allocation5 + $0x1], 1 }
 0x2e3   :  { %2278 = vsyncpa [#allocation16], 1 }
 0x2e4   :  { %2280 = vsyncpa [#allocation16 + $0x1], 1 }

// kernel: residual_block.5
= control target key start
LH: loop header
LB: loop body
LE: loop exit
PB: predicated region body
PF: predicated region fallthrough
CT: control target
= control target key end

     0   :  { %s1285_s0 = inlined_call_operand.hbm [shape: bf16[256,128], index: 0, kind: input, shape index: {}]   ;;  %s1286_s1 = inlined_call_operand.hbm [shape: f32[256,128], index: 1, kind: input, shape index: {}]   ;;  %s1287_s2 = inlined_call_operand.hbm [shape: f32[1,128], index: 2, kind: input, shape index: {}]   ;;  %s1288_s3 = inlined_call_operand.hbm [shape: f32[1,128], index: 3, kind: input, shape index: {}]   ;;  %s1289_s4 = inlined_call_operand.hbm [shape: f32[256,128], index: 4, kind: output, shape index: {}]  }
   0x1   :  { %1295 = sst [smem:[#allocation16_spill]] %s1285_s0 }
   0x2   :  { %1296 = sst [smem:[#allocation17_spill]] %s1287_s2 }
   0x3   :  { %9 = vsyncpa [#allocation3], 0 }
   0x4   :  { %11 = vsyncpa [#allocation3 + $0x1], 0 }
   0x5   :  { %12 = vsyncpa [#allocation6], 0 }
   0x6   :  { %14 = vsyncpa [#allocation6 + $0x1], 0 }
   0x7   :  { %15 = vsyncpa [#allocation9], 0 }
   0x8   :  { %16 = vsyncpa [#allocation4], 0 }
   0x9   :  { %18 = vsyncpa [#allocation4 + $0x1], 0  ;;  %s915_s15 = smov 0   ;;  %s917_s16 = smov 0  }
   0xa   :  { %s919_s17 = smov 0   ;;  %s921_s18 = smov 0  }
   0xb LB: > { %s936_s19 = sadd.s32 4294967295, %s877_s18   ;;  %s539_s20 = sadd.s32 4294967294, %s877_s18   ;;  %s877_s18 = sphi %s921_s18, %s1320_s18   ;;  %s873_s17 = sphi %s919_s17, %s1319_s17   ;;  %s869_s16 = sphi %s917_s16, %s1318_s16   ;;  %s865_s15 = sphi %s915_s15, %s1317_s15  }
   0xc   : > { %s940_s21 = sadd.s32 1, %s877_s18   ;;  %s31_s22 = sadd.s32 1, %s873_s17 }
   0xd   : > { %s28_s23 = ssub.s32 %s877_s18, %s940_s21  ;;  %p38_p0 = scmp.ne.s32.totalorder %s873_s17, %s869_s16 }
   0xe   : > { %p29_p1 = scmp.eq.s32.totalorder %s28_s23, 0  ;;  %p39_p2 = scmp.eq.s32.totalorder %s877_s18, 0 }
   0xf   : > { %p44_p3 = scmp.ne.s32.totalorder %s869_s16, %s865_s15  ;;  %p1290_p4 = scmp.eq.s32.totalorder %s936_s19, 0 }
  0x10   : > { %s952_s24 = scalar_select %p29_p1, %s873_s17, %s31_s22  }
  0x11   : > { %p954_p5 = por %p39_p2, %p38_p0  ;;  %p960_p6 = por %p1290_p4, %p44_p3 }
  0x12   : > { %p136_p7 = scmp.eq.s32.totalorder %s936_s19, 1  ;;  %p142_p8 = scmp.eq.s32.totalorder %s539_s20, 1 }
  0x13   : > { %s1298_s26 = scalar_select %p960_p6, 1, 0 }
  0x14   : > { %p540_p9 = scmp.ge.s32.totalorder %s877_s18, 1  ;;  %p149_p10 = scmp.lt.s32.totalorder %s877_s18, 3 }
  0x15   : > { %p967_p11 = por %p136_p7, %p38_p0  ;;  %p971_p12 = por %p142_p8, %p44_p3 }
  0x16   : > { %p975_p13 = pnand %p540_p9, %p149_p10  ;;  %s879_s30 = smov [#allocation7]  }
  0x17   : > { %s1299_s27 = scalar_select %p967_p11, 1, 0 }
  0x18   : > { %s1300_s28 = scalar_select %p971_p12, 1, 0 }
  0x19   : > { %s1301_s29 = scalar_select %p975_p13, 1, 0 }
  0x1a   : > { %p619_p2 = pneg %p975_p13  ;;  %s162_s5 = sshll.u32 %s879_s30, 4  ;;  %s163_s5 = int_to_ptr.vmem [resolvable:$true] %s162_s5 }
  0x1b   : > { %p639_p4 = scmp.lt.s32.totalorder %s877_s18, 2  ;;  %p1302_p0 = scmp.eq.s32.totalorder %s936_s19, 0 }
  0x1c   : > { %s880_s8 = smov [#allocation8]   ;;  %s1305_s2 = sld [smem:[#allocation17_spill]] }
  0x1d   : > { %p985_p7 = pnand %p619_p2, %p1302_p0  ;;  %p991_p3 = pnand %p639_p4, %p954_p5 }
  0x1e   : > { %s173_s9 = sshll.u32 %s880_s8, 4  ;;  %s995_s9 = int_to_ptr.vmem [resolvable:$true] %s173_s9 }
  0x1f   : > { %s1304_s7 = scalar_select %p991_p3, 1, 0 }
  0x20   : > { %p685_p9 = pneg %p985_p7 }
  0x22   : > { %s683_s12 = scalar_lea.hbm %s1305_s2, 16 }
  0x23   : > { %p684_p8 = scmp.ne.s32.totalorder %s1305_s2, %s683_s12  ;;  %p690_p10 = scmp.lt.u32.totalorder %s683_s12, %s1305_s2 }
  0x25   : > { %p686_p4 = pnand %p685_p9, %p684_p8 }
  0x27   : > { %p687_p5 = pneg %p686_p4 }
  0x29   : > { %p692_p2 = pnand %p690_p10, %p687_p5 }
  0x2b   : > { %695 = shalt.err (!%p692_p2)
}
  0x2c   : > { %s696_s23 = scalar_lea.vmem %s163_s5, 16  ;;  %s703_s25 = scalar_lea.vmem %s163_s5, 32 }
  0x2d   : > { %p697_p0 = scmp.ne.s32.totalorder %s163_s5, %s696_s23  ;;  %p704_p11 = scmp.lt.s32.totalorder %s163_s5, %s163_s5 }
  0x2e   : > { %p705_p6 = scmp.lt.s32.totalorder %s703_s25, %s696_s23 }
  0x2f   : > { %p699_p1 = pnand %p697_p0, %p685_p9 }
  0x30   : > { %p706_p13 = por %p705_p6, %p704_p11 }
  0x31   : > { %p700_p12 = pneg %p699_p1 }
  0x33   : > { %p707_p3 = pnand %p706_p13, %p700_p12 }
  0x35   : > { %710 = shalt.err (!%p707_p3)
}
  0x36   : > { %622 = dma.hbm_to_vmem [thread:$0]  (!%p985_p7), %s1305_s2, 16, %s163_s5, [#allocation6]  }
  0x37   : > { %s1020_s10 = sand.u32 1, %s873_s17   ;;  %s711_s13 = scalar_lea.hbm %s1288_s3, 16 }
  0x38   : > { %p712_p6 = scmp.ne.s32.totalorder %s1288_s3, %s711_s13  ;;  %p718_p13 = scmp.lt.u32.totalorder %s711_s13, %s1288_s3 }
  0x3a   : > { %p714_p11 = pnand %p712_p6, %p685_p9 }
  0x3c   : > { %p715_p12 = pneg %p714_p11 }
  0x3e   : > { %p720_p1 = pnand %p718_p13, %p715_p12 }
  0x40   : > { %723 = shalt.err (!%p720_p1)
}
  0x41   : > { %s724_s5 = scalar_lea.vmem %s995_s9, 16  ;;  %s731_s25 = scalar_lea.vmem %s995_s9, 32 }
  0x42   : > { %p725_p3 = scmp.ne.s32.totalorder %s995_s9, %s724_s5  ;;  %p732_p5 = scmp.lt.s32.totalorder %s995_s9, %s995_s9 }
  0x43   : > { %p733_p10 = scmp.lt.s32.totalorder %s731_s25, %s724_s5 }
  0x44   : > { %p727_p8 = pnand %p725_p3, %p685_p9 }
  0x45   : > { %p734_p2 = por %p733_p10, %p732_p5 }
  0x46   : > { %p728_p4 = pneg %p727_p8 }
  0x48   : > { %p735_p0 = pnand %p734_p2, %p728_p4 }
  0x4a   : > { %738 = shalt.err (!%p735_p0)
}
  0x4b   : > { %625 = dma.hbm_to_vmem [thread:$0]  (!%p985_p7), %s1288_s3, 16, %s995_s9, [#allocation9]  }
  0x4c   : > { %s544_s11 = sshll.u32 %s1020_s10, 6  ;;  %s563_s12 = sshll.u32 %s877_s18, 10 }
  0x4d   : > { %s1306_s0 = sld [smem:[#allocation16_spill]]  ;;  %s188_s6 = scalar_lea.vmem [#allocation2], %s544_s11 }
  0x4e   : > { %s195_s22 = sshll.u32 %s188_s6, 4  ;;  %s205_s23 = sand.u32 1, %s877_s18   ;;  %s1055_s22 = int_to_ptr.vmem [resolvable:$true] %s195_s22 }
  0x4f   : > { %s185_s5 = scalar_lea.sflag [#allocation3], %s1020_s10  ;;  %p1307_p7 = scmp.ne.s32.totalorder %s1304_s7, 0 }
  0x51   : > { %p741_p6 = pneg %p1307_p7 }
  0x53   : > { %s1053_s20 = scalar_lea.hbm %s1306_s0, %s563_s12  ;;  %s744_s8 = scalar_lea.hbm %s1306_s0, 2048 }
  0x54   : > { %s739_s25 = scalar_lea.hbm %s1053_s20, 1024  ;;  %p745_p13 = scmp.lt.u32.totalorder %s1053_s20, %s1306_s0 }
  0x55   : > { %p740_p9 = scmp.ne.s32.totalorder %s1053_s20, %s739_s25  ;;  %p746_p1 = scmp.lt.u32.totalorder %s744_s8, %s739_s25 }
  0x56   : > { %p748_p8 = scmp.lt.u32.totalorder %s739_s25, %s1053_s20 }
  0x57   : > { %p742_p11 = pnand %p741_p6, %p740_p9  ;;  %p747_p3 = por %p746_p1, %p745_p13 }
  0x59   : > { %p743_p12 = pneg %p742_p11  ;;  %p749_p4 = por %p748_p8, %p747_p3 }
  0x5b   : > { %p750_p5 = pnand %p749_p4, %p743_p12 }
  0x5d   : > { %753 = shalt.err (!%p750_p5)
}
  0x5e   : > { %s754_s11 = scalar_lea.vmem %s1055_s22, 1024  ;;  %s881_s14 = smov [#allocation2]  }
  0x5f   : > { %p755_p10 = scmp.ne.s32.totalorder %s1055_s22, %s754_s11  ;;  %s759_s6 = sshll.u32 %s881_s14, 4  ;;  %s760_s6 = int_to_ptr.vmem [resolvable:$false] %s759_s6 }
  0x60   : > { %s761_s9 = scalar_lea.vmem %s760_s6, 2048  ;;  %p762_p9 = scmp.lt.s32.totalorder %s1055_s22, %s760_s6 }
  0x61   : > { %p757_p2 = pnand %p755_p10, %p741_p6  ;;  %p763_p11 = scmp.lt.s32.totalorder %s761_s9, %s754_s11 }
  0x63   : > { %p758_p0 = pneg %p757_p2  ;;  %p764_p13 = por %p763_p11, %p762_p9 }
  0x65   : > { %p765_p1 = pnand %p764_p13, %p758_p0 }
  0x67   : > { %768 = shalt.err (!%p765_p1)
}
  0x68   : > { %s882_s25 = smov 64   ;;  %s883_s30 = smov 4  }
  0x69   : > { %629 = dma.hbm_to_vmem [thread:$0]  (!%p1307_p7), %s1053_s20, 1024, %s1055_s22, %s185_s5, %s882_s25, %s882_s25, %s883_s30  }
  0x6a   : > { %s547_s8 = sshll.u32 %s1020_s10, 7  ;;  %s564_s12 = sshll.u32 %s877_s18, 11 }
  0x6b   : > { %s1091_s14 = scalar_lea.hbm %s1286_s1, %s564_s12  ;;  %s209_s6 = scalar_lea.vmem [#allocation5], %s547_s8 }
  0x6c   : > { %s216_s9 = sshll.u32 %s209_s6, 4  ;;  %s1097_s0 = scalar_lea.sflag [#allocation6], %s205_s23  ;;  %s1093_s9 = int_to_ptr.vmem [resolvable:$true] %s216_s9 }
  0x6d   : > { %s769_s2 = scalar_lea.hbm %s1091_s14, 2048  ;;  %s774_s22 = scalar_lea.hbm %s1286_s1, 4096 }
  0x6e   : > { %p770_p12 = scmp.ne.s32.totalorder %s1091_s14, %s769_s2  ;;  %p775_p4 = scmp.lt.u32.totalorder %s1091_s14, %s1286_s1 }
  0x6f   : > { %p776_p5 = scmp.lt.u32.totalorder %s774_s22, %s769_s2  ;;  %p778_p2 = scmp.lt.u32.totalorder %s769_s2, %s1091_s14 }
  0x70   : > { %p772_p3 = pnand %p770_p12, %p741_p6 }
  0x71   : > { %p777_p10 = por %p776_p5, %p775_p4 }
  0x72   : > { %p773_p8 = pneg %p772_p3 }
  0x73   : > { %p779_p0 = por %p778_p2, %p777_p10 }
  0x75   : > { %p780_p9 = pnand %p779_p0, %p773_p8 }
  0x77   : > { %783 = shalt.err (!%p780_p9)
}
  0x78   : > { %s784_s23 = scalar_lea.vmem %s1093_s9, 2048  ;;  %s884_s30 = smov [#allocation5]  }
  0x79   : > { %p785_p11 = scmp.ne.s32.totalorder %s1093_s9, %s784_s23  ;;  %s789_s8 = sshll.u32 %s884_s30, 4  ;;  %s790_s8 = int_to_ptr.vmem [resolvable:$false] %s789_s8 }
  0x7a   : > { %s791_s12 = scalar_lea.vmem %s790_s8, 4096  ;;  %p792_p12 = scmp.lt.s32.totalorder %s1093_s9, %s790_s8 }
  0x7b   : > { %p787_p13 = pnand %p785_p11, %p741_p6  ;;  %p793_p3 = scmp.lt.s32.totalorder %s791_s12, %s784_s23 }
  0x7d   : > { %p788_p1 = pneg %p787_p13  ;;  %p794_p4 = por %p793_p3, %p792_p12 }
  0x7f   : > { %p795_p5 = pnand %p794_p4, %p788_p1 }
  0x81   : > { %798 = shalt.err (!%p795_p5)
}
  0x82   : > { %s885_s2 = smov 128   ;;  %s886_s13 = smov 8  }
  0x83   : > { %632 = dma.hbm_to_vmem [thread:$0]  (!%p1307_p7), %s1091_s14, 2048, %s1093_s9, %s1097_s0, %s885_s2, %s885_s2, %s886_s13  }
  0x84   : > { %p1308_p6 = scmp.ne.s32.totalorder %s1301_s29, 0 }
  0x85   : > { %s1126_s11 = sand.u32 (!%p1308_p6), 1, %s869_s16   ;;  %p1309_p8 = scmp.ne.s32.totalorder (!%p1308_p6), %s1298_s26, 0 }
  0x86   : > { %228 = sbr.rel (%p1308_p6) target bundleno = 186 (0xba), region = 36  ;;  %s551_s6 = sshll.u32 (!%p1308_p6), %s1126_s11, 6 }
  0x87   : > { %s231_s10 = scalar_lea.sflag (!%p1308_p6), [#allocation3], %s1126_s11  ;;  %s1130_s20 = scalar_lea.vmem (!%p1308_p6), [#allocation2], %s551_s6 }
  0x8d   : > { %844 = dma.done.wait (%p1309_p8), %s231_s10, 1024  }
  0x8e   : > { %846 = vsyncadd (%p1309_p8), %s231_s10, 4294966272  ;;  %s239_s0 = sand.u32 1, %s936_s19   ;;  %s552_s29 = sshll.u32 %s1126_s11, 7 }
  0x8f   : > { %s240_s7 = scalar_lea.sflag [#allocation6], %s239_s0  ;;  %s1140_s14 = scalar_lea.vmem [#allocation5], %s552_s29 }
  0x90   : > { %848 = dma.done.wait (%p1309_p8), %s240_s7, 2048  }
  0x91   : > { %850 = vsyncadd (%p1309_p8), %s240_s7, 4294965248  ;;  %p1310_p7 = scmp.eq.s32.totalorder %s936_s19, 0 }
  0x93   : > { %852 = dma.done.wait (%p1310_p7), [#allocation6], 16   ;;  %p1311_p10 = pmov %p1310_p7 }
  0x94   : > { %p1312_p2 = pmov %p1310_p7 }
  0x95   : > { %854 = vsyncadd (%p1311_p10), [#allocation6], 4294967280 }
  0x96   : > { %856 = dma.done.wait (%p1312_p2), [#allocation9], 16   ;;  %p1313_p0 = pmov %p1312_p2 }
  0x97   : > { %v567_v0 = vld [vmem:[%s1130_s20] sm:$0xff]   ;;  %v598_v4 = vld [vmem:[%s1130_s20 + $0x8] sm:$0xff]   ;;  %v599_v8 = vld [vmem:[%s1130_s20 + $0x10] sm:$0xff]   ;;  %s1191_s26 = scalar_lea.vmem [#allocation10], %s552_s29  ;;  %s565_s9 = sshll.u32 %s936_s19, 11 }
  0x98   : > { %858 = vsyncadd (%p1313_p0), [#allocation9], 4294967280  ;;  %v1155_v1 = vld [vmem:[#allocation7] ss:$0 sm:$0xff]  ;;  %v568_v2 = vunpack.c.l.bf16 %v567_v0  ;;  %v569_v3 = vunpack.c.h.bf16 %v567_v0  ;;  %v1158_v5 = vld [vmem:[#allocation8] ss:$0 sm:$0xff]  ;;  %v572_v6 = vunpack.c.l.bf16 %v598_v4  ;;  %v573_v7 = vunpack.c.h.bf16 %v598_v4  ;;  %s1233_s25 = scalar_lea.hbm %s1289_s4, %s565_s9 }
  0x99   : > { %v576_v11 = vunpack.c.l.bf16 %v599_v8  ;;  %v577_v12 = vunpack.c.h.bf16 %v599_v8  ;;  %v600_v13 = vld [vmem:[%s1130_s20 + $0x18] sm:$0xff]   ;;  %v362_v14 = vld [vmem:[%s1140_s14] sm:$0xff]  ;;  %v363_v15 = vld [vmem:[%s1140_s14 + $0x8] sm:$0xff]  ;;  %s424_s22 = sshll.u32 %s1191_s26, 4  ;;  %s411_s23 = scalar_lea.sflag [#allocation4], %s1126_s11  ;;  %s1235_s22 = int_to_ptr.vmem [resolvable:$true] %s424_s22 }
  0x9a   : > { %v323_v9 = vmul.f32 %v568_v2, %v1155_v1  ;;  %v324_v10 = vmul.f32 %v569_v3, %v1155_v1  ;;  %v325_v16 = vmul.f32 %v572_v6, %v1155_v1  ;;  %v326_v17 = vmul.f32 %v573_v7, %v1155_v1  ;;  %v364_v22 = vld [vmem:[%s1140_s14 + $0x10] sm:$0xff]  ;;  %v365_v23 = vld [vmem:[%s1140_s14 + $0x18] sm:$0xff]  ;;  %v366_v28 = vld [vmem:[%s1140_s14 + $0x20] sm:$0xff]  ;;  %s799_s30 = scalar_lea.vmem %s1235_s22, 2048  ;;  %p1314_p11 = scmp.ne.s32.totalorder %s1299_s27, 0 }
  0x9b   : > { %v580_v18 = vunpack.c.l.bf16 %v600_v13  ;;  %v581_v19 = vunpack.c.h.bf16 %v600_v13  ;;  %v327_v24 = vmul.f32 %v576_v11, %v1155_v1  ;;  %v328_v25 = vmul.f32 %v577_v12, %v1155_v1  ;;  %v367_v29 = vld [vmem:[%s1140_s14 + $0x28] sm:$0xff]  ;;  %v601_v32 = vld [vmem:[%s1130_s20 + $0x20] sm:$0xff]   ;;  %v368_v37 = vld [vmem:[%s1140_s14 + $0x30] sm:$0xff]  ;;  %p800_p9 = scmp.ne.s32.totalorder %s1235_s22, %s799_s30  ;;  %s887_s8 = smov [#allocation10]  }
  0x9c   : > { %v346_v20 = vadd.f32 %v1158_v5, %v323_v9  ;;  %v347_v21 = vadd.f32 %v1158_v5, %v324_v10  ;;  %v348_v26 = vadd.f32 %v1158_v5, %v325_v16  ;;  %v349_v27 = vadd.f32 %v1158_v5, %v326_v17  ;;  %v369_v38 = vld [vmem:[%s1140_s14 + $0x38] sm:$0xff]  ;;  %v602_v39 = vld [vmem:[%s1130_s20 + $0x28] sm:$0xff]   ;;  %v603_v44 = vld [vmem:[%s1130_s20 + $0x30] sm:$0xff]   ;;  %s803_s12 = sshll.u32 %s887_s8, 4  ;;  %s804_s12 = int_to_ptr.vmem [resolvable:$false] %s803_s12 }
  0x9d   : > { %v329_v30 = vmul.f32 %v580_v18, %v1155_v1  ;;  %v330_v31 = vmul.f32 %v581_v19, %v1155_v1  ;;  %v350_v35 = vadd.f32 %v1158_v5, %v327_v24  ;;  %v351_v36 = vadd.f32 %v1158_v5, %v328_v25  ;;  %v604_v49 = vld [vmem:[%s1130_s20 + $0x38] sm:$0xff]   ;;  %v370_v58 = vld [vmem:[%s1140_s14 + $0x40] sm:$0xff]  ;;  %v371_v59 = vld [vmem:[%s1140_s14 + $0x48] sm:$0xff]  ;;  %p801_p13 = pnand %p800_p9, %p1314_p11  ;;  %s805_s2 = scalar_lea.vmem %s804_s12, 4096 }
  0x9e   : > { %v378_v33 = vadd.f32 %v362_v14, %v346_v20  ;;  %v379_v34 = vadd.f32 %v363_v15, %v347_v21  ;;  %v380_v40 = vadd.f32 %v364_v22, %v348_v26  ;;  %v381_v41 = vadd.f32 %v365_v23, %v349_v27  ;;  %v372_v3 = vld [vmem:[%s1140_s14 + $0x50] sm:$0xff]  ;;  %v373_v4 = vld [vmem:[%s1140_s14 + $0x58] sm:$0xff]  ;;  %v374_v10 = vld [vmem:[%s1140_s14 + $0x60] sm:$0xff]  ;;  %p806_p12 = scmp.lt.s32.totalorder %s1235_s22, %s804_s12  ;;  %p807_p3 = scmp.lt.s32.totalorder %s805_s2, %s799_s30 }
  0x9f   : > { %v352_v42 = vadd.f32 %v1158_v5, %v329_v30  ;;  %v353_v43 = vadd.f32 %v1158_v5, %v330_v31  ;;  %v382_v45 = vadd.f32 %v366_v28, %v350_v35  ;;  %v383_v46 = vadd.f32 %v367_v29, %v351_v36  ;;  %v375_v11 = vld [vmem:[%s1140_s14 + $0x68] sm:$0xff]  ;;  %v376_v18 = vld [vmem:[%s1140_s14 + $0x70] sm:$0xff]  ;;  %v377_v19 = vld [vmem:[%s1140_s14 + $0x78] sm:$0xff]  ;;  %p802_p1 = pneg %p801_p13 }
  0xa0   : > { %394 = vst [vmem:[%s1191_s26] sm:$0xff] %v378_v33  ;;  %395 = vst [vmem:[%s1191_s26 + $0x8] sm:$0xff] %v379_v34  ;;  %v584_v47 = vunpack.c.l.bf16 %v601_v32  ;;  %v585_v48 = vunpack.c.h.bf16 %v601_v32  ;;  %v588_v52 = vunpack.c.l.bf16 %v602_v39  ;;  %v589_v53 = vunpack.c.h.bf16 %v602_v39  ;;  %p808_p4 = por %p807_p3, %p806_p12 }
  0xa1   : > { %396 = vst [vmem:[%s1191_s26 + $0x10] sm:$0xff] %v380_v40  ;;  %397 = vst [vmem:[%s1191_s26 + $0x18] sm:$0xff] %v381_v41  ;;  %v384_v50 = vadd.f32 %v368_v37, %v352_v42  ;;  %v385_v51 = vadd.f32 %v369_v38, %v353_v43  ;;  %v592_v56 = vunpack.c.l.bf16 %v603_v44  ;;  %v593_v57 = vunpack.c.h.bf16 %v603_v44 }
  0xa2   : > { %398 = vst [vmem:[%s1191_s26 + $0x20] sm:$0xff] %v382_v45  ;;  %399 = vst [vmem:[%s1191_s26 + $0x28] sm:$0xff] %v383_v46  ;;  %v331_v54 = vmul.f32 %v584_v47, %v1155_v1  ;;  %v332_v55 = vmul.f32 %v585_v48, %v1155_v1  ;;  %v333_v60 = vmul.f32 %v588_v52, %v1155_v1  ;;  %v596_v62 = vunpack.c.l.bf16 %v604_v49  ;;  %p809_p5 = pnand %p808_p4, %p802_p1 }
  0xa3   : > { %400 = vst [vmem:[%s1191_s26 + $0x30] sm:$0xff] %v384_v50  ;;  %401 = vst [vmem:[%s1191_s26 + $0x38] sm:$0xff] %v385_v51  ;;  %v334_v61 = vmul.f32 %v589_v53, %v1155_v1  ;;  %v597_v63 = vunpack.c.h.bf16 %v604_v49  ;;  %v335_v6 = vmul.f32 %v592_v56, %v1155_v1  ;;  %v336_v7 = vmul.f32 %v593_v57, %v1155_v1 }
  0xa4   : > { %v354_v0 = vadd.f32 %v1158_v5, %v331_v54  ;;  %v355_v2 = vadd.f32 %v1158_v5, %v332_v55  ;;  %v356_v8 = vadd.f32 %v1158_v5, %v333_v60  ;;  %v337_v12 = vmul.f32 %v596_v62, %v1155_v1 }
  0xa5   : > { %v357_v9 = vadd.f32 %v1158_v5, %v334_v61  ;;  %v338_v13 = vmul.f32 %v597_v63, %v1155_v1  ;;  %v358_v16 = vadd.f32 %v1158_v5, %v335_v6  ;;  %v359_v17 = vadd.f32 %v1158_v5, %v336_v7 }
  0xa6   : > { %v386_v14 = vadd.f32 %v370_v58, %v354_v0  ;;  %v387_v15 = vadd.f32 %v371_v59, %v355_v2  ;;  %v388_v20 = vadd.f32 %v372_v3, %v356_v8  ;;  %v360_v1 = vadd.f32 %v1158_v5, %v337_v12 }
  0xa7   : > { %v389_v21 = vadd.f32 %v373_v4, %v357_v9  ;;  %v361_v22 = vadd.f32 %v1158_v5, %v338_v13  ;;  %v390_v23 = vadd.f32 %v374_v10, %v358_v16  ;;  %v391_v24 = vadd.f32 %v375_v11, %v359_v17 }
  0xa8   : > { %402 = vst [vmem:[%s1191_s26 + $0x40] sm:$0xff] %v386_v14  ;;  %403 = vst [vmem:[%s1191_s26 + $0x48] sm:$0xff] %v387_v15  ;;  %v392_v25 = vadd.f32 %v376_v18, %v360_v1 }
  0xa9   : > { %404 = vst [vmem:[%s1191_s26 + $0x50] sm:$0xff] %v388_v20  ;;  %405 = vst [vmem:[%s1191_s26 + $0x58] sm:$0xff] %v389_v21  ;;  %v393_v26 = vadd.f32 %v377_v19, %v361_v22 }
  0xaa   : > { %406 = vst [vmem:[%s1191_s26 + $0x60] sm:$0xff] %v390_v23  ;;  %407 = vst [vmem:[%s1191_s26 + $0x68] sm:$0xff] %v391_v24 }
  0xab   : > { %408 = vst [vmem:[%s1191_s26 + $0x70] sm:$0xff] %v392_v25  ;;  %409 = vst [vmem:[%s1191_s26 + $0x78] sm:$0xff] %v393_v26 }
  0xac   : > { %812 = shalt.err (!%p809_p5)
}
  0xad   : > { %s813_s13 = scalar_lea.hbm %s1233_s25, 2048  ;;  %s817_s20 = scalar_lea.hbm %s1289_s4, 4096 }
  0xae   : > { %p814_p6 = scmp.ne.s32.totalorder %s1233_s25, %s813_s13  ;;  %p818_p10 = scmp.lt.u32.totalorder %s1233_s25, %s1289_s4 }
  0xaf   : > { %p819_p2 = scmp.lt.u32.totalorder %s817_s20, %s813_s13  ;;  %p821_p9 = scmp.lt.u32.totalorder %s813_s13, %s1233_s25 }
  0xb0   : > { %p815_p8 = pnand %p814_p6, %p1314_p11 }
  0xb1   : > { %p820_p0 = por %p819_p2, %p818_p10 }
  0xb2   : > { %p816_p7 = pneg %p815_p8 }
  0xb3   : > { %p822_p13 = por %p821_p9, %p820_p0 }
  0xb5   : > { %p823_p1 = pnand %p822_p13, %p816_p7 }
  0xb7   : > { %826 = shalt.err (!%p823_p1)
}
  0xb8   : > { %s888_s7 = smov 128   ;;  %s889_s14 = smov 8  }
  0xb9   : > { %617 = dma.vmem_to_hbm [thread:$0]  (%p1314_p11), %s1235_s22, 2048, %s1233_s25, %s411_s23, %s888_s7, %s888_s7, %s889_s14  }
  0xba PF: > { %s439_s26 = sand.u32 1, %s865_s15   ;;  %p1315_p12 = scmp.ne.s32.totalorder %s1300_s28, 0 }
  0xbb   : > { %p1316_p3 = scmp.ge.s32.totalorder %s877_s18, 2  ;;  %s440_s9 = scalar_lea.sflag [#allocation4], %s439_s26 }
  0xbd   : > { %p634_p4 = pnand %p1316_p3, %p1315_p12 }
  0xbf   : > { %860 = dma.done.wait (!%p634_p4), %s440_s9, 2048  }
  0xc0   : > { %862 = vsyncadd (!%p634_p4), %s440_s9, 4294965248  ;;  %p21_p5 = scmp.ge.s32.totalorder %s940_s21, 4   ;;  %s1317_s15 = smov %s869_s16 }
  0xc1   : > { %s1318_s16 = smov %s873_s17  ;;  %s1319_s17 = smov %s952_s24 }
  0xc2   : > { %s1320_s18 = smov %s940_s21  ;;  %23 = sbr.rel (!%p21_p5) target bundleno = 11 (0xb), region = 102 }
  0xc9   :  { %445 = vsyncpa [#allocation3], 1 }
  0xca   :  { %447 = vsyncpa [#allocation3 + $0x1], 1 }
  0xcb   :  { %448 = vsyncpa [#allocation6], 1 }
  0xcc   :  { %450 = vsyncpa [#allocation6 + $0x1], 1 }
  0xcd   :  { %451 = vsyncpa [#allocation9], 1 }
  0xce   :  { %452 = vsyncpa [#allocation4], 1 }
  0xcf   :  { %454 = vsyncpa [#allocation4 + $0x1], 1 }

// kernel: residual_block.4
= control target key start
LH: loop header
LB: loop body
LE: loop exit
PB: predicated region body
PF: predicated region fallthrough
CT: control target
= control target key end

     0   :  { %s5305_s0 = inlined_call_operand.hbm [shape: bf16[256,128], index: 0, kind: input, shape index: {}, may-alias: {0,1,2}]   ;;  %s5306_s1 = inlined_call_operand.hbm [shape: bf16[256,128], index: 1, kind: input, shape index: {}, may-alias: {0,1,2}]   ;;  %s5307_s2 = inlined_call_operand.hbm [shape: bf16[256,128], index: 2, kind: input, shape index: {}, may-alias: {0,1,2}]   ;;  %s5308_s3 = inlined_call_operand.hbm [shape: f32[256,1], index: 3, kind: input, shape index: {}, may-alias: {3,4,5}]   ;;  %s5309_s4 = inlined_call_operand.hbm [shape: f32[256,1], index: 4, kind: input, shape index: {}, may-alias: {3,4,5}]   ;;  %s5310_s5 = inlined_call_operand.hbm [shape: f32[256,1], index: 5, kind: input, shape index: {}, may-alias: {3,4,5}]   ;;  %s5311_s6 = inlined_call_operand.hbm [shape: f32[1,128], index: 6, kind: input, shape index: {}]   ;;  %s5312_s7 = inlined_call_operand.hbm [shape: f32[1,128], index: 7, kind: input, shape index: {}]   ;;  %s5313_s8 = inlined_call_operand.hbm [shape: bf16[1,9,128,128], index: 8, kind: input, shape index: {}]   ;;  %s5314_s9 = inlined_call_operand.hbm [shape: f32[1,128], index: 9, kind: input, shape index: {}]   ;;  %s5315_s10 = inlined_call_operand.hbm [shape: bf16[256,128], index: 10, kind: output, shape index: {0}]   ;;  %s5316_s11 = inlined_call_operand.hbm [shape: f32[32,128], index: 11, kind: output, shape index: {1}]  }
   0x1   :  { %5360 = sst [smem:[#allocation49_spill]] %s5306_s1 }
   0x2   :  { %5361 = sst [smem:[#allocation50_spill]] %s5307_s2 }
   0x3   :  { %5362 = sst [smem:[#allocation51_spill]] %s5308_s3 }
   0x4   :  { %5363 = sst [smem:[#allocation52_spill]] %s5309_s4 }
   0x5   :  { %5364 = sst [smem:[#allocation53_spill]] %s5310_s5 }
   0x6   :  { %5365 = sst [smem:[#allocation54_spill]] %s5311_s6 }
   0x7   :  { %5366 = sst [smem:[#allocation55_spill]] %s5312_s7 }
   0x8   :  { %5367 = sst [smem:[#allocation56_spill]] %s5315_s10 }
   0x9   :  { %5368 = sst [smem:[#allocation57_spill]] %s5316_s11 }
   0xa   :  { %17 = vsyncpa [#allocation4], 0 }
   0xb   :  { %19 = vsyncpa [#allocation4 + $0x1], 0 }
   0xc   :  { %20 = vsyncpa [#allocation7], 0 }
   0xd   :  { %22 = vsyncpa [#allocation7 + $0x1], 0 }
   0xe   :  { %23 = vsyncpa [#allocation10], 0 }
   0xf   :  { %25 = vsyncpa [#allocation10 + $0x1], 0 }
  0x10   :  { %26 = vsyncpa [#allocation13], 0 }
  0x11   :  { %28 = vsyncpa [#allocation13 + $0x1], 0 }
  0x12   :  { %29 = vsyncpa [#allocation16], 0 }
  0x13   :  { %30 = vsyncpa [#allocation19], 0 }
  0x14   :  { %31 = vsyncpa [#allocation5], 0 }
  0x15   :  { %33 = vsyncpa [#allocation5 + $0x1], 0 }
  0x16   :  { %34 = vsyncpa [#allocation22], 0 }
  0x17   :  { %36 = vsyncpa [#allocation22 + $0x1], 0  ;;  %s4327_s17 = smov 0   ;;  %s4329_s18 = smov 0  }
  0x18   :  { %s4331_s19 = smov 0   ;;  %s4333_s20 = smov 0  }
  0x19   :  { %s4335_s21 = smov 0   ;;  %s4337_s22 = smov 0  }
  0x1a   :  { %s4339_s23 = smov 0   ;;  %s4341_s24 = smov 0  }
  0x1b   :  { %s4343_s25 = smov 0   ;;  %s4345_s26 = smov 0  }
  0x1c LB: > { %5369 = sst [smem:[#allocation34_spill]] %s4222_s20  ;;  %s4248_s27 = smov [#allocation14]   ;;  %s4246_s26 = sphi %s4345_s26, %s5449_s26   ;;  %s4242_s25 = sphi %s4343_s25, %s5455_s25   ;;  %s4238_s24 = sphi %s4341_s24, %s5454_s24   ;;  %s4234_s23 = sphi %s4339_s23, %s5453_s23   ;;  %s4230_s22 = sphi %s4337_s22, %s5452_s22   ;;  %s4226_s21 = sphi %s4335_s21, %s5451_s21   ;;  %s4222_s20 = sphi %s4333_s20, %s5450_s20   ;;  %s4218_s19 = sphi %s4331_s19, %s5458_s19   ;;  %s4214_s18 = sphi %s4329_s18, %s5457_s18   ;;  %s4210_s17 = sphi %s4327_s17, %s5456_s17  }
  0x1d   : > { %5370 = sst [smem:[#allocation35_spill]] %s4226_s21  ;;  %s384_s28 = sshll.u32 %s4248_s27, 4  ;;  %s385_s28 = int_to_ptr.vmem [resolvable:$true] %s384_s28 }
  0x1e   : > { %5371 = sst [smem:[#allocation36_spill]] %s4230_s22  ;;  %s4378_s29 = sadd.s32 4294967295, %s4246_s26  }
  0x1f   : > { %5372 = sst [smem:[#allocation37_spill]] %s4238_s24  ;;  %p2896_p0 = scmp.ge.s32.totalorder %s4246_s26, 1 }
  0x20   : > { %5373 = sst [smem:[#allocation38_spill]] %s4242_s25  ;;  %p5321_p1 = scmp.eq.s32.totalorder %s4378_s29, 0 }
  0x21   : > { %p371_p2 = scmp.lt.s32.totalorder %s4246_s26, 5  ;;  %s4249_s12 = smov [#allocation15]  }
  0x22   : > { %s395_s13 = sshll.u32 %s4249_s12, 4  ;;  %s5377_s6 = sld [smem:[#allocation54_spill]]  ;;  %s4389_s13 = int_to_ptr.vmem [resolvable:$true] %s395_s13 }
  0x23   : > { %p4383_p3 = pnand %p2896_p0, %p371_p2 }
  0x25   : > { %s5374_s30 = scalar_select %p4383_p3, 1, 0 }
  0x26   : > { %p3550_p4 = pneg %p4383_p3 }
  0x27   : > { %5375 = sst [smem:[#allocation39_spill]] %s5374_s30 }
  0x28   : > { %p4393_p5 = pnand %p3550_p4, %p5321_p1  ;;  %s3776_s27 = scalar_lea.hbm %s5377_s6, 16 }
  0x29   : > { %p3777_p6 = scmp.ne.s32.totalorder %s5377_s6, %s3776_s27  ;;  %p3783_p10 = scmp.lt.u32.totalorder %s3776_s27, %s5377_s6 }
  0x2a   : > { %s5376_s14 = scalar_select %p4393_p5, 1, 0 }
  0x2b   : > { %p4405_p7 = pneg %p4393_p5 }
  0x2d   : > { %p3779_p8 = pnand %p4405_p7, %p3777_p6 }
  0x2f   : > { %p3780_p9 = pneg %p3779_p8 }
  0x31   : > { %p3785_p11 = pnand %p3783_p10, %p3780_p9 }
  0x33   : > { %3788 = shalt.err (!%p3785_p11)
}
  0x34   : > { %s3789_s15 = scalar_lea.vmem %s385_s28, 16  ;;  %s3796_s10 = scalar_lea.vmem %s385_s28, 32 }
  0x35   : > { %p3790_p12 = scmp.ne.s32.totalorder %s385_s28, %s3789_s15  ;;  %p3797_p2 = scmp.lt.s32.totalorder %s385_s28, %s385_s28 }
  0x36   : > { %p3798_p4 = scmp.lt.s32.totalorder %s3796_s10, %s3789_s15 }
  0x37   : > { %p3792_p13 = pnand %p3790_p12, %p4405_p7 }
  0x38   : > { %p3799_p1 = por %p3798_p4, %p3797_p2 }
  0x39   : > { %p3793_p0 = pneg %p3792_p13 }
  0x3b   : > { %p3800_p3 = pnand %p3799_p1, %p3793_p0 }
  0x3d   : > { %3803 = shalt.err (!%p3800_p3)
}
  0x3e   : > { %3553 = dma.hbm_to_vmem [thread:$0]  (!%p4393_p5), %s5377_s6, 16, %s385_s28, [#allocation13]  }
  0x3f   : > { %s5379_s7 = sld [smem:[#allocation55_spill]] }
  0x45   : > { %s3804_s12 = scalar_lea.hbm %s5379_s7, 16 }
  0x46   : > { %p3805_p6 = scmp.ne.s32.totalorder %s5379_s7, %s3804_s12  ;;  %p3811_p1 = scmp.lt.u32.totalorder %s3804_s12, %s5379_s7 }
  0x48   : > { %p3807_p8 = pnand %p3805_p6, %p4405_p7 }
  0x4a   : > { %p3808_p9 = pneg %p3807_p8 }
  0x4c   : > { %p3813_p3 = pnand %p3811_p1, %p3808_p9 }
  0x4e   : > { %3816 = shalt.err (!%p3813_p3)
}
  0x4f   : > { %s3817_s28 = scalar_lea.vmem %s4389_s13, 16  ;;  %s3824_s2 = scalar_lea.vmem %s4389_s13, 32 }
  0x50   : > { %p3818_p10 = scmp.ne.s32.totalorder %s4389_s13, %s3817_s28  ;;  %p3825_p13 = scmp.lt.s32.totalorder %s4389_s13, %s4389_s13 }
  0x51   : > { %p3826_p0 = scmp.lt.s32.totalorder %s3824_s2, %s3817_s28 }
  0x52   : > { %p3820_p11 = pnand %p3818_p10, %p4405_p7 }
  0x53   : > { %p3827_p2 = por %p3826_p0, %p3825_p13 }
  0x54   : > { %p3821_p12 = pneg %p3820_p11 }
  0x56   : > { %p3828_p4 = pnand %p3827_p2, %p3821_p12 }
  0x58   : > { %3831 = shalt.err (!%p3828_p4)
}
  0x59   : > { %3556 = dma.hbm_to_vmem [thread:$0]  (!%p4393_p5), %s5379_s7, 16, %s4389_s13, [#allocation16]  }
  0x5a   : > { %s2883_s16 = sadd.s32 4294967294, %s4246_s26   ;;  %s4447_s5 = sadd.s32 1, %s4246_s26  }
  0x5b   : > { %5380 = sst [smem:[#allocation40_spill]] %s4447_s5  ;;  %p5331_p6 = scmp.eq.s32.totalorder %s4246_s26, 0 }
  0x5c   : > { %s80_s27 = ssub.s32 %s4246_s26, %s4447_s5  ;;  %s83_s12 = sadd.s32 1, %s4230_s22 }
  0x5d   : > { %p81_p8 = scmp.eq.s32.totalorder %s80_s27, 0  ;;  %p90_p9 = scmp.ne.s32.totalorder %s4230_s22, %s4226_s21 }
  0x5e   : > { %p96_p1 = scmp.ne.s32.totalorder %s4226_s21, %s4222_s20  ;;  %p5383_p10 = scmp.eq.s32.totalorder %s4378_s29, 0 }
  0x5f   : > { %s4458_s15 = scalar_select %p81_p8, %s4230_s22, %s83_s12  }
  0x60   : > { %p4462_p3 = por %p90_p9, %p5331_p6  ;;  %p4468_p11 = por %p96_p1, %p5383_p10 }
  0x61   : > { %5381 = sst [smem:[#allocation41_spill]] %s4458_s15  ;;  %p332_p12 = scmp.eq.s32.totalorder %s4378_s29, 3 }
  0x62   : > { %s5384_s10 = scalar_select %p4468_p11, 1, 0 }
  0x63   : > { %p338_p13 = scmp.eq.s32.totalorder %s2883_s16, 3  ;;  %p4473_p0 = por %p332_p12, %p90_p9 }
  0x64   : > { %5385 = sst [smem:[#allocation42_spill]] %s5384_s10  ;;  %p5330_p4 = scmp.lt.s32.totalorder %s4246_s26, 4 }
  0x65   : > { %s5386_s28 = scalar_select %p4473_p0, 1, 0 }
  0x66   : > { %p4477_p2 = por %p338_p13, %p96_p1  ;;  %s4483_s4 = sand.u32 1, %s4246_s26  }
  0x67   : > { %5387 = sst [smem:[#allocation43_spill]] %s5386_s28  ;;  %s457_s11 = sand.u32 1, %s4230_s22  }
  0x68   : > { %s5388_s2 = scalar_select %p4477_p2, 1, 0 }
  0x69   : > { %s2907_s27 = sshll.u32 %s457_s11, 5  ;;  %s3042_s12 = sshll.u32 %s4246_s26, 9 }
  0x6a   : > { %5389 = sst [smem:[#allocation44_spill]] %s5388_s2  ;;  %s5390_s1 = sld [smem:[#allocation49_spill]] }
  0x6b   : > { %s459_s16 = scalar_lea.vmem [#allocation6], %s2907_s27  ;;  %p4496_p8 = pnand %p5330_p4, %p4462_p3 }
  0x6c   : > { %s466_s5 = sshll.u32 %s459_s16, 4  ;;  %s4502_s22 = sshll.u32 %s457_s11, 6  ;;  %s4500_s5 = int_to_ptr.vmem [resolvable:$true] %s466_s5 }
  0x6d   : > { %s5391_s2 = scalar_select %p4496_p8, 1, 0 }
  0x6e   : > { %s5338_s6 = scalar_lea.sflag [#allocation7], %s4483_s4  ;;  %p5346_p1 = pneg %p4496_p8 }
  0x6f   : > { %5392 = sst [smem:[#allocation45_spill]] %s5391_s2 }
  0x70   : > { %s4490_s15 = scalar_lea.hbm %s5390_s1, %s3042_s12  ;;  %s3837_s12 = scalar_lea.hbm %s5390_s1, 2048 }
  0x71   : > { %s3832_s7 = scalar_lea.hbm %s4490_s15, 512  ;;  %p3838_p3 = scmp.lt.u32.totalorder %s4490_s15, %s5390_s1 }
  0x72   : > { %p3833_p9 = scmp.ne.s32.totalorder %s4490_s15, %s3832_s7  ;;  %p3839_p13 = scmp.lt.u32.totalorder %s3837_s12, %s3832_s7 }
  0x73   : > { %p3841_p6 = scmp.lt.u32.totalorder %s3832_s7, %s4490_s15 }
  0x74   : > { %p3835_p10 = pnand %p5346_p1, %p3833_p9  ;;  %p3840_p4 = por %p3839_p13, %p3838_p3 }
  0x76   : > { %p3836_p12 = pneg %p3835_p10  ;;  %p3842_p2 = por %p3841_p6, %p3840_p4 }
  0x78   : > { %p3843_p0 = pnand %p3842_p2, %p3836_p12 }
  0x7a   : > { %3846 = shalt.err (!%p3843_p0)
}
  0x7b   : > { %s3847_s11 = scalar_lea.vmem %s4500_s5, 512  ;;  %s4250_s13 = smov [#allocation6]  }
  0x7c   : > { %p3848_p9 = scmp.ne.s32.totalorder %s4500_s5, %s3847_s11  ;;  %s3852_s27 = sshll.u32 %s4250_s13, 4  ;;  %s3853_s27 = int_to_ptr.vmem [resolvable:$false] %s3852_s27 }
  0x7d   : > { %s3854_s20 = scalar_lea.vmem %s3853_s27, 1024  ;;  %p3855_p5 = scmp.lt.s32.totalorder %s4500_s5, %s3853_s27 }
  0x7e   : > { %p3850_p10 = pnand %p3848_p9, %p5346_p1  ;;  %p3856_p3 = scmp.lt.s32.totalorder %s3854_s20, %s3847_s11 }
  0x80   : > { %p3851_p11 = pneg %p3850_p10  ;;  %p3857_p13 = por %p3856_p3, %p3855_p5 }
  0x82   : > { %p3858_p6 = pnand %p3857_p13, %p3851_p11 }
  0x84   : > { %3861 = shalt.err (!%p3858_p6)
}
  0x85   : > { %s5339_s7 = smov 64   ;;  %s5341_s12 = smov 4  }
  0x86   : > { %3569 = dma.hbm_to_vmem [thread:$0]  (!%p4496_p8), %s4490_s15, 512, %s4500_s5, %s5338_s6, %s5339_s7, %s5339_s7, %s5341_s12  }
  0x87   : > { %s530_s16 = scalar_lea.vmem [#allocation11], %s4502_s22  ;;  %s2884_s13 = sshll.u32 %s4246_s26, 2 }
  0x88   : > { %s4536_s11 = sshll.u32 %s530_s16, 4  ;;  %s2885_s27 = sadd.s32 4294967295, %s2884_s13 }
  0x89   : > { %5393 = sst [smem:[#allocation46_spill]] %s4536_s11  ;;  %s4539_s20 = sadd.s32 4, %s2884_s13 }
  0x8a   : > { %p48_p5 = scmp.gt.s32.totalorder %s2885_s27, 0  ;;  %s2887_s1 = sadd.s32 4294967295, %s4539_s20 }
  0x8b   : > { %p52_p11 = scmp.gt.s32.totalorder %s2887_s1, 0  ;;  %s57_s28 = sadd.s32 1, %s4242_s25 }
  0x8c   : > { %s5460_s27 = smov (!%p48_p5, %s2885_s27), 0  ;;  %p64_p0 = scmp.ne.s32.totalorder %s4242_s25, %s4238_s24 }
  0x8d   : > { %s5462_s1 = smov (!%p52_p11, %s2887_s1), 0  ;;  %p70_p2 = scmp.ne.s32.totalorder %s4238_s24, %s4234_s23 }
  0x8e   : > { %s54_s22 = ssub.s32 %s5460_s27, %s5462_s1  ;;  %s3034_s5 = sadd.s32 4, %s4539_s20 }
  0x8f   : > { %p55_p4 = scmp.eq.s32.totalorder %s54_s22, 0  ;;  %p5394_p12 = scmp.eq.s32.totalorder %s4246_s26, 0 }
  0x90   : > { %p5395_p10 = scmp.eq.s32.totalorder %s4378_s29, 0  ;;  %p112_p13 = scmp.lt.s32.totalorder %s3034_s5, 15 }
  0x91   : > { %p66_p9 = por %p5394_p12, %p64_p0  ;;  %s4565_s13 = sand.u32 1, %s4242_s25  }
  0x92   : > { %p4555_p3 = por %p5395_p10, %p70_p2  ;;  %s5464_s5 = smov (!%p112_p13, %s3034_s5), 15 }
  0x93   : > { %s4560_s16 = scalar_select %p55_p4, %s4242_s25, %s57_s28  }
  0x94   : > { %s5396_s15 = scalar_select %p4555_p3, 1, 0 }
  0x95   : > { %5398 = sst [smem:[#allocation48_spill]] %s4560_s16  ;;  %p5399_p6 = scmp.lt.s32.totalorder %s4246_s26, 4 }
  0x96   : > { %5397 = sst [smem:[#allocation47_spill]] %s5396_s15  ;;  %s2914_s23 = sshll.u32 %s4565_s13, 4 }
  0x97   : > { %p4569_p5 = pnand %p5399_p6, %p66_p9  ;;  %s3046_s22 = sshll.u32 %s5460_s27, 8 }
  0x98   : > { %s505_s6 = scalar_lea.vmem [#allocation9], %s2914_s23  ;;  %s5401_s3 = sld [smem:[#allocation51_spill]] }
  0x99   : > { %s516_s7 = sshll.u32 %s505_s6, 4  ;;  %p5356_p0 = pneg %p4569_p5  ;;  %s4580_s7 = int_to_ptr.vmem [resolvable:$true] %s516_s7 }
  0x9e   : > { %s4578_s28 = scalar_lea.hbm %s5401_s3, %s3046_s22  ;;  %s3867_s10 = scalar_lea.hbm %s5401_s3, 4096 }
  0x9f   : > { %s3862_s25 = scalar_lea.hbm %s4578_s28, 256  ;;  %p3868_p12 = scmp.lt.u32.totalorder %s4578_s28, %s5401_s3 }
  0xa0   : > { %p3863_p11 = scmp.ne.s32.totalorder %s4578_s28, %s3862_s25  ;;  %p3869_p9 = scmp.lt.u32.totalorder %s3867_s10, %s3862_s25 }
  0xa1   : > { %p3871_p13 = scmp.lt.u32.totalorder %s3862_s25, %s4578_s28 }
  0xa2   : > { %p3865_p2 = pnand %p5356_p0, %p3863_p11  ;;  %p3870_p10 = por %p3869_p9, %p3868_p12 }
  0xa4   : > { %p3866_p4 = pneg %p3865_p2  ;;  %p3872_p6 = por %p3871_p13, %p3870_p10 }
  0xa6   : > { %p3873_p1 = pnand %p3872_p6, %p3866_p4 }
  0xa8   : > { %3876 = shalt.err (!%p3873_p1)
}
  0xa9   : > { %s3877_s16 = scalar_lea.vmem %s4580_s7, 256  ;;  %s4253_s6 = smov [#allocation9]  }
  0xaa   : > { %p3878_p11 = scmp.ne.s32.totalorder %s4580_s7, %s3877_s16  ;;  %s3882_s23 = sshll.u32 %s4253_s6, 4  ;;  %s3883_s23 = int_to_ptr.vmem [resolvable:$false] %s3882_s23 }
  0xab   : > { %s3884_s12 = scalar_lea.vmem %s3883_s23, 512  ;;  %p3885_p8 = scmp.lt.s32.totalorder %s4580_s7, %s3883_s23 }
  0xac   : > { %p3880_p2 = pnand %p3878_p11, %p5356_p0  ;;  %p3886_p12 = scmp.lt.s32.totalorder %s3884_s12, %s3877_s16 }
  0xae   : > { %p3881_p3 = pneg %p3880_p2  ;;  %p3887_p9 = por %p3886_p12, %p3885_p8 }
  0xb0   : > { %p3888_p10 = pnand %p3887_p9, %p3881_p3 }
  0xb2   : > { %3891 = shalt.err (!%p3888_p10)
}
  0xb3   : > { %s4254_s25 = smov 128   ;;  %s4255_s10 = smov 8  }
  0xb4   : > { %s5402_s22 = scalar_lea.sflag [#allocation10], %s4483_s4  ;;  %s4256_s6 = smov [#allocation17]  }
  0xb5   : > { %3575 = dma.hbm_to_vmem [thread:$0]  (!%p4569_p5), %s4578_s28, 256, %s4580_s7, %s5402_s22, %s4254_s25, %s4254_s25, %s4255_s10  }
  0xb6   : > { %s405_s3 = sshll.u32 %s4256_s6, 4  ;;  %s4257_s23 = smov [#allocation18]   ;;  %s406_s3 = int_to_ptr.vmem [resolvable:$true] %s405_s3 }
  0xb7   : > { %s419_s16 = sshll.u32 %s4257_s23, 4  ;;  %s3892_s15 = scalar_lea.hbm %s5313_s8, 9216  ;;  %s4613_s16 = int_to_ptr.vmem [resolvable:$true] %s419_s16 }
  0xb8   : > { %p3893_p8 = scmp.ne.s32.totalorder %s5313_s8, %s3892_s15  ;;  %p3899_p4 = scmp.lt.u32.totalorder %s3892_s15, %s5313_s8 }
  0xba   : > { %p3895_p1 = pnand %p3893_p8, %p4405_p7 }
  0xbc   : > { %p3896_p3 = pneg %p3895_p1 }
  0xbe   : > { %p3901_p13 = pnand %p3899_p4, %p3896_p3 }
  0xc0   : > { %3904 = shalt.err (!%p3901_p13)
}
  0xc1   : > { %s3905_s28 = scalar_lea.vmem %s406_s3, 9216  ;;  %p3913_p12 = scmp.lt.s32.totalorder %s406_s3, %s406_s3 }
  0xc2   : > { %p3906_p6 = scmp.ne.s32.totalorder %s406_s3, %s3905_s28  ;;  %p3914_p9 = scmp.lt.s32.totalorder %s3905_s28, %s3905_s28 }
  0xc4   : > { %p3908_p11 = pnand %p3906_p6, %p4405_p7  ;;  %p3915_p10 = por %p3914_p9, %p3913_p12 }
  0xc6   : > { %p3909_p2 = pneg %p3908_p11 }
  0xc8   : > { %p3916_p0 = pnand %p3915_p10, %p3909_p2 }
  0xca   : > { %3919 = shalt.err (!%p3916_p0)
}
  0xcb   : > { %p5403_p8 = scmp.ne.s32.totalorder %s5376_s14, 0  ;;  %s5404_s21 = smov 4  }
  0xcc   : > { %s5405_s24 = smov 64   ;;  %s3920_s6 = scalar_lea.hbm %s5314_s9, 16 }
  0xcd   : > { %3559 = dma.hbm_to_vmem [thread:$0]  (!%p5403_p8), %s5313_s8, 9216, %s406_s3, [#allocation16], %s5405_s24, %s5405_s24, %s5404_s21  }
  0xce   : > { %p3921_p1 = scmp.ne.s32.totalorder %s5314_s9, %s3920_s6  ;;  %p3927_p4 = scmp.lt.u32.totalorder %s3920_s6, %s5314_s9 }
  0xd0   : > { %p3923_p0 = pnand %p3921_p1, %p4405_p7 }
  0xd2   : > { %p3924_p3 = pneg %p3923_p0 }
  0xd4   : > { %p3929_p13 = pnand %p3927_p4, %p3924_p3 }
  0xd6   : > { %3932 = shalt.err (!%p3929_p13)
}
  0xd7   : > { %s3933_s3 = scalar_lea.vmem %s4613_s16, 16  ;;  %s3940_s2 = scalar_lea.vmem %s4613_s16, 32 }
  0xd8   : > { %p3934_p6 = scmp.ne.s32.totalorder %s4613_s16, %s3933_s3  ;;  %p3941_p12 = scmp.lt.s32.totalorder %s4613_s16, %s4613_s16 }
  0xd9   : > { %p3942_p9 = scmp.lt.s32.totalorder %s3940_s2, %s3933_s3 }
  0xda   : > { %p3936_p11 = pnand %p3934_p6, %p4405_p7 }
  0xdb   : > { %p3943_p10 = por %p3942_p9, %p3941_p12 }
  0xdc   : > { %p3937_p2 = pneg %p3936_p11 }
  0xde   : > { %p3944_p1 = pnand %p3943_p10, %p3937_p2 }
  0xe0   : > { %3947 = shalt.err (!%p3944_p1)
}
  0xe1   : > { %3562 = dma.hbm_to_vmem [thread:$0]  (!%p5403_p8), %s5314_s9, 16, %s4613_s16, [#allocation19]  }
  0xe2   : > { %s2902_s30 = sshll.u32 %s4565_s13, 3  ;;  %s3041_s22 = sshll.u32 %s5460_s27, 7 }
  0xe3   : > { %s4665_s12 = scalar_lea.hbm %s5305_s0, %s3041_s22  ;;  %s434_s14 = scalar_lea.vmem [#allocation3], %s2902_s30 }
  0xe4   : > { %s445_s7 = sshll.u32 %s434_s14, 4  ;;  %s431_s28 = scalar_lea.sflag [#allocation4], %s4565_s13  ;;  %s4667_s7 = int_to_ptr.vmem [resolvable:$true] %s445_s7 }
  0xe5   : > { %s3948_s3 = scalar_lea.hbm %s4665_s12, 128  ;;  %p5406_p8 = pneg %p4569_p5 }
  0xe6   : > { %p3949_p7 = scmp.ne.s32.totalorder %s4665_s12, %s3948_s3  ;;  %s3953_s2 = scalar_lea.hbm %s5305_s0, 2048 }
  0xe7   : > { %p3954_p4 = scmp.lt.u32.totalorder %s4665_s12, %s5305_s0  ;;  %p3955_p13 = scmp.lt.u32.totalorder %s3953_s2, %s3948_s3 }
  0xe8   : > { %p3951_p0 = pnand %p3949_p7, %p5406_p8  ;;  %p3957_p11 = scmp.lt.u32.totalorder %s3948_s3, %s4665_s12 }
  0xe9   : > { %p3956_p6 = por %p3955_p13, %p3954_p4 }
  0xea   : > { %p3952_p3 = pneg %p3951_p0 }
  0xeb   : > { %p3958_p2 = por %p3957_p11, %p3956_p6 }
  0xed   : > { %p3959_p12 = pnand %p3958_p2, %p3952_p3 }
  0xef   : > { %3962 = shalt.err (!%p3959_p12)
}
  0xf0   : > { %s3963_s30 = scalar_lea.vmem %s4667_s7, 128  ;;  %p5407_p10 = pmov %p5406_p8 }
  0xf1   : > { %p3964_p9 = scmp.ne.s32.totalorder %s4667_s7, %s3963_s30  ;;  %s4258_s22 = smov [#allocation3]  }
  0xf2   : > { %s3968_s6 = sshll.u32 %s4258_s22, 4  ;;  %s3969_s6 = int_to_ptr.vmem [resolvable:$false] %s3968_s6 }
  0xf3   : > { %p3966_p1 = pnand %p3964_p9, %p5407_p10  ;;  %s3970_s23 = scalar_lea.vmem %s3969_s6, 256 }
  0xf4   : > { %p3971_p8 = scmp.lt.s32.totalorder %s4667_s7, %s3969_s6  ;;  %p3972_p0 = scmp.lt.s32.totalorder %s3970_s23, %s3963_s30 }
  0xf5   : > { %p3967_p7 = pneg %p3966_p1 }
  0xf6   : > { %p3973_p4 = por %p3972_p0, %p3971_p8 }
  0xf8   : > { %p3974_p13 = pnand %p3973_p4, %p3967_p7 }
  0xfa   : > { %3977 = shalt.err (!%p3974_p13)
}
  0xfb   : > { %3566 = dma.hbm_to_vmem [thread:$0]  (!%p4569_p5), %s4665_s12, 128, %s4667_s7, %s431_s28, %s5405_s24, %s5405_s24, %s5404_s21  }
  0xfc   : > { %p108_p3 = scmp.lt.s32.totalorder %s4539_s20, 15  ;;  %s117_s1 = sadd.s32 1, %s4218_s19 }
  0xfd   : > { %p124_p6 = scmp.ne.s32.totalorder %s4218_s19, %s4214_s18  ;;  %p5408_p11 = scmp.eq.s32.totalorder %s4246_s26, 0 }
  0xfe   : > { %s5466_s20 = smov (!%p108_p3, %s4539_s20), 15  ;;  %p130_p12 = scmp.ne.s32.totalorder %s4214_s18, %s4210_s17 }
  0xff   : > { %p126_p2 = por %p124_p6, %p5408_p11  ;;  %s114_s13 = ssub.s32 %s5466_s20, %s5464_s5 }
 0x100   : > { %s5357_s14 = sand.u32 1, %s4218_s19   ;;  %p115_p9 = scmp.eq.s32.totalorder %s114_s13, 0 }
 0x101   : > { %p5409_p10 = scmp.eq.s32.totalorder %s4378_s29, 0  ;;  %s2910_s12 = sshll.u32 %s5357_s14, 3 }
 0x102   : > { %s3045_s7 = sshll.u32 %s5466_s20, 7  ;;  %s5411_s2 = sld [smem:[#allocation50_spill]] }
 0x103   : > { %p4714_p1 = por %p130_p12, %p5409_p10  ;;  %s480_s17 = scalar_lea.vmem [#allocation8], %s2910_s12 }
 0x104   : > { %s4722_s28 = scalar_select %p115_p9, %s4218_s19, %s117_s1  }
 0x105   : > { %s5410_s3 = scalar_select %p4714_p1, 1, 0 }
 0x106   : > { %s491_s5 = sshll.u32 %s480_s17, 4  ;;  %p5412_p5 = scmp.lt.s32.totalorder %s4246_s26, 4  ;;  %s4735_s5 = int_to_ptr.vmem [resolvable:$true] %s491_s5 }
 0x107   : > { %s3047_s30 = sshll.u32 %s4246_s26, 10  ;;  %s5414_s23 = sld [smem:[#allocation52_spill]] }
 0x108   : > { %s4727_s11 = scalar_lea.hbm %s5411_s2, %s3045_s7  ;;  %p4731_p7 = pnand %p5412_p5, %p126_p2 }
 0x109   : > { %s3978_s7 = scalar_lea.hbm %s4727_s11, 128  ;;  %s3983_s16 = scalar_lea.hbm %s5411_s2, 2048 }
 0x10a   : > { %p3979_p8 = scmp.ne.s32.totalorder %s4727_s11, %s3978_s7  ;;  %p5358_p0 = pneg %p4731_p7 }
 0x10b   : > { %p3984_p3 = scmp.lt.u32.totalorder %s4727_s11, %s5411_s2  ;;  %p3985_p6 = scmp.lt.u32.totalorder %s3983_s16, %s3978_s7 }
 0x10c   : > { %p3981_p4 = pnand %p5358_p0, %p3979_p8  ;;  %p3987_p2 = scmp.lt.u32.totalorder %s3978_s7, %s4727_s11 }
 0x10d   : > { %s5415_s1 = smov %s5414_s23  ;;  %s4741_s13 = scalar_lea.hbm %s5414_s23, %s3047_s30 }
 0x10e   : > { %p3982_p13 = pneg %p3981_p4  ;;  %p3986_p11 = por %p3985_p6, %p3984_p3 }
 0x110   : > { %p3988_p12 = por %p3987_p2, %p3986_p11 }
 0x112   : > { %p3989_p9 = pnand %p3988_p12, %p3982_p13 }
 0x114   : > { %3992 = shalt.err (!%p3989_p9)
}
 0x115   : > { %s3993_s30 = scalar_lea.vmem %s4735_s5, 128  ;;  %s4259_s22 = smov [#allocation8]  }
 0x116   : > { %p3994_p10 = scmp.ne.s32.totalorder %s4735_s5, %s3993_s30  ;;  %s3998_s6 = sshll.u32 %s4259_s22, 4  ;;  %s3999_s6 = int_to_ptr.vmem [resolvable:$false] %s3998_s6 }
 0x117   : > { %s4000_s14 = scalar_lea.vmem %s3999_s6, 256  ;;  %p4001_p4 = scmp.lt.s32.totalorder %s4735_s5, %s3999_s6 }
 0x118   : > { %p3996_p5 = pnand %p3994_p10, %p5358_p0  ;;  %p4002_p3 = scmp.lt.s32.totalorder %s4000_s14, %s3993_s30 }
 0x11a   : > { %p3997_p8 = pneg %p3996_p5  ;;  %p4003_p6 = por %p4002_p3, %p4001_p4 }
 0x11c   : > { %p4004_p11 = pnand %p4003_p6, %p3997_p8 }
 0x11e   : > { %4007 = shalt.err (!%p4004_p11)
}
 0x11f   : > { %s5416_s23 = scalar_lea.sflag [#allocation7], %s4483_s4  ;;  %s5417_s7 = sld [smem:[#allocation46_spill]]  ;;  %s4774_s7 = int_to_ptr.vmem [resolvable:$true] %s5417_s7 }
 0x120   : > { %s5418_s12 = sld [smem:[#allocation45_spill]]  ;;  %s4008_s27 = scalar_lea.hbm %s4741_s13, 1024 }
 0x121   : > { %3572 = dma.hbm_to_vmem [thread:$0]  (!%p4731_p7), %s4727_s11, 128, %s4735_s5, %s5416_s23, %s5405_s24, %s5405_s24, %s5404_s21  }
 0x122   : > { %p4009_p13 = scmp.ne.s32.totalorder %s4741_s13, %s4008_s27  ;;  %s4013_s30 = scalar_lea.hbm %s5415_s1, 4096 }
 0x123   : > { %p4014_p5 = scmp.lt.u32.totalorder %s4741_s13, %s5415_s1  ;;  %p4015_p8 = scmp.lt.u32.totalorder %s4013_s30, %s4008_s27 }
 0x124   : > { %p4017_p3 = scmp.lt.u32.totalorder %s4008_s27, %s4741_s13 }
 0x125   : > { %p4016_p4 = por %p4015_p8, %p4014_p5 }
 0x126   : > { %p5419_p2 = scmp.ne.s32.totalorder %s5418_s12, 0 }
 0x127   : > { %p4018_p6 = por %p4017_p3, %p4016_p4 }
 0x128   : > { %p5420_p12 = pneg %p5419_p2 }
 0x12a   : > { %p4011_p9 = pnand %p4009_p13, %p5420_p12 }
 0x12c   : > { %p4012_p10 = pneg %p4011_p9 }
 0x12e   : > { %p4019_p11 = pnand %p4018_p6, %p4012_p10 }
 0x130   : > { %4022 = shalt.err (!%p4019_p11)
}
 0x131   : > { %s4023_s21 = scalar_lea.vmem %s4774_s7, 1024  ;;  %s4260_s24 = smov [#allocation11]  }
 0x132   : > { %p4024_p13 = scmp.ne.s32.totalorder %s4774_s7, %s4023_s21  ;;  %s4028_s11 = sshll.u32 %s4260_s24, 4  ;;  %s4029_s11 = int_to_ptr.vmem [resolvable:$false] %s4028_s11 }
 0x133   : > { %s4030_s5 = scalar_lea.vmem %s4029_s11, 2048  ;;  %p4031_p1 = scmp.lt.s32.totalorder %s4774_s7, %s4029_s11 }
 0x134   : > { %p4026_p9 = pnand %p4024_p13, %p5420_p12  ;;  %p4032_p5 = scmp.lt.s32.totalorder %s4030_s5, %s4023_s21 }
 0x136   : > { %p4027_p0 = pneg %p4026_p9  ;;  %p4033_p8 = por %p4032_p5, %p4031_p1 }
 0x138   : > { %p4034_p4 = pnand %p4033_p8, %p4027_p0 }
 0x13a   : > { %4037 = shalt.err (!%p4034_p4)
}
 0x13b   : > { %s5421_s14 = scalar_lea.sflag [#allocation10], %s4483_s4  ;;  %s5422_s23 = sand.u32 1, %s4218_s19  }
 0x13c   : > { %3578 = dma.hbm_to_vmem [thread:$0]  (!%p5419_p2), %s4741_s13, 1024, %s4774_s7, %s5421_s14, %s4254_s25, %s4254_s25, %s4255_s10  }
 0x13d   : > { %s2922_s27 = sshll.u32 %s5422_s23, 4  ;;  %s3050_s16 = sshll.u32 %s5466_s20, 8 }
 0x13e   : > { %s5423_s22 = sld [smem:[#allocation53_spill]]  ;;  %s551_s12 = scalar_lea.vmem [#allocation12], %s2922_s27 }
 0x13f   : > { %s562_s24 = sshll.u32 %s551_s12, 4  ;;  %s548_s11 = scalar_lea.sflag [#allocation13], %s4483_s4  ;;  %s4812_s24 = int_to_ptr.vmem [resolvable:$true] %s562_s24 }
 0x140   : > { %p5425_p0 = pneg %p4731_p7 }
 0x144   : > { %s5424_s6 = smov %s5423_s22  ;;  %s4810_s21 = scalar_lea.hbm %s5423_s22, %s3050_s16 }
 0x145   : > { %s4038_s5 = scalar_lea.hbm %s4810_s21, 256  ;;  %s4043_s7 = scalar_lea.hbm %s5424_s6, 4096 }
 0x146   : > { %p4039_p1 = scmp.ne.s32.totalorder %s4810_s21, %s4038_s5  ;;  %p4044_p3 = scmp.lt.u32.totalorder %s4810_s21, %s5424_s6 }
 0x147   : > { %p4045_p6 = scmp.lt.u32.totalorder %s4043_s7, %s4038_s5  ;;  %p4047_p13 = scmp.lt.u32.totalorder %s4038_s5, %s4810_s21 }
 0x148   : > { %p4041_p2 = pnand %p4039_p1, %p5425_p0 }
 0x149   : > { %p4046_p11 = por %p4045_p6, %p4044_p3 }
 0x14a   : > { %p4042_p10 = pneg %p4041_p2 }
 0x14b   : > { %p4048_p12 = por %p4047_p13, %p4046_p11 }
 0x14d   : > { %p4049_p9 = pnand %p4048_p12, %p4042_p10 }
 0x14f   : > { %4052 = shalt.err (!%p4049_p9)
}
 0x150   : > { %s4053_s27 = scalar_lea.vmem %s4812_s24, 256  ;;  %p5426_p8 = pmov %p5425_p0 }
 0x151   : > { %p4054_p5 = scmp.ne.s32.totalorder %s4812_s24, %s4053_s27  ;;  %s4261_s16 = smov [#allocation12]  }
 0x152   : > { %s4058_s17 = sshll.u32 %s4261_s16, 4  ;;  %s4059_s17 = int_to_ptr.vmem [resolvable:$false] %s4058_s17 }
 0x153   : > { %p4056_p4 = pnand %p4054_p5, %p5426_p8  ;;  %s4060_s30 = scalar_lea.vmem %s4059_s17, 512 }
 0x154   : > { %p4061_p0 = scmp.lt.s32.totalorder %s4812_s24, %s4059_s17  ;;  %p4062_p2 = scmp.lt.s32.totalorder %s4060_s30, %s4053_s27 }
 0x155   : > { %p4057_p1 = pneg %p4056_p4 }
 0x156   : > { %p4063_p3 = por %p4062_p2, %p4061_p0 }
 0x158   : > { %p4064_p6 = pnand %p4063_p3, %p4057_p1 }
 0x15a   : > { %4067 = shalt.err (!%p4064_p6)
}
 0x15b   : > { %3581 = dma.hbm_to_vmem [thread:$0]  (!%p4731_p7), %s4810_s21, 256, %s4812_s24, %s548_s11, %s4254_s25, %s4254_s25, %s4255_s10  }
 0x15c   : > { %s5427_s22 = sld [smem:[#allocation39_spill]] }
 0x162   : > { %p5428_p10 = scmp.ne.s32.totalorder %s5427_s22, 0 }
 0x163   : > { %s5429_s12 = sld [smem:[#allocation37_spill]] (!%p5428_p10)  ;;  %s5430_s5 = sld [smem:[#allocation47_spill]] (!%p5428_p10) }
 0x164   : > { %574 = sbr.rel (%p5428_p10) target bundleno = 948 (0x3b4), region = 60 }
 0x169   : > { %s576_s20 = sand.u32 (!%p5428_p10), 1, %s5429_s12   ;;  %p5431_p11 = scmp.ne.s32.totalorder (!%p5428_p10), %s5430_s5, 0 }
 0x16a   : > { %s2927_s13 = sshll.u32 (!%p5428_p10), %s576_s20, 3  ;;  %s577_s7 = scalar_lea.sflag (!%p5428_p10), [#allocation4], %s576_s20 }
 0x16b   : > { %s4846_s14 = scalar_lea.vmem [#allocation3], %s2927_s13 }
 0x16c   : > { %4165 = dma.done.wait (%p5431_p11), %s577_s7, 128  }
 0x16d   : > { %4167 = vsyncadd (%p5431_p11), %s577_s7, 4294967168  ;;  %s5432_s4 = sld [smem:[#allocation35_spill]]  ;;  %s5433_s15 = sld [smem:[#allocation42_spill]] }
 0x16e   : > { %s585_s23 = sand.u32 1, %s4378_s29  }
 0x16f   : > { %s586_s21 = scalar_lea.sflag [#allocation7], %s585_s23 }
 0x173   : > { %s4854_s25 = sand.u32 1, %s5432_s4   ;;  %p5434_p7 = scmp.ne.s32.totalorder %s5433_s15, 0 }
 0x174   : > { %s2928_s10 = sshll.u32 %s4854_s25, 5 }
 0x175   : > { %s4859_s24 = scalar_lea.vmem [#allocation6], %s2928_s10 }
 0x176   : > { %4169 = dma.done.wait (%p5434_p7), %s586_s21, 512  }
 0x177   : > { %4171 = vsyncadd (%p5434_p7), %s586_s21, 4294966784  ;;  %s596_s11 = sand.u32 1, %s4214_s18   ;;  %p5435_p13 = scmp.ne.s32.totalorder %s5410_s3, 0 }
 0x178   : > { %s4866_s27 = sshll.u32 %s596_s11, 3 }
 0x179   : > { %s598_s16 = scalar_lea.vmem [#allocation8], %s4866_s27 }
 0x17a   : > { %4173 = dma.done.wait (%p5435_p13), %s586_s21, 128  }
 0x17b   : > { %4175 = vsyncadd (%p5435_p13), %s586_s21, 4294967168  ;;  %s2930_s17 = sshll.u32 %s576_s20, 4  ;;  %s604_s30 = scalar_lea.sflag [#allocation10], %s585_s23 }
 0x17c   : > { %s607_s22 = scalar_lea.vmem [#allocation9], %s2930_s17 }
 0x17d   : > { %4177 = dma.done.wait (%p5431_p11), %s604_s30, 256  }
 0x17e   : > { %4179 = vsyncadd (%p5431_p11), %s604_s30, 4294967040  ;;  %s2931_s12 = sshll.u32 %s4854_s25, 6 }
 0x17f   : > { %s4878_s13 = scalar_lea.vmem [#allocation11], %s2931_s12 }
 0x180   : > { %4181 = dma.done.wait (%p5434_p7), %s604_s30, 1024  }
 0x181   : > { %4183 = vsyncadd (%p5434_p7), %s604_s30, 4294966272  ;;  %s4884_s7 = sshll.u32 %s596_s11, 4  ;;  %s622_s20 = scalar_lea.sflag [#allocation13], %s585_s23 }
 0x182   : > { %s625_s4 = scalar_lea.vmem [#allocation12], %s4884_s7 }
 0x183   : > { %4185 = dma.done.wait (%p5435_p13), %s622_s20, 256  }
 0x184   : > { %4187 = vsyncadd (%p5435_p13), %s622_s20, 4294967040  ;;  %p5436_p12 = scmp.eq.s32.totalorder %s4378_s29, 0 }
 0x186   : > { %4189 = dma.done.wait (%p5436_p12), [#allocation13], 16   ;;  %p5437_p9 = pmov %p5436_p12 }
 0x188   : > { %4191 = vsyncadd (%p5437_p9), [#allocation13], 4294967280  ;;  %p5438_p5 = pmov %p5437_p9 }
 0x18a   : > { %4193 = dma.done.wait (%p5438_p5), [#allocation16], 9232   ;;  %p5439_p8 = pmov %p5438_p5 }
 0x18b   : > { %p5440_p4 = pmov %p5438_p5 }
 0x18c   : > { %4195 = vsyncadd (%p5439_p8), [#allocation16], 4294958064 }
 0x18d   : > { %4197 = dma.done.wait (%p5440_p4), [#allocation19], 16   ;;  %p5441_p1 = pmov %p5440_p4 }
 0x18e   : > { %v4262_v0 = vmov 0   ;;  %v838_v1 = vld [vmem:[%s4878_s13 + $0x10] sm:$0xff]  ;;  %v836_v2 = vld [vmem:[%s4878_s13] sm:$0xff]  ;;  %v839_v3 = vld [vmem:[%s4878_s13 + $0x18] sm:$0xff]  ;;  %s5200_s3 = scalar_lea.vmem [#allocation20], %s2928_s10  ;;  %s5442_s10 = sld [smem:[#allocation56_spill]] }
 0x18f   : > { %4199 = vsyncadd (%p5441_p1), [#allocation19], 4294967280  ;;  %3691 = vset.pattern.permute.xlu1 %v4262_v0  ;;  %3690 = vset.pattern.permute.xlu0 %v4262_v0  ;;  %vm846_vm0 = vcmp.gt.f32.partialorder %v838_v1, 0.5  ;;  %vm844_vm1 = vcmp.gt.f32.partialorder %v836_v2, 0.5  ;;  %vm847_vm2 = vcmp.gt.f32.partialorder %v839_v3, 0.5  ;;  %v837_v4 = vld [vmem:[%s4878_s13 + $0x8] sm:$0xff] }
 0x190   : > { %v763_v5 = vld [vmem:[%s607_s22 + $0x8] sm:$0xff]  ;;  %v762_v6 = vld [vmem:[%s607_s22] sm:$0xff]  ;;  %v4910_v7 = vsel %vm846_vm0, 1, %v4262_v0  ;;  %v4913_v8 = vsel %vm844_vm1, 1, %v4262_v0  ;;  %vm845_vm3 = vcmp.gt.f32.partialorder %v837_v4, 0.5  ;;  %v4919_v10 = vsel %vm847_vm2, 1, %v4262_v0 }
 0x191   : > { %867 = vperm.xlu1 %3691, %v4910_v7   ;;  %861 = vperm.xlu0 %3690, %v4913_v8   ;;  %vm765_vm4 = vcmp.gt.f32.partialorder %v763_v5, 0.5  ;;  %v841_v9 = vld [vmem:[%s4878_s13 + $0x28] sm:$0xff]  ;;  %v853_v11 = vsel %vm845_vm3, 1, %v4262_v0  ;;  %vm764_vm5 = vcmp.gt.f32.partialorder %v762_v6, 0.5  ;;  %v840_v12 = vld [vmem:[%s4878_s13 + $0x20] sm:$0xff]  ;;  %v843_v15 = vld [vmem:[%s4878_s13 + $0x38] sm:$0xff] }
 0x192   : > { %v767_v13 = vsel %vm765_vm4, 1, %v4262_v0  ;;  %vm849_vm6 = vcmp.gt.f32.partialorder %v841_v9, 0.5  ;;  %v766_v14 = vsel %vm764_vm5, 1, %v4262_v0  ;;  %v3692_v16 = vld [vmem:[#allocation17 + $0x100] sm:$0xff]   ;;  %vm848_vm7 = vcmp.gt.f32.partialorder %v840_v12, 0.5  ;;  %v842_v17 = vld [vmem:[%s4878_s13 + $0x30] sm:$0xff] }
 0x193   : > { %v3693_v18 = vld [vmem:[#allocation17 + $0x108] sm:$0xff]   ;;  %3318 = vmatprep.subr.bf16.mxu0 %v3692_v16  ;;  %v3694_v19 = vld [vmem:[#allocation17 + $0x40] sm:$0xff]   ;;  %v857_v20 = vsel %vm849_vm6, 1, %v4262_v0  ;;  %v856_v22 = vsel %vm848_vm7, 1, %v4262_v0  ;;  %vm851_vm8 = vcmp.gt.f32.partialorder %v843_v15, 0.5  ;;  %v3695_v24 = vld [vmem:[#allocation17 + $0x110] sm:$0xff]  }
 0x194   : > { %v923_v21 = vld [vmem:[%s625_s4 + $0x8] sm:$0xff]  ;;  %3319 = vmatpush3.bf16.msra.mxu0 %v3692_v16  ;;  %3222 = vmatprep.subr.bf16.mxu1 %v3694_v19  ;;  %vm850_vm9 = vcmp.gt.f32.partialorder %v842_v17, 0.5  ;;  %v922_v25 = vld [vmem:[%s625_s4] sm:$0xff]  ;;  %v859_v27 = vsel %vm851_vm8, 1, %v4262_v0  ;;  %s2618_s5 = sshll.u32 %s5200_s3, 4  ;;  %s2600_s11 = scalar_lea.sflag [#allocation5], %s4854_s25  ;;  %s5206_s5 = int_to_ptr.vmem [resolvable:$true] %s2618_s5 }
 0x195   : > { %870 = vperm.xlu1 %3691, %v4919_v10   ;;  %864 = vperm.xlu0 %3690, %v853_v11   ;;  %v3696_v23 = vld [vmem:[#allocation17 + $0x48] sm:$0xff]   ;;  %v3698_v26 = vld [vmem:[#allocation17 + $0x50] sm:$0xff]   ;;  %vm925_vm10 = vcmp.gt.f32.partialorder %v923_v21, 0.5  ;;  %v858_v28 = vsel %vm850_vm9, 1, %v4262_v0  ;;  %v3697_v29 = vld [vmem:[#allocation17 + $0x118] sm:$0xff]   ;;  %vm924_vm11 = vcmp.gt.f32.partialorder %v922_v25, 0.5 }
 0x196   : > { %3320 = vmatprep.subr.bf16.mxu0 %v3693_v18  ;;  %3223 = vmatpush3.bf16.msra.mxu1 %v3694_v19  ;;  %v3700_v30 = vld [vmem:[#allocation17 + $0x58] sm:$0xff]   ;;  %v927_v31 = vsel %vm925_vm10, 1, %v4262_v0  ;;  %v926_v32 = vsel %vm924_vm11, 1, %v4262_v0  ;;  %v3699_v33 = vld [vmem:[#allocation17 + $0x120] sm:$0xff]   ;;  %v3701_v35 = vld [vmem:[#allocation17 + $0x128] sm:$0xff]   ;;  %s4068_s27 = scalar_lea.vmem %s5206_s5, 512 }
 0x197   : > { %3224 = vmatprep.subr.bf16.mxu1 %v3696_v23  ;;  %v3702_v34 = vld [vmem:[#allocation17 + $0x60] sm:$0xff]   ;;  %v3704_v36 = vld [vmem:[#allocation17 + $0x68] sm:$0xff]   ;;  %v3703_v37 = vld [vmem:[#allocation17 + $0x130] sm:$0xff]   ;;  %p4069_p0 = scmp.ne.s32.totalorder %s5206_s5, %s4068_s27 }
 0x198   : > { %3321 = vmatpush3.bf16.msra.mxu0 %v3693_v18  ;;  %v3706_v38 = vld [vmem:[#allocation17 + $0x70] sm:$0xff]   ;;  %v3705_v39 = vld [vmem:[#allocation17 + $0x138] sm:$0xff]   ;;  %v4941_v41 = vld [vmem:[#allocation17 + $0x140] sm:$0xff]  }
 0x199   : > { %772 = vperm.xlu1 %3691, %v767_v13   ;;  %769 = vperm.xlu0 %3690, %v766_v14   ;;  %v3708_v40 = vld [vmem:[#allocation17 + $0x78] sm:$0xff]   ;;  %v4943_v42 = vld [vmem:[#allocation17] sm:$0xff]   ;;  %v3065_v44 = vld [vmem:[%s4859_s24] sm:$0xff]  }
 0x19a   : > { %3322 = vmatprep.subr.bf16.mxu0 %v3695_v24  ;;  %3225 = vmatpush3.bf16.msra.mxu1 %v3696_v23  ;;  %v3108_v43 = vld [vmem:[%s4859_s24 + $0x8] sm:$0xff]   ;;  %v3061_v45 = vld [vmem:[%s4846_s14] sm:$0xff]   ;;  %v3066_v48 = vunpack.c.l.bf16 %v3065_v44  ;;  %v3067_v50 = vunpack.c.h.bf16 %v3065_v44  ;;  %s3059_s14 = sshll.u32 %s4378_s29, 9 }
 0x19b   : > { %3226 = vmatprep.subr.bf16.mxu1 %v3698_v26  ;;  %v3070_v46 = vunpack.c.l.bf16 %v3108_v43  ;;  %v4950_v47 = vld [vmem:[#allocation14] ss:$0 sm:$0xff]  ;;  %v3071_v49 = vunpack.c.h.bf16 %v3108_v43  ;;  %v3063_v51 = vunpack.c.h.bf16 %v3061_v45  ;;  %v3062_v52 = vunpack.c.l.bf16 %v3061_v45  ;;  %v4953_v54 = vld [vmem:[#allocation15] ss:$0 sm:$0xff]  ;;  %v3110_v1 = vld [vmem:[%s4859_s24 + $0x18] sm:$0xff]   ;;  %s5211_s21 = scalar_lea.hbm %s5442_s10, %s3059_s14 }
 0x19c   : > { %3323 = vmatpush3.bf16.msra.mxu0 %v3695_v24  ;;  %v796_v55 = vmul.f32 %v3066_v48, %v4950_v47  ;;  %v3109_v56 = vld [vmem:[%s4859_s24 + $0x10] sm:$0xff]   ;;  %v797_v58 = vmul.f32 %v3067_v50, %v4950_v47  ;;  %v3081_v16 = vld [vmem:[%s598_s16] sm:$0xff]   ;;  %s5443_s24 = sld [smem:[#allocation43_spill]]  ;;  %s4263_s16 = smov [#allocation20]  }
 0x19d   : > { %876 = vperm.xlu1 %3691, %v857_v20   ;;  %873 = vperm.xlu0 %3690, %v856_v22   ;;  %v798_v53 = vmul.f32 %v3070_v46, %v4950_v47  ;;  %v799_v57 = vmul.f32 %v3071_v49, %v4950_v47  ;;  %v747_v59 = vmul.f32 %v3063_v51, %v4950_v47  ;;  %v3075_v62 = vunpack.c.h.bf16 %v3109_v56  ;;  %v3709_v51 = vld [vmem:[#allocation17 + $0x148] sm:$0xff]   ;;  %s4072_s17 = sshll.u32 %s4263_s16, 4  ;;  %s4073_s17 = int_to_ptr.vmem [resolvable:$false] %s4072_s17 }
 0x19e   : > { %3324 = vmatprep.subr.bf16.mxu0 %v3697_v29  ;;  %3227 = vmatpush3.bf16.msra.mxu1 %v3698_v26  ;;  %v746_v60 = vmul.f32 %v3062_v52, %v4950_v47  ;;  %v3074_v63 = vunpack.c.l.bf16 %v3109_v56  ;;  %v804_v0 = vadd.f32 %v4953_v54, %v796_v55  ;;  %v805_v3 = vadd.f32 %v4953_v54, %v797_v58  ;;  %s4074_s30 = scalar_lea.vmem %s4073_s17, 1024  ;;  %p4075_p10 = scmp.lt.s32.totalorder %s5206_s5, %s4073_s17 }
 0x19f   : > { %3228 = vmatprep.subr.bf16.mxu1 %v3700_v30  ;;  %v806_v61 = vadd.f32 %v4953_v54, %v798_v53  ;;  %v807_v2 = vadd.f32 %v4953_v54, %v799_v57  ;;  %v755_v4 = vadd.f32 %v4953_v54, %v747_v59  ;;  %v801_v6 = vmul.f32 %v3075_v62, %v4950_v47  ;;  %p4076_p11 = scmp.lt.s32.totalorder %s4074_s30, %s4068_s27 }
 0x1a0   : > { %3325 = vmatpush3.bf16.msra.mxu0 %v3697_v29  ;;  %v754_v5 = vadd.f32 %v4953_v54, %v746_v60  ;;  %vm812_vm13 = vcmp.ge.f32.partialorder %v804_v0, 0.0  ;;  %v821_v13 = vmul.f32 0.2, %v805_v3  ;;  %vm813_vm15 = vcmp.ge.f32.partialorder %v805_v3, 0.0 }
 0x1a1   : > { %882 = vperm.xlu1 %3691, %v859_v27   ;;  %879 = vperm.xlu0 %3690, %v858_v28   ;;  %vm814_vm12 = vcmp.ge.f32.partialorder %v806_v61, 0.0  ;;  %v822_v9 = vmul.f32 0.2, %v806_v61  ;;  %v823_v12 = vmul.f32 0.2, %v807_v2  ;;  %vm815_vm14 = vcmp.ge.f32.partialorder %v807_v2, 0.0  ;;  %p4077_p7 = por %p4076_p11, %p4075_p10 }
 0x1a2   : > { %3326 = vmatprep.subr.bf16.mxu0 %v3699_v33  ;;  %3229 = vmatpush3.bf16.msra.mxu1 %v3700_v30  ;;  %v759_v14 = vmul.f32 0.2, %v755_v4  ;;  %vm757_vm0 = vcmp.ge.f32.partialorder %v755_v4, 0.0  ;;  %v758_v15 = vmul.f32 0.2, %v754_v5  ;;  %vm756_vm1 = vcmp.ge.f32.partialorder %v754_v5, 0.0 }
 0x1a3   : > { %3230 = vmatprep.subr.bf16.mxu1 %v3702_v34  ;;  %v809_v19 = vadd.f32 %v4953_v54, %v801_v6  ;;  %v831_v25 = vsel %vm815_vm14, %v807_v2, %v823_v12  ;;  %v829_v26 = vsel %vm813_vm15, %v805_v3, %v821_v13  ;;  %v3082_v30 = vunpack.c.l.bf16 %v3081_v16  ;;  %v3713_v12 = vld [vmem:[#allocation17 + $0x158] sm:$0xff]   ;;  %p5444_p2 = scmp.ne.s32.totalorder %s5443_s24, 0 }
 0x1a4   : > { %3327 = vmatpush3.bf16.msra.mxu0 %v3699_v33  ;;  %v760_v29 = vsel %vm756_vm1, %v754_v5, %v758_v15 }
 0x1a5   : > { %932 = vperm.xlu1 %3691, %v927_v31   ;;  %929 = vperm.xlu0 %3690, %v926_v32   ;;  %vm817_vm4 = vcmp.ge.f32.partialorder %v809_v19, 0.0  ;;  %v825_v33 = vmul.f32 0.2, %v809_v19  ;;  %v912_v46 = vmul.f32 %v3082_v30, %v4950_v47  ;;  %p4070_p3 = pnand %p4069_p0, %p5444_p2 }
 0x1a6   : > { %3328 = vmatprep.subr.bf16.mxu0 %v3701_v35  ;;  %3231 = vmatpush3.bf16.msra.mxu1 %v3702_v34 }
 0x1a7   : > { %3232 = vmatprep.subr.bf16.mxu1 %v3704_v36  ;;  %v833_v50 = vsel %vm817_vm4, %v809_v19, %v825_v33  ;;  %v914_v62 = vadd.f32 %v4953_v54, %v912_v46  ;;  %v3717_v46 = vld [vmem:[#allocation17 + $0x168] sm:$0xff]   ;;  %p4071_p6 = pneg %p4070_p3 }
 0x1a8   : > { %3329 = vmatpush3.bf16.msra.mxu0 %v3701_v35 }
 0x1a9   : > { %2522 = vperm.xlu1 %3691, %v853_v11   ;;  %2519 = vperm.xlu0 %3690, %v4913_v8   ;;  %v3079_v8 = vunpack.c.h.bf16 %v3110_v1  ;;  %v3078_v11 = vunpack.c.l.bf16 %v3110_v1  ;;  %v3711_v1 = vld [vmem:[#allocation17 + $0x150] sm:$0xff]   ;;  %vm916_vm1 = vcmp.ge.f32.partialorder %v914_v62, 0.0  ;;  %p4078_p13 = pnand %p4077_p7, %p4071_p6 }
 0x1aa   : > { %3330 = vmatprep.subr.bf16.mxu0 %v3703_v37  ;;  %3233 = vmatpush3.bf16.msra.mxu1 %v3704_v36 }
 0x1ab   : > { %3234 = vmatprep.subr.bf16.mxu1 %v3706_v38  ;;  %v803_v21 = vmul.f32 %v3079_v8, %v4950_v47  ;;  %v802_v24 = vmul.f32 %v3078_v11, %v4950_v47 }
 0x1ac   : > { %3331 = vmatpush3.bf16.msra.mxu0 %v3703_v37 }
 0x1ad   : > { %2528 = vperm.xlu1 %3691, %v4919_v10   ;;  %2525 = vperm.xlu0 %3690, %v4910_v7   ;;  %v800_v7 = vmul.f32 %v3074_v63, %v4950_v47  ;;  %v820_v10 = vmul.f32 0.2, %v804_v0  ;;  %v811_v34 = vadd.f32 %v4953_v54, %v803_v21  ;;  %v810_v36 = vadd.f32 %v4953_v54, %v802_v24 }
 0x1ae   : > { %3332 = vmatprep.subr.bf16.mxu0 %v3705_v39  ;;  %3235 = vmatpush3.bf16.msra.mxu1 %v3706_v38 }
 0x1af   : > { %3236 = vmatprep.subr.bf16.mxu1 %v3708_v40  ;;  %v828_v23 = vsel %vm812_vm13, %v804_v0, %v820_v10  ;;  %v827_v52 = vmul.f32 0.2, %v811_v34  ;;  %vm819_vm11 = vcmp.ge.f32.partialorder %v811_v34, 0.0  ;;  %v826_v60 = vmul.f32 0.2, %v810_v36 }
 0x1b0   : > { %3333 = vmatpush3.bf16.msra.mxu0 %v3705_v39  ;;  %v3765_v55 = vpack.c.bf16 %v829_v26, %v828_v23  ;;  %vm818_vm13 = vcmp.ge.f32.partialorder %v810_v36, 0.0 }
 0x1b1   : > { %2534 = vperm.xlu1 %3691, %v857_v20   ;;  %2531 = vperm.xlu0 %3690, %v856_v22   ;;  %v808_v20 = vadd.f32 %v4953_v54, %v800_v7  ;;  %v830_v22 = vsel %vm814_vm12, %v806_v61, %v822_v9  ;;  %v835_v3 = vsel %vm819_vm11, %v811_v34, %v827_v52  ;;  %v918_v9 = vmul.f32 0.2, %v914_v62  ;;  %v3714_v52 = vld [vmem:[#allocation17 + $0x10] sm:$0xff]  }
 0x1b2   : > { %3342 = vmatprep.subr.bf16.mxu0 %v4941_v41  ;;  %3237 = vmatpush3.bf16.msra.mxu1 %v3708_v40  ;;  %v3768_v58 = vpack.c.bf16 %v831_v25, %v830_v22  ;;  %v834_v7 = vsel %vm818_vm13, %v810_v36, %v826_v60  ;;  %vm1970_vm11 = vsmask.f32 3328  ;;  %vm1482_vm13 = vsmask.f32 256 }
 0x1b3   : > { %3246 = vmatprep.subr.bf16.mxu1 %v4943_v42  ;;  %vm816_vm5 = vcmp.ge.f32.partialorder %v808_v20, 0.0  ;;  %v824_v35 = vmul.f32 0.2, %v808_v20 }
 0x1b5   : > { %2540 = vperm.xlu1 %3691, %v859_v27   ;;  %2537 = vperm.xlu0 %3690, %v858_v28   ;;  %v761_v27 = vsel %vm757_vm0, %v755_v4, %v759_v14  ;;  %v3083_v28 = vunpack.c.h.bf16 %v3081_v16  ;;  %v832_v57 = vsel %vm816_vm5, %v808_v20, %v824_v35  ;;  %vm1789_vm5 = vsmask.f32 7424 }
 0x1b6   : > { %v3771_v14 = vpack.c.bf16 %v833_v50, %v832_v57  ;;  %v920_v20 = vsel %vm916_vm1, %v914_v62, %v918_v9  ;;  %v3716_v62 = vld [vmem:[#allocation17 + $0x18] sm:$0xff]  }
 0x1b7   : > { %v913_v45 = vmul.f32 %v3083_v28, %v4950_v47 }
 0x1b9   : > { %v915_v61 = vadd.f32 %v4953_v54, %v913_v45 }
 0x1bb   : > { %v919_v8 = vmul.f32 0.2, %v915_v61  ;;  %vm917_vm0 = vcmp.ge.f32.partialorder %v915_v61, 0.0 }
 0x1bd   : > { %v921_v19 = vsel %vm917_vm0, %v915_v61, %v919_v8 }
 0x210   : > { %v868_v17 = vpop.permute.xlu1 %867  ;;  %v862_v18 = vpop.permute.xlu0 %861 }
 0x211   : > { %vm886_vm2 = vcmp.eq.s32.totalorder %v868_v17, 1  ;;  %vm884_vm3 = vcmp.eq.s32.totalorder %v862_v18, 1 }
 0x212   : > { %v894_v37 = vsel %vm886_vm2, %v830_v22, 0.0  ;;  %v892_v38 = vsel %vm884_vm3, %v828_v23, 0.0  ;;  %v3715_v22 = vld [vmem:[#allocation17 + $0x160] sm:$0xff]  }
 0x214   : > { %v871_v31 = vpop.permute.xlu1 %870  ;;  %v865_v32 = vpop.permute.xlu0 %864 }
 0x215   : > { %vm887_vm6 = vcmp.eq.s32.totalorder %v871_v31, 1  ;;  %vm885_vm7 = vcmp.eq.s32.totalorder %v865_v32, 1  ;;  %v3774_v32 = vpack.c.bf16 %v835_v3, %v834_v7 }
 0x216   : > { %v895_v39 = vsel %vm887_vm6, %v831_v25, 0.0  ;;  %v893_v40 = vsel %vm885_vm7, %v829_v26, 0.0  ;;  %vm3764_vm10 = vmpackc.low %vm885_vm7, %vm884_vm3 }
 0x217   : > { %v4984_v43 = vpack.c.bf16 %v895_v39, %v894_v37  ;;  %v4986_v44 = vpack.c.bf16 %v893_v40, %v892_v38  ;;  %3766 = vmatprep.mubr.msk.bf16.mxu0 %vm3764_vm10, %v3765_v55  ;;  %vm3767_vm12 = vmpackc.low %vm887_vm6, %vm886_vm2  ;;  %vm1001_vm6 = vcmask 1044480   ;;  %v3712_v39 = vld [vmem:[#allocation17 + $0x8] sm:$0xff]   ;;  %vm1128_vm10 = vsmask.f32 5376 }
 0x218   : > { %v773_v48 = vpop.permute.xlu1 %772  ;;  %v770_v49 = vpop.permute.xlu0 %769  ;;  %3769 = vmatmul.mubr.msk.bf16.vlgmr.msra.gmra.mrb[0].mxu0 %vm3767_vm12, %v3768_v58  ;;  %vm2148_vm12 = vcmask 1042432  }
 0x219   : > { %904 = vst [vmem:[#allocation2 + $0x8] sm:$0xff] %v4986_v44  ;;  %vm775_vm8 = vcmp.eq.s32.totalorder %v773_v48, 1  ;;  %vm774_vm9 = vcmp.eq.s32.totalorder %v770_v49, 1  ;;  %v4993_v53 = vshll.u32 %v4986_v44, 16  ;;  %3343 = vmatpush3.bf16.msra.mxu0 %v4941_v41  ;;  %v5008_v5 = vshrl.u32 %v4986_v44, 16 }
 0x21a   : > { %v777_v56 = vsel %vm775_vm8, %v761_v27, 0.0  ;;  %v776_v47 = vsel %vm774_vm9, %v760_v29, 0.0  ;;  %3344 = vmatprep.subr.bf16.mxu0 %v3709_v51  ;;  %v5011_v54 = vshll.u32 %v4984_v43, 16  ;;  %v1003_v21 = vrot.slane %v4986_v44, 3 }
 0x21b   : > { %v778_v59 = vpack.c.bf16 %v777_v56, %v776_v47  ;;  %v1795_v2 = vrot.slane %v4993_v53, 1  ;;  %v1005_v26 = vrot.slane %v4984_v43, 3  ;;  %v1140_v55 = vrot.slane %v5008_v5, 2 }
 0x21c   : > { %v877_v63 = vpop.permute.xlu1 %876  ;;  %v874_v0 = vpop.permute.xlu0 %873  ;;  %v1800_v17 = vrot.slane %v5011_v54, 1  ;;  %v1143_v56 = vrot.slane %v4993_v53, 3 }
 0x21d   : > { %779 = vst [vmem:[#allocation2] sm:$0xff] %v778_v59  ;;  %vm889_vm14 = vcmp.eq.s32.totalorder %v877_v63, 1  ;;  %vm888_vm15 = vcmp.eq.s32.totalorder %v874_v0, 1  ;;  %3345 = vmatpush3.bf16.msra.mxu0 %v3709_v51  ;;  %v1796_v13 = vor.u32 %v1795_v2, %v5008_v5  ;;  %v1006_v45 = vsel %vm1001_vm6, %v1003_v21, %v1005_v26  ;;  %v3721_v63 = vld [vmem:[#allocation17 + $0x178] sm:$0xff]  }
 0x21e   : > { %v897_v4 = vsel %vm889_vm14, %v833_v50, 0.0  ;;  %v896_v41 = vsel %vm888_vm15, %v832_v57, 0.0  ;;  %3346 = vmatprep.subr.bf16.mxu0 %v3711_v1  ;;  %vm3770_vm4 = vmpackc.low %vm889_vm14, %vm888_vm15  ;;  %v3719_v57 = vld [vmem:[#allocation17 + $0x170] sm:$0xff]   ;;  %v5060_v61 = vor.u32 %v1143_v56, %v1140_v55  ;;  %v5065_v2 = vshrl.u32 %v4984_v43, 16 }
 0x21f   : > { %v5013_v6 = vpack.c.bf16 %v897_v4, %v896_v41  ;;  %3772 = vmatprep.mubr.msk.bf16.mxu0 %vm3770_vm4, %v3771_v14  ;;  %v1801_v28 = vsel %vm1789_vm5, %v1796_v13, %v1800_v17  ;;  %v3723_v41 = vld [vmem:[#allocation17 + $0x180] sm:$0xff]   ;;  %v3720_v14 = vld [vmem:[#allocation17 + $0x28] sm:$0xff]   ;;  %vm2301_vm14 = vsmask.f32 2304  ;;  %v2311_v55 = vrot.slane %v5011_v54, 6 }
 0x220   : > { %v883_v10 = vpop.permute.xlu1 %882  ;;  %v880_v11 = vpop.permute.xlu0 %879  ;;  %v1490_v13 = vrot.slane %v5065_v2, 7  ;;  %vm1308_vm15 = vsmask.f32 4352 }
 0x221   : > { %vm891_vm2 = vcmp.eq.s32.totalorder %v883_v10, 1  ;;  %vm890_vm3 = vcmp.eq.s32.totalorder %v880_v11, 1  ;;  %3347 = vmatpush3.bf16.msra.mxu0 %v3711_v1  ;;  %v1007_v27 = vrot.slane %v5013_v6, 3  ;;  %v5057_v60 = vshll.u32 %v5013_v6, 16  ;;  %v1951_v1 = vld [vmem:[#allocation2 + $0x8] sm:$0xf0] }
 0x222   : > { %v899_v15 = vsel %vm891_vm2, %v835_v3, 0.0  ;;  %v898_v16 = vsel %vm890_vm3, %v834_v7, 0.0  ;;  %3348 = vmatprep.subr.bf16.mxu0 %v3713_v12  ;;  %vm3773_vm9 = vmpackc.low %vm891_vm2, %vm890_vm3  ;;  %v3718_v3 = vld [vmem:[#allocation17 + $0x20] sm:$0xff]   ;;  %v5069_v7 = vshrl.u32 %v5013_v6, 16  ;;  %v1972_v9 = vshrl.u32 %v1951_v1, 16 }
 0x223   : > { %v5021_v18 = vpack.c.bf16 %v899_v15, %v898_v16  ;;  %3775 = vmatmul.mubr.msk.bf16.gmra.mrb[4].mxu0 %vm3773_vm9, %v3774_v32  ;;  %v1008_v48 = vsel %vm1001_vm6, %v1005_v26, %v1007_v27  ;;  %v1808_v4 = vrot.slane %v5057_v60, 1  ;;  %v1804_v10 = vor.u32 %v1800_v17, %v5065_v2 }
 0x224   : > { %v933_v23 = vpop.permute.xlu1 %932  ;;  %v930_v24 = vpop.permute.xlu0 %929  ;;  %v5026_v25 = vld [vmem:[#allocation2] sm:$0xf8]  ;;  %3358 = vmatprep.mubr.bf16.mxu0 %v1801_v28  ;;  %v2152_v26 = vrot.slane %v5013_v6, 5  ;;  %v1493_v32 = vrot.slane %v5069_v7, 7 }
 0x225   : > { %v957_v29 = vld [vmem:[#allocation2] sm:$0xfc]  ;;  %907 = vst [vmem:[#allocation2 + $0x20] sm:$0xff] %v5021_v18  ;;  %vm935_vm7 = vcmp.eq.s32.totalorder %v933_v23, 1  ;;  %vm934_vm8 = vcmp.eq.s32.totalorder %v930_v24, 1  ;;  %v1002_v30 = vrot.slane %v5026_v25, 3  ;;  %3349 = vmatpush3.bf16.msra.mxu0 %v3713_v12  ;;  %v1812_v15 = vor.u32 %v1808_v4, %v5069_v7 }
 0x226   : > { %v5036_v31 = vshrl.u32 %v5021_v18, 16  ;;  %v937_v33 = vsel %vm935_vm7, %v921_v19, 0.0  ;;  %v936_v34 = vsel %vm934_vm8, %v920_v20, 0.0  ;;  %v5041_v35 = vshll.u32 %v5021_v18, 16  ;;  %3350 = vmatprep.subr.bf16.mxu0 %v3715_v22  ;;  %v3725_v20 = vld [vmem:[#allocation17 + $0x188] sm:$0xff]   ;;  %v3722_v28 = vld [vmem:[#allocation17 + $0x30] sm:$0xff]  }
 0x227   : > { %v1130_v36 = vshrl.u32 %v957_v29, 16  ;;  %v938_v37 = vpack.c.bf16 %v937_v33, %v936_v34  ;;  %v1004_v38 = vsel %vm1001_vm6, %v1002_v30, %v1003_v21  ;;  %v1133_v44 = vshll.u32 %v957_v29, 16 }
 0x228   : > { %v1499_v40 = vrot.slane %v5036_v31, 7  ;;  %3238 = vmatprep.mubr.bf16.mxu1 %v1004_v38  ;;  %v1816_v8 = vrot.slane %v5041_v35, 1  ;;  %v1975_v12 = vshll.u32 %v1951_v1, 16  ;;  %v1809_v16 = vsel %vm1789_vm5, %v1804_v10, %v1808_v4  ;;  %v3729_v1 = vld [vmem:[#allocation17 + $0x198] sm:$0xff]  }
 0x229   : > { %939 = vst [vmem:[#allocation2 + $0x28] sm:$0xff] %v938_v37  ;;  %3239 = vmatmul.mubr.bf16.vlgmr.msra.gmra.mrb[0].mxu1 %v1006_v45  ;;  %v1132_v50 = vrot.slane %v1130_v36, 2  ;;  %v1135_v51 = vrot.slane %v1133_v44, 3  ;;  %3351 = vmatpush3.bf16.msra.mxu0 %v3715_v22  ;;  %v1974_v21 = vrot.slane %v1972_v9, 4  ;;  %v1487_v22 = vrot.slane %v5008_v5, 7 }
 0x22a   : > { %v5048_v49 = vor.u32 %v5041_v35, %v1499_v40  ;;  %3247 = vmatpush3.bf16.msra.mxu1 %v4943_v42  ;;  %3242 = vmatprep.mubr.bf16.mxu1 %v1008_v48  ;;  %v1817_v19 = vsel %vm1789_vm5, %v1812_v15, %v1816_v8  ;;  %v1977_v23 = vrot.slane %v1975_v12, 5  ;;  %v2150_v24 = vrot.slane %v4984_v43, 5 }
 0x22b   : > { %3248 = vmatprep.subr.bf16.mxu1 %v3712_v39  ;;  %3352 = vmatprep.subr.bf16.mxu0 %v3717_v46  ;;  %v1136_v59 = vor.u32 %v1135_v51, %v1132_v50  ;;  %v5084_v29 = vor.u32 %v1487_v22, %v4993_v53  ;;  %v1491_v30 = vor.u32 %v1490_v13, %v5011_v54  ;;  %v1979_v33 = vrot.slane %v5065_v2, 4  ;;  %v3724_v51 = vld [vmem:[#allocation17 + $0x38] sm:$0xff]  }
 0x22c   : > { %v5053_v47 = vld [vmem:[#allocation2 + $0x20] sm:$0x7]  ;;  %v1980_v34 = vrot.slane %v5011_v54, 5  ;;  %v5093_v6 = vsel %vm2148_vm12, %v2150_v24, %v2152_v26  ;;  %v1149_v37 = vrot.slane %v5065_v2, 2  ;;  %v1494_v44 = vor.u32 %v1493_v32, %v5057_v60 }
 0x22d   : > { %v1009_v58 = vrot.slane %v5053_v47, 3  ;;  %3353 = vmatpush3.bf16.msra.mxu0 %v3717_v46  ;;  %v1145_v0 = vsel %vm1128_vm10, %v1136_v59, %v5060_v61  ;;  %v5102_v40 = vsel %vm1482_vm13, %v1487_v22, %v1491_v30  ;;  %v1152_v45 = vrot.slane %v5011_v54, 3  ;;  %v3730_v30 = vld [vmem:[#allocation17 + $0x90] sm:$0xff]  }
 0x22e   : > { %3249 = vmatpush3.bf16.msra.mxu1 %v3712_v39  ;;  %3354 = vmatprep.subr.bf16.mxu0 %v3719_v57  ;;  %v3727_v39 = vld [vmem:[#allocation17 + $0x190] sm:$0xff]   ;;  %v1820_v46 = vor.u32 %v1816_v8, %v5036_v31  ;;  %v1978_v48 = vor.u32 %v1977_v23, %v1974_v21  ;;  %v2310_v50 = vrot.slane %v5065_v2, 5  ;;  %v5114_v56 = vsel %vm1482_vm13, %v1493_v32, %v5048_v49  ;;  %v3726_v8 = vld [vmem:[#allocation17 + $0x80] sm:$0xff]  }
 0x22f   : > { %3250 = vmatprep.subr.bf16.mxu1 %v3714_v52  ;;  %v1010_v42 = vsel %vm1001_vm6, %v1007_v27, %v1009_v58  ;;  %v2154_v27 = vrot.slane %v5021_v18, 5  ;;  %v1158_v58 = vrot.slane %v5069_v7, 2  ;;  %v5118_v59 = vor.u32 %v1980_v34, %v1979_v33  ;;  %v3762_v18 = vld [vmem:[#allocation17 + $0x230] sm:$0xff]  }
 0x230   : > { %v1771_v11 = vld [vmem:[#allocation2 + $0x28] sm:$0x1]  ;;  %v2319_v49 = vrot.slane %v5041_v35, 6  ;;  %v1153_v10 = vor.u32 %v1152_v45, %v1149_v37  ;;  %v1168_v12 = vshll.u32 %v5053_v47, 16  ;;  %v1310_v15 = vshrl.u32 %v5026_v25, 16 }
 0x231   : > { %3243 = vmatmul.mubr.bf16.gmra.mrb[4].mxu1 %v1010_v42  ;;  %3355 = vmatpush3.bf16.msra.mxu0 %v3719_v57  ;;  %v1822_v17 = vshll.u32 %v1771_v11, 16  ;;  %v5098_v36 = vsel %vm2148_vm12, %v2152_v26, %v2154_v27  ;;  %v2314_v57 = vrot.slane %v5069_v7, 5  ;;  %v2315_v42 = vrot.slane %v5057_v60, 6  ;;  %v3735_v37 = vld [vmem:[#allocation17 + $0x1b0] sm:$0xff]  }
 0x232   : > { %3251 = vmatpush3.bf16.msra.mxu1 %v3714_v52  ;;  %3262 = vmatprep.mubr.bf16.mxu1 %v1145_v0  ;;  %v5109_v52 = vsel %vm1482_vm13, %v1490_v13, %v1494_v44  ;;  %v1982_v4 = vsel %vm1970_vm11, %v1978_v48, %v5118_v59  ;;  %v1165_v11 = vshrl.u32 %v5053_v47, 16  ;;  %v1154_v47 = vsel %vm1128_vm10, %v5060_v61, %v1153_v10  ;;  %v3734_v48 = vld [vmem:[#allocation17 + $0xa0] sm:$0xff]  }
 0x233   : > { %3252 = vmatprep.subr.bf16.mxu1 %v3716_v62  ;;  %3356 = vmatprep.subr.bf16.mxu0 %v3721_v63  ;;  %v1824_v38 = vrot.slane %v1822_v17, 1  ;;  %v3728_v17 = vld [vmem:[#allocation17 + $0x88] sm:$0xff]   ;;  %v1170_v22 = vrot.slane %v1168_v12, 3  ;;  %v1312_v26 = vrot.slane %v1310_v15, 3  ;;  %v1317_v32 = vrot.slane %v5008_v5, 3  ;;  %v3740_v12 = vld [vmem:[#allocation17 + $0xb8] sm:$0xff]  }
 0x234   : > { %v1167_v21 = vrot.slane %v1165_v11, 2  ;;  %v1318_v33 = vrot.slane %v4993_v53, 4  ;;  %v3737_v53 = vld [vmem:[#allocation17 + $0x1b8] sm:$0xff]   ;;  %v1983_v45 = vrot.slane %v5069_v7, 4  ;;  %v1322_v15 = vrot.slane %v5011_v54, 4 }
 0x235   : > { %3357 = vmatpush3.bf16.msra.mxu0 %v3721_v63  ;;  %v1161_v63 = vrot.slane %v5057_v60, 3  ;;  %v1825_v0 = vsel %vm1789_vm5, %v1820_v46, %v1824_v38  ;;  %v1984_v46 = vrot.slane %v5057_v60, 5 }
 0x236   : > { %3253 = vmatpush3.bf16.msra.mxu1 %v3716_v62  ;;  %3366 = vmatprep.subr.bf16.mxu0 %v3723_v41  ;;  %v2318_v62 = vrot.slane %v5036_v31, 5  ;;  %v1171_v34 = vor.u32 %v1170_v22, %v1167_v21  ;;  %v5148_v38 = vor.u32 %v1318_v33, %v1317_v32  ;;  %v3742_v22 = vld [vmem:[#allocation17 + $0xc0] sm:$0xff]  }
 0x237   : > { %3254 = vmatprep.subr.bf16.mxu1 %v3718_v3 }
 0x238   : > { %3359 = vmatmul.mubr.bf16.vlgmr.msra.gmra.mrb[0].mxu0 %v1809_v16  ;;  %v5129_v9 = vor.u32 %v2319_v49, %v2318_v62  ;;  %v1313_v16 = vshll.u32 %v5026_v25, 16  ;;  %v3733_v25 = vld [vmem:[#allocation17 + $0x1a8] sm:$0xff]  }
 0x239   : > { %3362 = vmatprep.mubr.bf16.mxu0 %v1817_v19  ;;  %3367 = vmatpush3.bf16.msra.mxu0 %v3723_v41  ;;  %v2316_v41 = vor.u32 %v2315_v42, %v2314_v57  ;;  %v3731_v19 = vld [vmem:[#allocation17 + $0x1a0] sm:$0xff]  }
 0x23a   : > { %3255 = vmatpush3.bf16.msra.mxu1 %v3718_v3  ;;  %3368 = vmatprep.subr.bf16.mxu0 %v3725_v20  ;;  %v5124_v3 = vor.u32 %v2311_v55, %v2310_v50  ;;  %v1987_v50 = vrot.slane %v5036_v31, 4  ;;  %v5157_v55 = vld [vmem:[#allocation2 + $0x28] sm:$0x1f]  ;;  %v3739_v57 = vld [vmem:[#allocation17 + $0x1c0] sm:$0xff]  }
 0x23b   : > { %3256 = vmatprep.subr.bf16.mxu1 %v3720_v14  ;;  %v1992_v42 = vshrl.u32 %v5157_v55, 16  ;;  %v1995_v62 = vshll.u32 %v5157_v55, 16 }
 0x23c   : > { %v5135_v13 = vsel %vm2301_vm14, %v5124_v3, %v2316_v41 }
 0x23d   : > { %3369 = vmatpush3.bf16.msra.mxu0 %v3725_v20  ;;  %v5141_v20 = vsel %vm2301_vm14, %v2316_v41, %v5129_v9  ;;  %v1997_v49 = vrot.slane %v1995_v62, 5 }
 0x23e   : > { %3257 = vmatpush3.bf16.msra.mxu1 %v3720_v14  ;;  %3370 = vmatprep.subr.bf16.mxu0 %v3727_v39  ;;  %v1162_v14 = vor.u32 %v1161_v63, %v1158_v58  ;;  %v1985_v58 = vor.u32 %v1984_v46, %v1983_v45  ;;  %v3736_v63 = vld [vmem:[#allocation17 + $0xa8] sm:$0xff]   ;;  %v3753_v45 = vld [vmem:[#allocation17 + $0x1f8] sm:$0xff]   ;;  %v3750_v46 = vld [vmem:[#allocation17 + $0xe0] sm:$0xff]  }
 0x23f   : > { %3258 = vmatprep.subr.bf16.mxu1 %v3722_v28 }
 0x240   : > { %3363 = vmatmul.mubr.bf16.gmra.mrb[4].mxu0 %v1825_v0  ;;  %v1163_v23 = vsel %vm1128_vm10, %v1153_v10, %v1162_v14  ;;  %v1172_v44 = vsel %vm1128_vm10, %v1162_v14, %v1171_v34  ;;  %v1986_v31 = vsel %vm1970_vm11, %v5118_v59, %v1985_v58  ;;  %v3743_v10 = vld [vmem:[#allocation17 + $0x1d0] sm:$0xff]   ;;  %v1321_v59 = vrot.slane %v5065_v2, 3  ;;  %v3749_v34 = vld [vmem:[#allocation17 + $0x1e8] sm:$0xff]  }
 0x241   : > { %3382 = vmatprep.mubr.bf16.mxu0 %v1982_v4  ;;  %3371 = vmatpush3.bf16.msra.mxu0 %v3727_v39  ;;  %v3732_v39 = vld [vmem:[#allocation17 + $0x98] sm:$0xff]   ;;  %v3738_v4 = vld [vmem:[#allocation17 + $0xb0] sm:$0xff]  }
 0x242   : > { %3259 = vmatpush3.bf16.msra.mxu1 %v3722_v28  ;;  %3372 = vmatprep.subr.bf16.mxu0 %v3729_v1  ;;  %v1315_v28 = vrot.slane %v1313_v16, 4  ;;  %v1325_v16 = vrot.slane %v5069_v7, 3 }
 0x243   : > { %3260 = vmatprep.subr.bf16.mxu1 %v3724_v51 }
 0x244   : > { %v1316_v61 = vor.u32 %v1315_v28, %v1312_v26  ;;  %v1463_v28 = vld [vmem:[#allocation2] sm:$0x80] }
 0x245   : > { %3373 = vmatpush3.bf16.msra.mxu0 %v3729_v1  ;;  %v3741_v1 = vld [vmem:[#allocation17 + $0x1c8] sm:$0xff]   ;;  %v1484_v33 = vshrl.u32 %v1463_v28, 16 }
 0x246   : > { %3261 = vmatpush3.bf16.msra.mxu1 %v3724_v51  ;;  %3374 = vmatprep.subr.bf16.mxu0 %v3731_v19  ;;  %v1320_v5 = vsel %vm1308_vm15, %v1316_v61, %v5148_v38  ;;  %v1988_v51 = vrot.slane %v5041_v35, 5  ;;  %v1994_v35 = vrot.slane %v1992_v42, 4  ;;  %v3746_v61 = vld [vmem:[#allocation17 + $0xd0] sm:$0xff]  }
 0x247   : > { %3270 = vmatprep.subr.bf16.mxu1 %v3726_v8 }
 0x248   : > { %v1989_v0 = vor.u32 %v1988_v51, %v1987_v50  ;;  %v1998_v11 = vor.u32 %v1997_v49, %v1994_v35  ;;  %v3752_v50 = vld [vmem:[#allocation17 + $0xe8] sm:$0xff]   ;;  %v3759_v35 = vld [vmem:[#allocation17 + $0x218] sm:$0xff]  }
 0x249   : > { %3263 = vmatmul.mubr.bf16.vlgmr.msra.gmra.mrb[0].mxu1 %v1154_v47  ;;  %3375 = vmatpush3.bf16.msra.mxu0 %v3731_v19  ;;  %v1326_v19 = vrot.slane %v5057_v60, 4  ;;  %v1290_v47 = vld [vmem:[#allocation2 + $0x20] sm:$0xf]  ;;  %v3747_v60 = vld [vmem:[#allocation17 + $0x1e0] sm:$0xff]  }
 0x24a   : > { %3266 = vmatprep.mubr.bf16.mxu1 %v1163_v23  ;;  %3271 = vmatpush3.bf16.msra.mxu1 %v3726_v8  ;;  %v1990_v41 = vsel %vm1970_vm11, %v1985_v58, %v1989_v0  ;;  %v5164_v8 = vld [vmem:[#allocation2 + $0x8] sm:$0xe0]  ;;  %v1999_v21 = vsel %vm1970_vm11, %v1989_v0, %v1998_v11  ;;  %v1323_v23 = vor.u32 %v1322_v15, %v1321_v59  ;;  %v1330_v54 = vshrl.u32 %v1290_v47, 16  ;;  %v3757_v58 = vld [vmem:[#allocation17 + $0x208] sm:$0xff]  }
 0x24b   : > { %3272 = vmatprep.subr.bf16.mxu1 %v3728_v17  ;;  %3376 = vmatprep.subr.bf16.mxu0 %v3733_v25  ;;  %v2149_v14 = vrot.slane %v5164_v8, 5  ;;  %v1333_v7 = vshll.u32 %v1290_v47, 16  ;;  %v1327_v26 = vor.u32 %v1326_v19, %v1325_v16  ;;  %v2303_v51 = vshrl.u32 %v5164_v8, 16  ;;  %v3761_v49 = vld [vmem:[#allocation17 + $0x228] sm:$0xff]  }
 0x24c   : > { %v1332_v32 = vrot.slane %v1330_v54, 3  ;;  %v2156_v0 = vrot.slane %v5157_v55, 5  ;;  %v3760_v55 = vld [vmem:[#allocation17 + $0x220] sm:$0xff]   ;;  %v2520_v54 = vpop.permute.xlu0 %2519 }
 0x24d   : > { %3377 = vmatpush3.bf16.msra.mxu0 %v3733_v25  ;;  %v2151_v2 = vsel %vm2148_vm12, %v2149_v14, %v2150_v24  ;;  %v3744_v25 = vld [vmem:[#allocation17 + $0xc8] sm:$0xff]   ;;  %v1335_v43 = vrot.slane %v1333_v7, 4  ;;  %v1328_v24 = vsel %vm1308_vm15, %v1323_v23, %v1327_v26  ;;  %v2305_v42 = vrot.slane %v2303_v51, 5  ;;  %v2523_v7 = vpop.permute.xlu1 %2522 }
 0x24e   : > { %3273 = vmatpush3.bf16.msra.mxu1 %v3728_v17  ;;  %3378 = vmatprep.subr.bf16.mxu0 %v3735_v37  ;;  %v3745_v17 = vld [vmem:[#allocation17 + $0x1d8] sm:$0xff]   ;;  %vm2542_vm0 = vcmp.eq.s32.totalorder %v2520_v54, 1  ;;  %vm2543_vm1 = vcmp.eq.s32.totalorder %v2523_v7, 1 }
 0x24f   : > { %3274 = vmatprep.subr.bf16.mxu1 %v3730_v30 }
 0x251   : > { %3267 = vmatmul.mubr.bf16.gmra.mrb[4].mxu1 %v1172_v44  ;;  %3379 = vmatpush3.bf16.msra.mxu0 %v3735_v37  ;;  %v1336_v37 = vor.u32 %v1335_v43, %v1332_v32  ;;  %v3751_v44 = vld [vmem:[#allocation17 + $0x1f0] sm:$0xff]  }
 0x252   : > { %3275 = vmatpush3.bf16.msra.mxu1 %v3730_v30  ;;  %3286 = vmatprep.mubr.bf16.mxu1 %v1320_v5  ;;  %v1324_v30 = vsel %vm1308_vm15, %v5148_v38, %v1323_v23  ;;  %v3748_v38 = vld [vmem:[#allocation17 + $0xd8] sm:$0xff]  }
 0x253   : > { %3276 = vmatprep.subr.bf16.mxu1 %v3732_v39  ;;  %3380 = vmatprep.subr.bf16.mxu0 %v3737_v53  ;;  %v1337_v5 = vsel %vm1308_vm15, %v1327_v26, %v1336_v37  ;;  %v3013_v26 = vld [vmem:[#allocation18] ss:$0 sm:$0xff] }
 0x255   : > { %3381 = vmatpush3.bf16.msra.mxu0 %v3737_v53 }
 0x256   : > { %3277 = vmatpush3.bf16.msra.mxu1 %v3732_v39  ;;  %3390 = vmatprep.subr.bf16.mxu0 %v3739_v57  ;;  %v1486_v39 = vrot.slane %v1484_v33, 7 }
 0x257   : > { %3278 = vmatprep.subr.bf16.mxu1 %v3734_v48 }
 0x258   : > { %3383 = vmatmul.mubr.bf16.vlgmr.msra.gmra.mrb[0].mxu0 %v1986_v31  ;;  %v1489_v53 = vsel %vm1482_vm13, %v1486_v39, %v5084_v29  ;;  %v3754_v29 = vld [vmem:[#allocation17 + $0xf0] sm:$0xff]   ;;  %v2529_v39 = vpop.permute.xlu1 %2528 }
 0x259   : > { %3386 = vmatprep.mubr.bf16.mxu0 %v1990_v41  ;;  %3391 = vmatpush3.bf16.msra.mxu0 %v3739_v57  ;;  %v2306_v57 = vshll.u32 %v5164_v8, 16  ;;  %vm2545_vm3 = vcmp.eq.s32.totalorder %v2529_v39, 1 }
 0x25a   : > { %3279 = vmatpush3.bf16.msra.mxu1 %v3734_v48  ;;  %3392 = vmatprep.subr.bf16.mxu0 %v3741_v1  ;;  %v3755_v48 = vld [vmem:[#allocation17 + $0x200] sm:$0xff]  }
 0x25b   : > { %3280 = vmatprep.subr.bf16.mxu1 %v3736_v63  ;;  %v2308_v62 = vrot.slane %v2306_v57, 6 }
 0x25d   : > { %3393 = vmatpush3.bf16.msra.mxu0 %v3741_v1  ;;  %v3756_v1 = vld [vmem:[#allocation17 + $0xf8] sm:$0xff]   ;;  %v2309_v31 = vor.u32 %v2308_v62, %v2305_v42 }
 0x25e   : > { %3281 = vmatpush3.bf16.msra.mxu1 %v3736_v63  ;;  %3394 = vmatprep.subr.bf16.mxu0 %v3743_v10  ;;  %v3758_v63 = vld [vmem:[#allocation17 + $0x210] sm:$0xff]  }
 0x25f   : > { %3282 = vmatprep.subr.bf16.mxu1 %v3738_v4 }
 0x260   : > { %3387 = vmatmul.mubr.bf16.gmra.mrb[4].mxu0 %v1999_v21 }
 0x261   : > { %3395 = vmatpush3.bf16.msra.mxu0 %v3743_v10  ;;  %3406 = vmatprep.mubr.bf16.mxu0 %v2151_v2 }
 0x262   : > { %3283 = vmatpush3.bf16.msra.mxu1 %v3738_v4  ;;  %3396 = vmatprep.subr.bf16.mxu0 %v3745_v17 }
 0x263   : > { %3284 = vmatprep.subr.bf16.mxu1 %v3740_v12 }
 0x265   : > { %3397 = vmatpush3.bf16.msra.mxu0 %v3745_v17 }
 0x266   : > { %3285 = vmatpush3.bf16.msra.mxu1 %v3740_v12  ;;  %3398 = vmatprep.subr.bf16.mxu0 %v3747_v60 }
 0x267   : > { %3294 = vmatprep.subr.bf16.mxu1 %v3742_v22 }
 0x269   : > { %3287 = vmatmul.mubr.bf16.vlgmr.msra.gmra.mrb[0].mxu1 %v1324_v30  ;;  %3399 = vmatpush3.bf16.msra.mxu0 %v3747_v60 }
 0x26a   : > { %3290 = vmatprep.mubr.bf16.mxu1 %v1328_v24  ;;  %3295 = vmatpush3.bf16.msra.mxu1 %v3742_v22  ;;  %v2526_v24 = vpop.permute.xlu0 %2525 }
 0x26b   : > { %3296 = vmatprep.subr.bf16.mxu1 %v3744_v25  ;;  %3400 = vmatprep.subr.bf16.mxu0 %v3749_v34  ;;  %vm2544_vm2 = vcmp.eq.s32.totalorder %v2526_v24, 1 }
 0x26d   : > { %3401 = vmatpush3.bf16.msra.mxu0 %v3749_v34 }
 0x26e   : > { %3297 = vmatpush3.bf16.msra.mxu1 %v3744_v25  ;;  %3402 = vmatprep.subr.bf16.mxu0 %v3751_v44  ;;  %v2532_v62 = vpop.permute.xlu0 %2531 }
 0x26f   : > { %3298 = vmatprep.subr.bf16.mxu1 %v3746_v61  ;;  %vm2546_vm4 = vcmp.eq.s32.totalorder %v2532_v62, 1 }
 0x271   : > { %3291 = vmatmul.mubr.bf16.gmra.mrb[4].mxu1 %v1337_v5  ;;  %3403 = vmatpush3.bf16.msra.mxu0 %v3751_v44 }
 0x272   : > { %3299 = vmatpush3.bf16.msra.mxu1 %v3746_v61  ;;  %3310 = vmatprep.mubr.bf16.mxu1 %v1489_v53 }
 0x273   : > { %3300 = vmatprep.subr.bf16.mxu1 %v3748_v38  ;;  %3404 = vmatprep.subr.bf16.mxu0 %v3753_v45 }
 0x275   : > { %3405 = vmatpush3.bf16.msra.mxu0 %v3753_v45 }
 0x276   : > { %3301 = vmatpush3.bf16.msra.mxu1 %v3748_v38  ;;  %3414 = vmatprep.subr.bf16.mxu0 %v3755_v48 }
 0x277   : > { %3302 = vmatprep.subr.bf16.mxu1 %v3750_v46 }
 0x278   : > { %3407 = vmatmul.mubr.bf16.vlgmr.msra.gmra.mrb[0].mxu0 %v5093_v6  ;;  %v2157_v6 = vsel %vm2148_vm12, %v2154_v27, %v2156_v0  ;;  %v3763_v27 = vld [vmem:[#allocation17 + $0x238] sm:$0xff]  }
 0x279   : > { %3410 = vmatprep.mubr.bf16.mxu0 %v5098_v36  ;;  %3415 = vmatpush3.bf16.msra.mxu0 %v3755_v48  ;;  %v2313_v36 = vsel %vm2301_vm14, %v2309_v31, %v5124_v3  ;;  %v2535_v31 = vpop.permute.xlu1 %2534 }
 0x27a   : > { %3303 = vmatpush3.bf16.msra.mxu1 %v3750_v46  ;;  %3416 = vmatprep.subr.bf16.mxu0 %v3757_v58  ;;  %vm2547_vm5 = vcmp.eq.s32.totalorder %v2535_v31, 1 }
 0x27b   : > { %3304 = vmatprep.subr.bf16.mxu1 %v3752_v50 }
 0x27d   : > { %3417 = vmatpush3.bf16.msra.mxu0 %v3757_v58 }
 0x27e   : > { %3305 = vmatpush3.bf16.msra.mxu1 %v3752_v50  ;;  %3418 = vmatprep.subr.bf16.mxu0 %v3758_v63 }
 0x27f   : > { %3306 = vmatprep.subr.bf16.mxu1 %v3754_v29 }
 0x280   : > { %3411 = vmatmul.mubr.bf16.gmra.mrb[4].mxu0 %v2157_v6 }
 0x281   : > { %3419 = vmatpush3.bf16.msra.mxu0 %v3758_v63  ;;  %3430 = vmatprep.mubr.bf16.mxu0 %v2313_v36 }
 0x282   : > { %3307 = vmatpush3.bf16.msra.mxu1 %v3754_v29  ;;  %3420 = vmatprep.subr.bf16.mxu0 %v3759_v35 }
 0x283   : > { %3308 = vmatprep.subr.bf16.mxu1 %v3756_v1 }
 0x285   : > { %3421 = vmatpush3.bf16.msra.mxu0 %v3759_v35 }
 0x286   : > { %3309 = vmatpush3.bf16.msra.mxu1 %v3756_v1  ;;  %3422 = vmatprep.subr.bf16.mxu0 %v3760_v55 }
 0x287   : > { %3438 = vmatprep.subr.bf16.mxu1 %v3755_v48 }
 0x289   : > { %3311 = vmatmul.mubr.bf16.vlgmr.msra.gmra.mrb[0].mxu1 %v5102_v40  ;;  %3423 = vmatpush3.bf16.msra.mxu0 %v3760_v55  ;;  %v2283_v40 = vld [vmem:[#allocation2 + $0x28] sm:$0x3f] }
 0x28a   : > { %3314 = vmatprep.mubr.bf16.mxu1 %v5109_v52  ;;  %3446 = vmatpush3.bf16.msra.mxu1 %v3755_v48  ;;  %v2323_v52 = vshrl.u32 %v2283_v40, 16  ;;  %v2326_v3 = vshll.u32 %v2283_v40, 16 }
 0x28b   : > { %3439 = vmatprep.subr.bf16.mxu1 %v3757_v58  ;;  %3424 = vmatprep.subr.bf16.mxu0 %v3761_v49 }
 0x28c   : > { %v2328_v4 = vrot.slane %v2326_v3, 6 }
 0x28d   : > { %3425 = vmatpush3.bf16.msra.mxu0 %v3761_v49 }
 0x28e   : > { %3447 = vmatpush3.bf16.msra.mxu1 %v3757_v58  ;;  %3426 = vmatprep.subr.bf16.mxu0 %v3762_v18 }
 0x28f   : > { %3440 = vmatprep.subr.bf16.mxu1 %v3758_v63 }
 0x291   : > { %3315 = vmatmul.mubr.bf16.gmra.mrb[4].mxu1 %v5114_v56  ;;  %3427 = vmatpush3.bf16.msra.mxu0 %v3762_v18  ;;  %v2325_v56 = vrot.slane %v2323_v52, 5  ;;  %v2538_v52 = vpop.permute.xlu0 %2537 }
 0x292   : > { %3448 = vmatpush3.bf16.msra.mxu1 %v3758_v63  ;;  %3434 = vmatprep.mubr.bf16.mxu1 %v5141_v20  ;;  %vm2548_vm6 = vcmp.eq.s32.totalorder %v2538_v52, 1 }
 0x293   : > { %3441 = vmatprep.subr.bf16.mxu1 %v3759_v35  ;;  %3428 = vmatprep.subr.bf16.mxu0 %v3763_v27  ;;  %v2329_v20 = vor.u32 %v2328_v4, %v2325_v56 }
 0x295   : > { %3429 = vmatpush3.bf16.msra.mxu0 %v3763_v27  ;;  %v2330_v41 = vsel %vm2301_vm14, %v5129_v9, %v2329_v20 }
 0x296   : > { %3449 = vmatpush3.bf16.msra.mxu1 %v3759_v35 }
 0x297   : > { %3442 = vmatprep.subr.bf16.mxu1 %v3760_v55 }
 0x298   : > { %3431 = vmatmul.mubr.bf16.vlgmr.msra.gmra.mrb[0].mxu0 %v5135_v13 }
 0x29a   : > { %3450 = vmatpush3.bf16.msra.mxu1 %v3760_v55 }
 0x29b   : > { %3443 = vmatprep.subr.bf16.mxu1 %v3761_v49 }
 0x29e   : > { %3451 = vmatpush3.bf16.msra.mxu1 %v3761_v49 }
 0x29f   : > { %3444 = vmatprep.subr.bf16.mxu1 %v3762_v18 }
 0x2a2   : > { %3452 = vmatpush3.bf16.msra.mxu1 %v3762_v18 }
 0x2a3   : > { %3445 = vmatprep.subr.bf16.mxu1 %v3763_v27 }
 0x2a6   : > { %3453 = vmatpush3.bf16.msra.mxu1 %v3763_v27 }
 0x2a9   : > { %3435 = vmatmul.mubr.bf16.vlgmr.msra.gmra.mrb[8].mxu1 %v2330_v41  ;;  %v2541_v41 = vpop.permute.xlu1 %2540 }
 0x2aa   : > { %vm2549_vm7 = vcmp.eq.s32.totalorder %v2541_v41, 1 }
 0x353   : > { %v3412_v8 = vpop.f32.mrb[4].mxu0 }
 0x354   : > { %v2260_v10 = vpop.f32.mrb[5].mxu0 }
 0x355   : > { %v3413_v11 = vpop.f32.mrb[6].mxu0 }
 0x356   : > { %v2263_v12 = vpop.f32.mrb[7].mxu0 }
 0x35c   : > { %v3312_v14 = vpop.f32.mrb[0].mxu1 }
 0x35d   : > { %v1590_v13 = vpop.f32.mrb[1].mxu1 }
 0x35e   : > { %v3313_v59 = vpop.f32.mrb[2].mxu1 }
 0x35f   : > { %v1593_v15 = vpop.f32.mrb[3].mxu1 }
 0x364   : > { %v3316_v16 = vpop.f32.mrb[4].mxu1 }
 0x365   : > { %v3458_v19 = vadd.f32 %v3412_v8, %v3316_v16  ;;  %v1606_v17 = vpop.f32.mrb[5].mxu1 }
 0x366   : > { %v3460_v47 = vadd.f32 %v2260_v10, %v1606_v17  ;;  %v3317_v21 = vpop.f32.mrb[6].mxu1 }
 0x367   : > { %v3462_v22 = vadd.f32 %v3413_v11, %v3317_v21  ;;  %v1609_v2 = vpop.f32.mrb[7].mxu1 }
 0x368   : > { %v3464_v23 = vadd.f32 %v2263_v12, %v1609_v2 }
 0x36b   : > { %v3432_v9 = vpop.f32.mrb[0].mxu0 }
 0x36c   : > { %v3454_v60 = vadd.f32 %v3432_v9, %v3312_v14  ;;  %v2417_v28 = vpop.f32.mrb[1].mxu0 }
 0x36d   : > { %v3455_v25 = vadd.f32 %v2417_v28, %v1590_v13  ;;  %v3433_v30 = vpop.f32.mrb[2].mxu0 }
 0x36e   : > { %v3456_v32 = vadd.f32 %v3433_v30, %v3313_v59  ;;  %v2420_v43 = vpop.f32.mrb[3].mxu0  ;;  %v2464_v33 = vadd.f32 %v3454_v60, %v3013_v26 }
 0x36f   : > { %v2462_v34 = vadd.f32 %v3455_v25, %v3013_v26  ;;  %v3457_v61 = vadd.f32 %v2420_v43, %v1593_v15 }
 0x370   : > { %v2465_v37 = vadd.f32 %v3456_v32, %v3013_v26  ;;  %v2552_v53 = vsel %vm2544_vm2, %v2464_v33, 0.0 }
 0x371   : > { %v2550_v44 = vsel %vm2542_vm0, %v2462_v34, 0.0  ;;  %v2463_v38 = vadd.f32 %v3457_v61, %v3013_v26  ;;  %v2574_v58 = vmul.f32 %v2552_v53, %v2552_v53 }
 0x372   : > { %v3092_v5 = vpack.c.bf16 %v2465_v37, %v2464_v33  ;;  %v2572_v48 = vmul.f32 %v2550_v44, %v2550_v44  ;;  %v2553_v57 = vsel %vm2545_vm3, %v2465_v37, 0.0 }
 0x373   : > { %v3087_v45 = vpack.c.bf16 %v2463_v38, %v2462_v34  ;;  %v2551_v46 = vsel %vm2543_vm1, %v2463_v38, 0.0  ;;  %v2575_v63 = vmul.f32 %v2553_v57, %v2553_v57 }
 0x374   : > { %3111 = vst [vmem:[%s5200_s3 + $0x8] sm:$0xff] %v3092_v5   ;;  %v2558_v50 = vadd.f32 %v2551_v46, %v2550_v44  ;;  %v2573_v51 = vmul.f32 %v2551_v46, %v2551_v46 }
 0x375   : > { %3088 = vst [vmem:[%s5200_s3] sm:$0xff] %v3087_v45  }
 0x376   : > { %v2559_v29 = vadd.f32 %v2558_v50, %v2552_v53  ;;  %v2580_v42 = vadd.f32 %v2573_v51, %v2572_v48 }
 0x378   : > { %v2581_v0 = vadd.f32 %v2580_v42, %v2574_v58  ;;  %v2560_v1 = vadd.f32 %v2559_v29, %v2553_v57 }
 0x37a   : > { %v2582_v55 = vadd.f32 %v2581_v0, %v2575_v63 }
 0x37c   : > { %v3436_v35 = vpop.f32.mrb[8].mxu1 }
 0x37d   : > { %v3459_v6 = vadd.f32 %v3458_v19, %v3436_v35  ;;  %v2433_v36 = vpop.f32.mrb[9].mxu1 }
 0x37e   : > { %v3461_v49 = vadd.f32 %v3460_v47, %v2433_v36  ;;  %v3437_v18 = vpop.f32.mrb[10].mxu1 }
 0x37f   : > { %v3463_v27 = vadd.f32 %v3462_v22, %v3437_v18  ;;  %v2436_v40 = vpop.f32.mrb[11].mxu1  ;;  %v2468_v3 = vadd.f32 %v3459_v6, %v3013_v26 }
 0x380   : > { %v2466_v56 = vadd.f32 %v3461_v49, %v3013_v26  ;;  %v3465_v4 = vadd.f32 %v3464_v23, %v2436_v40 }
 0x381   : > { %v2469_v20 = vadd.f32 %v3463_v27, %v3013_v26  ;;  %v2556_v13 = vsel %vm2548_vm6, %v2468_v3, 0.0 }
 0x382   : > { %v2554_v8 = vsel %vm2546_vm4, %v2466_v56, 0.0  ;;  %v2467_v10 = vadd.f32 %v3465_v4, %v3013_v26  ;;  %v2578_v21 = vmul.f32 %v2556_v13, %v2556_v13 }
 0x383   : > { %v2561_v11 = vadd.f32 %v2560_v1, %v2554_v8  ;;  %v2576_v12 = vmul.f32 %v2554_v8, %v2554_v8  ;;  %v3102_v14 = vpack.c.bf16 %v2469_v20, %v2468_v3  ;;  %v2557_v47 = vsel %vm2549_vm7, %v2469_v20, 0.0 }
 0x384   : > { %v3097_v59 = vpack.c.bf16 %v2467_v10, %v2466_v56  ;;  %v2555_v15 = vsel %vm2547_vm5, %v2467_v10, 0.0 }
 0x385   : > { %v2583_v16 = vadd.f32 %v2582_v55, %v2576_v12  ;;  %3113 = vst [vmem:[%s5200_s3 + $0x18] sm:$0xff] %v3102_v14   ;;  %v2562_v19 = vadd.f32 %v2561_v11, %v2555_v15  ;;  %v2577_v17 = vmul.f32 %v2555_v15, %v2555_v15 }
 0x386   : > { %3112 = vst [vmem:[%s5200_s3 + $0x10] sm:$0xff] %v3097_v59  }
 0x387   : > { %v2563_v22 = vadd.f32 %v2562_v19, %v2556_v13  ;;  %v2584_v2 = vadd.f32 %v2583_v16, %v2577_v17 }
 0x388   : > { %4081 = shalt.err (!%p4078_p13)
}
 0x389   : > { %s4082_s22 = scalar_lea.hbm %s5211_s21, 512  ;;  %s4086_s7 = scalar_lea.hbm %s5442_s10, 2048 }
 0x38a   : > { %p4083_p12 = scmp.ne.s32.totalorder %s5211_s21, %s4082_s22  ;;  %p4087_p8 = scmp.lt.u32.totalorder %s5211_s21, %s5442_s10 }
 0x38b   : > { %p4088_p4 = scmp.lt.u32.totalorder %s4086_s7, %s4082_s22  ;;  %p4090_p0 = scmp.lt.u32.totalorder %s4082_s22, %s5211_s21 }
 0x38c   : > { %p4084_p9 = pnand %p4083_p12, %p5444_p2 }
 0x38d   : > { %p4089_p1 = por %p4088_p4, %p4087_p8 }
 0x38e   : > { %p4085_p5 = pneg %p4084_p9 }
 0x38f   : > { %p4091_p3 = por %p4090_p0, %p4089_p1 }
 0x391   : > { %p4092_p6 = pnand %p4091_p3, %p4085_p5 }
 0x393   : > { %4095 = shalt.err (!%p4092_p6)
}
 0x394   : > { %s4264_s3 = smov 64   ;;  %s4265_s14 = smov 4   ;;  %v2579_v23 = vmul.f32 %v2557_v47, %v2557_v47  ;;  %v2564_v54 = vadd.f32 %v2563_v22, %v2557_v47  ;;  %v2585_v7 = vadd.f32 %v2584_v2, %v2578_v21  ;;  %vm2594_vm8 = vcmask 1040384  }
 0x395   : > { %3546 = dma.vmem_to_hbm [thread:$0]  (%p5444_p2), %s5206_s5, 512, %s5211_s21, %s2600_s11, %s4264_s3, %s4264_s3, %s4265_s14   ;;  %vm2596_vm9 = vcmask 1041408  }
 0x396   : > { %v2565_v9 = vrot.slane %v2564_v54, 4  ;;  %v2586_v26 = vadd.f32 %v2585_v7, %v2579_v23  ;;  %s2938_s15 = sshll.u32 %s4854_s25, 3  ;;  %s3026_s5 = sshll.u32 %s4378_s29, 7 }
 0x397   : > { %s709_s23 = scalar_lea.vmem [#allocation21], %s2938_s15  ;;  %s5445_s16 = sld [smem:[#allocation57_spill]] }
 0x398   : > { %v2566_v60 = vadd.f32 %v2565_v9, %v2564_v54  ;;  %v2587_v28 = vrot.slane %v2586_v26, 4  ;;  %s2634_s21 = sshll.u32 %s709_s23, 4  ;;  %s2605_s30 = scalar_lea.sflag [#allocation22], %s4854_s25  ;;  %s5246_s21 = int_to_ptr.vmem [resolvable:$true] %s2634_s21 }
 0x399   : > { %s4096_s29 = scalar_lea.vmem %s5246_s21, 128  ;;  %s4266_s22 = smov [#allocation21]  }
 0x39a   : > { %v2567_v25 = vrot.slane %v2566_v60, 2  ;;  %v2588_v30 = vadd.f32 %v2587_v28, %v2586_v26  ;;  %p4097_p10 = scmp.ne.s32.totalorder %s5246_s21, %s4096_s29  ;;  %s4100_s12 = sshll.u32 %s4266_s22, 4  ;;  %s4101_s12 = int_to_ptr.vmem [resolvable:$false] %s4100_s12 }
 0x39b   : > { %s4102_s13 = scalar_lea.vmem %s4101_s12, 256  ;;  %p4103_p13 = scmp.lt.s32.totalorder %s5246_s21, %s4101_s12 }
 0x39c   : > { %v2568_v32 = vadd.f32 %v2567_v25, %v2566_v60  ;;  %v2589_v43 = vrot.slane %v2588_v30, 2  ;;  %p4098_p11 = pnand %p4097_p10, %p5444_p2  ;;  %p4104_p12 = scmp.lt.s32.totalorder %s4102_s13, %s4096_s29 }
 0x39d   : > { %s5244_s17 = scalar_lea.hbm %s5445_s16, %s3026_s5 }
 0x39e   : > { %v2569_v24 = vrot.slane %v2568_v32, 1  ;;  %v2590_v33 = vadd.f32 %v2589_v43, %v2588_v30  ;;  %p4099_p7 = pneg %p4098_p11  ;;  %p4105_p9 = por %p4104_p12, %p4103_p13 }
 0x3a0   : > { %v2591_v34 = vrot.slane %v2590_v33, 1  ;;  %v2570_v61 = vadd.f32 %v2569_v24, %v2568_v32  ;;  %p4106_p5 = pnand %p4105_p9, %p4099_p7 }
 0x3a2   : > { %v2592_v37 = vadd.f32 %v2591_v34, %v2590_v33 }
 0x3a4   : > { %v2595_v39 = vsel %vm2594_vm8, %v2570_v61, %v2592_v37 }
 0x3a5   : > { %v2597_v44 = vsel %vm2596_vm9, %v2595_v39, 0.0 }
 0x3a6   : > { %2598 = vst [vmem:[%s709_s23] sm:$0xff] %v2597_v44 }
 0x3a7   : > { %4109 = shalt.err (!%p4106_p5)
}
 0x3a8   : > { %s4110_s25 = scalar_lea.hbm %s5244_s17, 128  ;;  %s4114_s4 = scalar_lea.hbm %s5445_s16, 512 }
 0x3a9   : > { %p4111_p8 = scmp.ne.s32.totalorder %s5244_s17, %s4110_s25  ;;  %p4115_p0 = scmp.lt.u32.totalorder %s5244_s17, %s5445_s16 }
 0x3aa   : > { %p4116_p3 = scmp.lt.u32.totalorder %s4114_s4, %s4110_s25  ;;  %p4118_p10 = scmp.lt.u32.totalorder %s4110_s25, %s5244_s17 }
 0x3ab   : > { %p4112_p4 = pnand %p4111_p8, %p5444_p2 }
 0x3ac   : > { %p4117_p6 = por %p4116_p3, %p4115_p0 }
 0x3ad   : > { %p4113_p1 = pneg %p4112_p4 }
 0x3ae   : > { %p4119_p11 = por %p4118_p10, %p4117_p6 }
 0x3b0   : > { %p4120_p7 = pnand %p4119_p11, %p4113_p1 }
 0x3b2   : > { %4123 = shalt.err (!%p4120_p7)
}
 0x3b3   : > { %3547 = dma.vmem_to_hbm [thread:$0]  (%p5444_p2), %s5246_s21, 128, %s5244_s17, %s2605_s30  }
 0x3b4 PF: > { %s5446_s15 = sld [smem:[#allocation34_spill]]  ;;  %s5447_s5 = sld [smem:[#allocation44_spill]] }
 0x3b5   : > { %p3598_p13 = scmp.ge.s32.totalorder %s4246_s26, 2 }
 0x3ba   : > { %s2646_s23 = sand.u32 1, %s5446_s15   ;;  %p5448_p12 = scmp.ne.s32.totalorder %s5447_s5, 0 }
 0x3bb   : > { %s2647_s11 = scalar_lea.sflag [#allocation5], %s2646_s23 }
 0x3bc   : > { %p3583_p9 = pnand %p3598_p13, %p5448_p12 }
 0x3be   : > { %4201 = dma.done.wait (!%p3583_p9), %s2647_s11, 512  }
 0x3bf   : > { %4203 = vsyncadd (!%p3583_p9), %s2647_s11, 4294966784  ;;  %s2656_s27 = scalar_lea.sflag [#allocation22], %s2646_s23 }
 0x3c0   : > { %4205 = dma.done.wait (!%p3583_p9), %s2656_s27, 128  }
 0x3c1   : > { %4207 = vsyncadd (!%p3583_p9), %s2656_s27, 4294967168  ;;  %s5449_s26 = sld [smem:[#allocation40_spill]]  ;;  %s5450_s20 = sld [smem:[#allocation35_spill]] }
 0x3c2   : > { %s5451_s21 = sld [smem:[#allocation36_spill]]  ;;  %s5452_s22 = sld [smem:[#allocation41_spill]] }
 0x3c3   : > { %s5453_s23 = sld [smem:[#allocation37_spill]]  ;;  %s5454_s24 = sld [smem:[#allocation38_spill]] }
 0x3c4   : > { %s5455_s25 = sld [smem:[#allocation48_spill]]  ;;  %s5456_s17 = smov %s4214_s18 }
 0x3c5   : > { %s5457_s18 = smov %s4218_s19  ;;  %s5458_s19 = smov %s4722_s28 }
 0x3c7   : > { %p39_p2 = scmp.ge.s32.totalorder %s5449_s26, 6  }
 0x3c9   :  { %41 = sbr.rel (!%p39_p2) target bundleno = 28 (0x1c), region = 207 }
 0x3d0   :  { %2661 = vsyncpa [#allocation4], 1 }
 0x3d1   :  { %2663 = vsyncpa [#allocation4 + $0x1], 1 }
 0x3d2   :  { %2664 = vsyncpa [#allocation7], 1 }
 0x3d3   :  { %2666 = vsyncpa [#allocation7 + $0x1], 1 }
 0x3d4   :  { %2667 = vsyncpa [#allocation10], 1 }
 0x3d5   :  { %2669 = vsyncpa [#allocation10 + $0x1], 1 }
 0x3d6   :  { %2670 = vsyncpa [#allocation13], 1 }
 0x3d7   :  { %2672 = vsyncpa [#allocation13 + $0x1], 1 }
 0x3d8   :  { %2673 = vsyncpa [#allocation16], 1 }
 0x3d9   :  { %2674 = vsyncpa [#allocation19], 1 }
 0x3da   :  { %2675 = vsyncpa [#allocation5], 1 }
 0x3db   :  { %2677 = vsyncpa [#allocation5 + $0x1], 1 }
 0x3dc   :  { %2678 = vsyncpa [#allocation22], 1 }
 0x3dd   :  { %2680 = vsyncpa [#allocation22 + $0x1], 1 }

</bundles_post_ra>
